<compile_context>
chip_gen: v6e
topology: v6e:2x2x1
jax: 0.10.0
libtpu: 0.0.40
codegen_flags: <defaults>
</compile_context>

<pallas_src>
import jax
import jax.numpy as jnp
from jax.experimental import pallas as pl
from jax.experimental.pallas import tpu as pltpu

IN_DIM, H1, H2, OUT = 1536, 512, 64, 2

_TILE_M_MAX = 512        # rows per grid step, per input stream
_VMEM_LIMIT = 40 << 20   # ~<20 MiB needed at TILE_M=512 (paired streams); headroom, << 64 MiB (v7x)


def _round_up(x, m):
    return ((x + m - 1) // m) * m


def _make_mlp_kernel(num_sources):
    """Build kernel: [w1,b1,w2,b2,w3d,b3d] + num_sources x-tiles -> num_sources prob-tiles."""

    def kernel(*refs):
        w1_ref, b1_ref, w2_ref, b2_ref, w3d_ref, b3d_ref = refs[:6]
        x_refs = refs[6:6 + num_sources]
        o_refs = refs[6 + num_sources:]

        # Weights: constant index_map across the grid -> DMA'd once, resident in VMEM.
        w1 = w1_ref[...]     # (IN_DIM, H1)  bf16
        b1 = b1_ref[...]     # (1, H1)       f32
        w2 = w2_ref[...]     # (H1, H2)      bf16
        b2 = b2_ref[...]     # (1, H2)       f32
        w3d = w3d_ref[...]   # (1, H2)       f32   = w3[:, 1] - w3[:, 0]
        b3d = b3d_ref[...]   # (1, 1)        f32   = b3[1] - b3[0]

        for x_ref, o_ref in zip(x_refs, o_refs):
            # Linear(1536 -> 512) + [Dropout=id] + ReLU   (bf16 operands, f32 accumulate)
            x = x_ref[...].astype(jnp.bfloat16)
            h1 = jnp.dot(x, w1, preferred_element_type=jnp.float32) + b1
            h1 = jnp.maximum(h1, 0.0).astype(jnp.bfloat16)

            # Linear(512 -> 64) + [Dropout=id] + ReLU
            h2 = jnp.dot(h1, w2, preferred_element_type=jnp.float32) + b2
            h2 = jnp.maximum(h2, 0.0)

            # Linear(64 -> 2) + [Dropout=id] + Softmax(dim=-1) via the exact 2-class
            # identity: softmax([l0, l1]) == [1 - sigmoid(l1 - l0), sigmoid(l1 - l0)].
            # VPU mul + XLU lane-reduce + EUP exp; keeps the MXU free for the big layers.
            d = jnp.sum(h2 * w3d, axis=-1, keepdims=True) + b3d      # (tile_m, 1)
            p1 = 1.0 / (1.0 + jnp.exp(-d))
            o_ref[:, 0:1] = (1.0 - p1).astype(o_ref.dtype)
            o_ref[:, 1:2] = p1.astype(o_ref.dtype)

    return kernel


def _run_streams(sources, packed_params):
    """Run the MLP over one or two equally-sized row streams in a single pallas_call."""
    w1, b1, w2, b2, w3d, b3d = packed_params
    n = sources[0].shape[0]
    num_sources = len(sources)

    tile_m = min(_TILE_M_MAX, _round_up(max(n, 1), 8))   # sublane-aligned row tile
    grid = (pl.cdiv(n, tile_m),)

    def const_spec(arr):
        # Full-array block, same block for every grid step -> fetched once, resident.
        return pl.BlockSpec(arr.shape, lambda i: (0, 0))

    x_spec = pl.BlockSpec((tile_m, IN_DIM), lambda i: (i, 0))
    o_spec = pl.BlockSpec((tile_m, OUT), lambda i: (i, 0))

    in_specs = ([const_spec(w1), const_spec(b1), const_spec(w2), const_spec(b2),
                 const_spec(w3d), const_spec(b3d)]
                + [x_spec] * num_sources)
    out_specs = [o_spec] * num_sources
    out_shape = tuple(jax.ShapeDtypeStruct((n, OUT), jnp.float32)
                      for _ in range(num_sources))

    outs = pl.pallas_call(
        _make_mlp_kernel(num_sources),
        out_shape=out_shape,
        grid=grid,
        in_specs=in_specs,
        out_specs=out_specs,
        compiler_params=pltpu.CompilerParams(
            dimension_semantics=("parallel",),   # row tiles are independent (megacore on v7x)
            vmem_limit_bytes=_VMEM_LIMIT,
        ),
    )(w1, b1, w2, b2, w3d, b3d, *sources)

    if not isinstance(outs, (tuple, list)):
        outs = (outs,)
    return outs


def net_forward(wild_features, mut_features, packed_params):
    """Net.forward: cat(wild, mut, dim=0) -> classifier -> softmax(dim=-1).

    The 1536-wide activations are never concatenated in HBM; wild and mut are
    streamed as two inputs of the same kernel (one row tile of each per grid step)
    and only the tiny (rows, 2) probability outputs are concatenated here.
    """
    if wild_features.shape[0] == mut_features.shape[0]:
        out_w, out_m = _run_streams((wild_features, mut_features), packed_params)
    else:
        (out_w,) = _run_streams((wild_features,), packed_params)
        (out_m,) = _run_streams((mut_features,), packed_params)
    return jnp.concatenate([out_w, out_m], axis=0)


def init_params(key):
    """Deterministic synthetic weights (PyTorch-style uniform fan-in init), f32."""
    ks = jax.random.split(key, 6)

    def linear(kw, kb, fan_in, fan_out):
        bound = 1.0 / jnp.sqrt(fan_in)
        w = jax.random.uniform(kw, (fan_in, fan_out), jnp.float32, -bound, bound)
        b = jax.random.uniform(kb, (1, fan_out), jnp.float32, -bound, bound)
        return w, b

    w1, b1 = linear(ks[0], ks[1], IN_DIM, H1)
    w2, b2 = linear(ks[2], ks[3], H1, H2)
    w3, b3 = linear(ks[4], ks[5], H2, OUT)
    return (w1, b1, w2, b2, w3, b3)


def pack_params(params):
    """f32 params (W stored as (in, out)) -> kernel-packed params (bf16 weights, f32 head diff)."""
    w1, b1, w2, b2, w3, b3 = params
    w3d = (w3[:, 1] - w3[:, 0]).reshape(1, H2).astype(jnp.float32)
    b3d = (b3[:, 1] - b3[:, 0]).reshape(1, 1).astype(jnp.float32)
    return (w1.astype(jnp.bfloat16), b1.astype(jnp.float32),
            w2.astype(jnp.bfloat16), b2.astype(jnp.float32),
            w3d, b3d)


def _reference_forward(wild, mut, packed_params):
    """Pure-JAX reference at matching (bf16-weight) precision."""
    w1, b1, w2, b2, w3d, b3d = packed_params
    x = jnp.concatenate([wild, mut], axis=0)
    h1 = jnp.maximum(jnp.dot(x.astype(jnp.bfloat16), w1,
                             preferred_element_type=jnp.float32) + b1, 0.0)
    h2 = jnp.maximum(jnp.dot(h1.astype(jnp.bfloat16), w2,
                             preferred_element_type=jnp.float32) + b2, 0.0)
    d = jnp.sum(h2 * w3d, axis=-1, keepdims=True) + b3d
    p1 = jax.nn.sigmoid(d)
    return jnp.concatenate([1.0 - p1, p1], axis=-1)


if __name__ == "__main__":
    key = jax.random.PRNGKey(0)
    k_wild, k_mut, k_params = jax.random.split(key, 3)

    batch = 2  # per-input batch; concatenated rows = 4
    wild = jax.random.normal(k_wild, (batch, IN_DIM), jnp.float32)
    mut = jax.random.normal(k_mut, (batch, IN_DIM), jnp.float32)
    packed = pack_params(init_params(k_params))

    out = net_forward(wild, mut, packed)
    out = jax.block_until_ready(out)

    # sanity: shape, softmax rows sum to 1, matches same-precision JAX reference
    assert out.shape == (2 * batch, OUT)
    assert jnp.allclose(jnp.sum(out, axis=-1), 1.0, atol=1e-5)
    ref = _reference_forward(wild, mut, packed)
    assert jnp.allclose(out, ref, atol=2e-3), float(jnp.max(jnp.abs(out - ref)))

    print("KERNEL_OK")
</pallas_src>

<mosaic_0001>
module attributes {stable_mosaic.version = 11 : i64} {
  func.func @kernel(%arg0: i32, %arg1: memref<1536x512xbf16, #tpu.memory_space<vmem>>, %arg2: memref<1x512xf32, #tpu.memory_space<vmem>>, %arg3: memref<512x64xbf16, #tpu.memory_space<vmem>>, %arg4: memref<1x64xf32, #tpu.memory_space<vmem>>, %arg5: memref<1x64xf32, #tpu.memory_space<vmem>>, %arg6: memref<1x1xf32, #tpu.memory_space<vmem>>, %arg7: memref<8x1536xf32, #tpu.memory_space<vmem>>, %arg8: memref<8x1536xf32, #tpu.memory_space<vmem>>, %arg9: memref<8x2xf32, #tpu.memory_space<vmem>>, %arg10: memref<8x2xf32, #tpu.memory_space<vmem>>) attributes {dimension_semantics = [#tpu.dimension_semantics<parallel>], iteration_bounds = array<i64: 1>, scalar_prefetch = 0 : i64, scratch_operands = 0 : i64, tpu.core_type = #tpu.core_type<tc>, window_params = [{pipeline_mode = #tpu.pipeline_mode<synchronous>, transform_indices = @transform_0, window_bounds = array<i64: 1536, 512>}, {pipeline_mode = #tpu.pipeline_mode<synchronous>, transform_indices = @transform_1, window_bounds = array<i64: 1, 512>}, {pipeline_mode = #tpu.pipeline_mode<synchronous>, transform_indices = @transform_2, window_bounds = array<i64: 512, 64>}, {pipeline_mode = #tpu.pipeline_mode<synchronous>, transform_indices = @transform_3, window_bounds = array<i64: 1, 64>}, {pipeline_mode = #tpu.pipeline_mode<synchronous>, transform_indices = @transform_4, window_bounds = array<i64: 1, 64>}, {pipeline_mode = #tpu.pipeline_mode<synchronous>, transform_indices = @transform_5, window_bounds = array<i64: 1, 1>}, {transform_indices = @transform_6, window_bounds = array<i64: 8, 1536>}, {transform_indices = @transform_7, window_bounds = array<i64: 8, 1536>}, {transform_indices = @transform_8, window_bounds = array<i64: 8, 2>}, {transform_indices = @transform_9, window_bounds = array<i64: 8, 2>}]} {
    %c0 = arith.constant 0 : index
    %c0_0 = arith.constant 0 : index
    %0 = vector.load %arg1[%c0, %c0_0] : memref<1536x512xbf16, #tpu.memory_space<vmem>>, vector<1536x512xbf16>
    %c0_1 = arith.constant 0 : index
    %c0_2 = arith.constant 0 : index
    %1 = vector.load %arg2[%c0_1, %c0_2] : memref<1x512xf32, #tpu.memory_space<vmem>>, vector<1x512xf32>
    %c0_3 = arith.constant 0 : index
    %c0_4 = arith.constant 0 : index
    %2 = vector.load %arg3[%c0_3, %c0_4] : memref<512x64xbf16, #tpu.memory_space<vmem>>, vector<512x64xbf16>
    %c0_5 = arith.constant 0 : index
    %c0_6 = arith.constant 0 : index
    %3 = vector.load %arg4[%c0_5, %c0_6] : memref<1x64xf32, #tpu.memory_space<vmem>>, vector<1x64xf32>
    %c0_7 = arith.constant 0 : index
    %c0_8 = arith.constant 0 : index
    %4 = vector.load %arg5[%c0_7, %c0_8] : memref<1x64xf32, #tpu.memory_space<vmem>>, vector<1x64xf32>
    %c0_9 = arith.constant 0 : index
    %c0_10 = arith.constant 0 : index
    %5 = vector.load %arg6[%c0_9, %c0_10] : memref<1x1xf32, #tpu.memory_space<vmem>>, vector<1x1xf32>
    %c0_11 = arith.constant 0 : index
    %c0_12 = arith.constant 0 : index
    %6 = vector.load %arg7[%c0_11, %c0_12] : memref<8x1536xf32, #tpu.memory_space<vmem>>, vector<8x1536xf32>
    %7 = arith.truncf %6 : vector<8x1536xf32> to vector<8x1536xbf16>
    %cst = arith.constant dense<0.000000e+00> : vector<8x512xf32>
    %8 = tpu.matmul %7, %0, %cst {dimension_numbers = #tpu.dot_dimension_numbers<[1], [0], [0], [1], [0, 0, 1, 1], [], []>} : vector<8x1536xbf16>, vector<1536x512xbf16>, vector<8x512xf32> -> vector<8x512xf32>
    %9 = vector.broadcast %1 : vector<1x512xf32> to vector<8x512xf32>
    %10 = arith.addf %8, %9 : vector<8x512xf32>
    %cst_13 = arith.constant 0.000000e+00 : f32
    %11 = vector.broadcast %cst_13 : f32 to vector<8x512xf32>
    %12 = arith.maximumf %10, %11 : vector<8x512xf32>
    %13 = arith.truncf %12 : vector<8x512xf32> to vector<8x512xbf16>
    %cst_14 = arith.constant dense<0.000000e+00> : vector<8x64xf32>
    %14 = tpu.matmul %13, %2, %cst_14 {dimension_numbers = #tpu.dot_dimension_numbers<[1], [0], [0], [1], [0, 0, 1, 1], [], []>} : vector<8x512xbf16>, vector<512x64xbf16>, vector<8x64xf32> -> vector<8x64xf32>
    %15 = vector.broadcast %3 : vector<1x64xf32> to vector<8x64xf32>
    %16 = arith.addf %14, %15 : vector<8x64xf32>
    %cst_15 = arith.constant 0.000000e+00 : f32
    %17 = vector.broadcast %cst_15 : f32 to vector<8x64xf32>
    %18 = arith.maximumf %16, %17 : vector<8x64xf32>
    %19 = vector.broadcast %4 : vector<1x64xf32> to vector<8x64xf32>
    %20 = arith.mulf %18, %19 : vector<8x64xf32>
    %cst_16 = arith.constant dense<0.000000e+00> : vector<8xf32>
    %21 = vector.multi_reduction <add>, %20, %cst_16 [1] : vector<8x64xf32> to vector<8xf32>
    %22 = vector.shape_cast %21 : vector<8xf32> to vector<8x1xf32>
    %23 = vector.broadcast %5 : vector<1x1xf32> to vector<8x1xf32>
    %24 = arith.addf %22, %23 : vector<8x1xf32>
    %cst_17 = arith.constant 0.000000e+00 : f32
    %25 = vector.broadcast %cst_17 : f32 to vector<8x1xf32>
    %26 = arith.subf %25, %24 : vector<8x1xf32>
    %27 = math.exp %26 : vector<8x1xf32>
    %cst_18 = arith.constant 1.000000e+00 : f32
    %28 = vector.broadcast %cst_18 : f32 to vector<8x1xf32>
    %29 = arith.addf %28, %27 : vector<8x1xf32>
    %cst_19 = arith.constant 1.000000e+00 : f32
    %30 = vector.broadcast %cst_19 : f32 to vector<8x1xf32>
    %31 = arith.divf %30, %29 : vector<8x1xf32>
    %cst_20 = arith.constant 1.000000e+00 : f32
    %32 = vector.broadcast %cst_20 : f32 to vector<8x1xf32>
    %33 = arith.subf %32, %31 : vector<8x1xf32>
    %c0_21 = arith.constant 0 : index
    %c0_22 = arith.constant 0 : index
    %34 = vector.load %arg9[%c0_21, %c0_22] : memref<8x2xf32, #tpu.memory_space<vmem>>, vector<8x1xf32>
    tpu.vector_store %arg9[%c0_21, %c0_22], %33 {strides = array<i32>} : memref<8x2xf32, #tpu.memory_space<vmem>>, vector<8x1xf32>,
    %c0_23 = arith.constant 0 : index
    %c1 = arith.constant 1 : index
    %35 = vector.load %arg9[%c0_23, %c1] : memref<8x2xf32, #tpu.memory_space<vmem>>, vector<8x1xf32>
    tpu.vector_store %arg9[%c0_23, %c1], %31 {strides = array<i32>} : memref<8x2xf32, #tpu.memory_space<vmem>>, vector<8x1xf32>,
    %c0_24 = arith.constant 0 : index
    %c0_25 = arith.constant 0 : index
    %36 = vector.load %arg8[%c0_24, %c0_25] : memref<8x1536xf32, #tpu.memory_space<vmem>>, vector<8x1536xf32>
    %37 = arith.truncf %36 : vector<8x1536xf32> to vector<8x1536xbf16>
    %cst_26 = arith.constant dense<0.000000e+00> : vector<8x512xf32>
    %38 = tpu.matmul %37, %0, %cst_26 {dimension_numbers = #tpu.dot_dimension_numbers<[1], [0], [0], [1], [0, 0, 1, 1], [], []>} : vector<8x1536xbf16>, vector<1536x512xbf16>, vector<8x512xf32> -> vector<8x512xf32>
    %39 = vector.broadcast %1 : vector<1x512xf32> to vector<8x512xf32>
    %40 = arith.addf %38, %39 : vector<8x512xf32>
    %cst_27 = arith.constant 0.000000e+00 : f32
    %41 = vector.broadcast %cst_27 : f32 to vector<8x512xf32>
    %42 = arith.maximumf %40, %41 : vector<8x512xf32>
    %43 = arith.truncf %42 : vector<8x512xf32> to vector<8x512xbf16>
    %cst_28 = arith.constant dense<0.000000e+00> : vector<8x64xf32>
    %44 = tpu.matmul %43, %2, %cst_28 {dimension_numbers = #tpu.dot_dimension_numbers<[1], [0], [0], [1], [0, 0, 1, 1], [], []>} : vector<8x512xbf16>, vector<512x64xbf16>, vector<8x64xf32> -> vector<8x64xf32>
    %45 = vector.broadcast %3 : vector<1x64xf32> to vector<8x64xf32>
    %46 = arith.addf %44, %45 : vector<8x64xf32>
    %cst_29 = arith.constant 0.000000e+00 : f32
    %47 = vector.broadcast %cst_29 : f32 to vector<8x64xf32>
    %48 = arith.maximumf %46, %47 : vector<8x64xf32>
    %49 = vector.broadcast %4 : vector<1x64xf32> to vector<8x64xf32>
    %50 = arith.mulf %48, %49 : vector<8x64xf32>
    %cst_30 = arith.constant dense<0.000000e+00> : vector<8xf32>
    %51 = vector.multi_reduction <add>, %50, %cst_30 [1] : vector<8x64xf32> to vector<8xf32>
    %52 = vector.shape_cast %51 : vector<8xf32> to vector<8x1xf32>
    %53 = vector.broadcast %5 : vector<1x1xf32> to vector<8x1xf32>
    %54 = arith.addf %52, %53 : vector<8x1xf32>
    %cst_31 = arith.constant 0.000000e+00 : f32
    %55 = vector.broadcast %cst_31 : f32 to vector<8x1xf32>
    %56 = arith.subf %55, %54 : vector<8x1xf32>
    %57 = math.exp %56 : vector<8x1xf32>
    %cst_32 = arith.constant 1.000000e+00 : f32
    %58 = vector.broadcast %cst_32 : f32 to vector<8x1xf32>
    %59 = arith.addf %58, %57 : vector<8x1xf32>
    %cst_33 = arith.constant 1.000000e+00 : f32
    %60 = vector.broadcast %cst_33 : f32 to vector<8x1xf32>
    %61 = arith.divf %60, %59 : vector<8x1xf32>
    %cst_34 = arith.constant 1.000000e+00 : f32
    %62 = vector.broadcast %cst_34 : f32 to vector<8x1xf32>
    %63 = arith.subf %62, %61 : vector<8x1xf32>
    %c0_35 = arith.constant 0 : index
    %c0_36 = arith.constant 0 : index
    %64 = vector.load %arg10[%c0_35, %c0_36] : memref<8x2xf32, #tpu.memory_space<vmem>>, vector<8x1xf32>
    tpu.vector_store %arg10[%c0_35, %c0_36], %63 {strides = array<i32>} : memref<8x2xf32, #tpu.memory_space<vmem>>, vector<8x1xf32>,
    %c0_37 = arith.constant 0 : index
    %c1_38 = arith.constant 1 : index
    %65 = vector.load %arg10[%c0_37, %c1_38] : memref<8x2xf32, #tpu.memory_space<vmem>>, vector<8x1xf32>
    tpu.vector_store %arg10[%c0_37, %c1_38], %61 {strides = array<i32>} : memref<8x2xf32, #tpu.memory_space<vmem>>, vector<8x1xf32>,
    return
  }
  func.func @transform_0(%arg0: i32) -> (i32, i32) {
    %c0_i32 = arith.constant 0 : i32
    %c0_i32_0 = arith.constant 0 : i32
    %c0_i32_1 = arith.constant 0 : i32
    return %c0_i32, %c0_i32_0 : i32, i32
  }
  func.func @transform_1(%arg0: i32) -> (i32, i32) {
    %c0_i32 = arith.constant 0 : i32
    %c0_i32_0 = arith.constant 0 : i32
    %c0_i32_1 = arith.constant 0 : i32
    return %c0_i32, %c0_i32_0 : i32, i32
  }
  func.func @transform_2(%arg0: i32) -> (i32, i32) {
    %c0_i32 = arith.constant 0 : i32
    %c0_i32_0 = arith.constant 0 : i32
    %c0_i32_1 = arith.constant 0 : i32
    return %c0_i32, %c0_i32_0 : i32, i32
  }
  func.func @transform_3(%arg0: i32) -> (i32, i32) {
    %c0_i32 = arith.constant 0 : i32
    %c0_i32_0 = arith.constant 0 : i32
    %c0_i32_1 = arith.constant 0 : i32
    return %c0_i32, %c0_i32_0 : i32, i32
  }
  func.func @transform_4(%arg0: i32) -> (i32, i32) {
    %c0_i32 = arith.constant 0 : i32
    %c0_i32_0 = arith.constant 0 : i32
    %c0_i32_1 = arith.constant 0 : i32
    return %c0_i32, %c0_i32_0 : i32, i32
  }
  func.func @transform_5(%arg0: i32) -> (i32, i32) {
    %c0_i32 = arith.constant 0 : i32
    %c0_i32_0 = arith.constant 0 : i32
    %c0_i32_1 = arith.constant 0 : i32
    return %c0_i32, %c0_i32_0 : i32, i32
  }
  func.func @transform_6(%arg0: i32) -> (i32, i32) {
    %c0_i32 = arith.constant 0 : i32
    %c0_i32_0 = arith.constant 0 : i32
    return %arg0, %c0_i32 : i32, i32
  }
  func.func @transform_7(%arg0: i32) -> (i32, i32) {
    %c0_i32 = arith.constant 0 : i32
    %c0_i32_0 = arith.constant 0 : i32
    return %arg0, %c0_i32 : i32, i32
  }
  func.func @transform_8(%arg0: i32) -> (i32, i32) {
    %c0_i32 = arith.constant 0 : i32
    %c0_i32_0 = arith.constant 0 : i32
    return %arg0, %c0_i32 : i32, i32
  }
  func.func @transform_9(%arg0: i32) -> (i32, i32) {
    %c0_i32 = arith.constant 0 : i32
    %c0_i32_0 = arith.constant 0 : i32
    return %arg0, %c0_i32 : i32, i32
  }
}

</mosaic_0001>

<bundles_post_ra>
// kernel: tpu_custom_call.1
= control target key start
LH: loop header
LB: loop body
LE: loop exit
PB: predicated region body
PF: predicated region fallthrough
CT: control target
= control target key end

     0   :  { %s6626_s0 = inlined_call_operand.hbm [shape: bf16[1536,512], index: 0, kind: input, shape index: {}]   ;;  %s6627_s1 = inlined_call_operand.hbm [shape: f32[1,512], index: 1, kind: input, shape index: {}]   ;;  %s6628_s2 = inlined_call_operand.vmem [shape: bf16[512,64], index: 2, kind: input, shape index: {}]   ;;  %s6629_s3 = inlined_call_operand.hbm [shape: f32[1,64], index: 3, kind: input, shape index: {}]   ;;  %s6630_s4 = inlined_call_operand.hbm [shape: f32[1,64], index: 4, kind: input, shape index: {}]   ;;  %s6631_s5 = inlined_call_operand.<no memory space> [shape: f32[1,1], index: 5, kind: input, shape index: {}]   ;;  %s6632_s6 = inlined_call_operand.hbm [shape: f32[2,1536], index: 6, kind: input, shape index: {}]   ;;  %s6633_s7 = inlined_call_operand.hbm [shape: f32[2,1536], index: 7, kind: input, shape index: {}]   ;;  %s6634_s8 = inlined_call_operand.hbm [shape: f32[2,2], index: 8, kind: output, shape index: {0}]   ;;  %s6635_s9 = inlined_call_operand.hbm [shape: f32[2,2], index: 9, kind: output, shape index: {1}]  }
   0x1   :  { %v15_v0 = vstv %s6631_s5 }
   0x2   :  { %16 = vst [vmem:[#allocation2] sm:$0x1] %v15_v0 }
   0x3   :  { %17 = vsyncpa [#allocation4], 0 }
   0x4   :  { %18 = vsyncpa [#allocation7], 0 }
   0x5   :  { %19 = vsyncpa [#allocation10], 0 }
   0x6   :  { %20 = vsyncpa [#allocation13], 0 }
   0x7   :  { %21 = vsyncpa [#allocation5], 0 }
   0x8   :  { %22 = vsyncpa [#allocation16], 0  ;;  %s6018_s11 = smov [#allocation6]   ;;  %s6019_s13 = smov [#allocation3]  }
   0x9   :  { %s41_s12 = sshll.u32 %s6018_s11, 4  ;;  %s28_s14 = sshll.u32 %s6019_s13, 4  ;;  %s42_s12 = int_to_ptr.vmem [resolvable:$true] %s41_s12  ;;  %s29_s14 = int_to_ptr.vmem [resolvable:$true] %s28_s14 }
   0xa   :  { %s5854_s15 = scalar_lea.vmem %s42_s12, 64  ;;  %p5859_p1 = scmp.lt.s32.totalorder %s42_s12, %s42_s12 }
   0xb   :  { %p5855_p0 = scmp.ne.s32.totalorder %s42_s12, %s5854_s15  ;;  %p5860_p2 = scmp.lt.s32.totalorder %s5854_s15, %s5854_s15 }
   0xd   :  { %p5861_p3 = por %p5860_p2, %p5859_p1 }
   0xf   :  { %p5862_p4 = pnand %p5861_p3, %p5855_p0 }
  0x11   :  { %5865 = shalt.err (!%p5862_p4)
}
  0x12   :  { %44 = dma.hbm_to_vmem [thread:$0]  %s6627_s1, 64, %s42_s12, [#allocation7]  }
  0x13   :  { %s5874_s17 = scalar_lea.vmem %s29_s14, 49152  ;;  %p5879_p6 = scmp.lt.s32.totalorder %s29_s14, %s29_s14 }
  0x14   :  { %p5875_p5 = scmp.ne.s32.totalorder %s29_s14, %s5874_s17  ;;  %p5880_p7 = scmp.lt.s32.totalorder %s5874_s17, %s5874_s17 }
  0x16   :  { %p5881_p8 = por %p5880_p7, %p5879_p6 }
  0x18   :  { %p5882_p9 = pnand %p5881_p8, %p5875_p5 }
  0x1a   :  { %5885 = shalt.err (!%p5882_p9)
}
  0x1b   :  { %s6020_s18 = smov 256   ;;  %s6021_s19 = smov 16  }
  0x1c   :  { %34 = dma.hbm_to_vmem [thread:$0]  %s6626_s0, 49152, %s29_s14, [#allocation4], %s6020_s18, %s6020_s18, %s6021_s19  }
  0x1d   :  { %s6022_s22 = smov [#allocation8]   ;;  %s6023_s24 = smov [#allocation9]  }
  0x1e   :  { %s53_s23 = sshll.u32 %s6022_s22, 4  ;;  %s63_s25 = sshll.u32 %s6023_s24, 4  ;;  %s54_s23 = int_to_ptr.vmem [resolvable:$true] %s53_s23  ;;  %s64_s25 = int_to_ptr.vmem [resolvable:$true] %s63_s25 }
  0x1f   :  { %s5894_s1 = scalar_lea.vmem %s54_s23, 16  ;;  %s5898_s26 = scalar_lea.vmem %s54_s23, 32 }
  0x20   :  { %p5895_p10 = scmp.ne.s32.totalorder %s54_s23, %s5894_s1  ;;  %p5899_p11 = scmp.lt.s32.totalorder %s54_s23, %s54_s23 }
  0x21   :  { %p5900_p12 = scmp.lt.s32.totalorder %s5898_s26, %s5894_s1 }
  0x23   :  { %p5901_p13 = por %p5900_p12, %p5899_p11 }
  0x25   :  { %p5902_p0 = pnand %p5901_p13, %p5895_p10 }
  0x27   :  { %5905 = shalt.err (!%p5902_p0)
}
  0x28   :  { %56 = dma.hbm_to_vmem [thread:$0]  %s6629_s3, 16, %s54_s23, [#allocation7]  }
  0x29   :  { %s5914_s29 = scalar_lea.vmem %s64_s25, 16  ;;  %s5918_s0 = scalar_lea.vmem %s64_s25, 32 }
  0x2a   :  { %p5915_p1 = scmp.ne.s32.totalorder %s64_s25, %s5914_s29  ;;  %p5919_p2 = scmp.lt.s32.totalorder %s64_s25, %s64_s25 }
  0x2b   :  { %p5920_p3 = scmp.lt.s32.totalorder %s5918_s0, %s5914_s29 }
  0x2d   :  { %p5921_p4 = por %p5920_p3, %p5919_p2 }
  0x2f   :  { %p5922_p5 = pnand %p5921_p4, %p5915_p1 }
  0x31   :  { %5925 = shalt.err (!%p5922_p5)
}
  0x32   :  { %66 = dma.hbm_to_vmem [thread:$0]  %s6630_s4, 16, %s64_s25, [#allocation10]  }
  0x33   :  { %73 = vsyncadd [#allocation10], 1152  ;;  %s6024_s11 = smov [#allocation11]  }
  0x34   :  { %s74_s12 = sshll.u32 %s6024_s11, 4  ;;  %s75_s12 = int_to_ptr.vmem [resolvable:$true] %s74_s12 }
  0x35   :  { %s5934_s13 = scalar_lea.vmem %s75_s12, 384  ;;  %s5938_s14 = scalar_lea.vmem %s75_s12, 1536 }
  0x36   :  { %p5935_p6 = scmp.ne.s32.totalorder %s75_s12, %s5934_s13  ;;  %p5939_p7 = scmp.lt.s32.totalorder %s75_s12, %s75_s12 }
  0x37   :  { %p5940_p8 = scmp.lt.s32.totalorder %s5938_s14, %s5934_s13 }
  0x39   :  { %p5941_p9 = por %p5940_p8, %p5939_p7 }
  0x3b   :  { %p5942_p10 = pnand %p5941_p9, %p5935_p6 }
  0x3d   :  { %5945 = shalt.err (!%p5942_p10)
}
  0x3e   :  { %s6025_s3 = smov 384   ;;  %s6026_s15 = smov 24  }
  0x3f   :  { %80 = dma.hbm_to_vmem [thread:$0]  %s6632_s6, 384, %s75_s12, [#allocation10], %s6025_s3, %s6025_s3, %s6026_s15  }
  0x40   :  { %85 = vsyncadd [#allocation13], 1152  ;;  %s6027_s4 = smov [#allocation12]  }
  0x41   :  { %s86_s17 = sshll.u32 %s6027_s4, 4  ;;  %s87_s17 = int_to_ptr.vmem [resolvable:$true] %s86_s17 }
  0x42   :  { %s5954_s18 = scalar_lea.vmem %s87_s17, 384  ;;  %s5958_s19 = scalar_lea.vmem %s87_s17, 1536 }
  0x43   :  { %p5955_p11 = scmp.ne.s32.totalorder %s87_s17, %s5954_s18  ;;  %p5959_p12 = scmp.lt.s32.totalorder %s87_s17, %s87_s17 }
  0x44   :  { %p5960_p13 = scmp.lt.s32.totalorder %s5958_s19, %s5954_s18 }
  0x46   :  { %p5961_p0 = por %p5960_p13, %p5959_p12 }
  0x48   :  { %p5962_p1 = pnand %p5961_p0, %p5955_p11 }
  0x4a   :  { %5965 = shalt.err (!%p5962_p1)
}
  0x4b   :  { %92 = dma.hbm_to_vmem [thread:$0]  %s6633_s7, 384, %s87_s17, [#allocation13], %s6025_s3, %s6025_s3, %s6026_s15  }
  0x4c   :  { %6006 = dma.done.wait [#allocation4], 49152  }
  0x4d   :  { %6007 = vsyncadd [#allocation4], 4294918144 }
  0x4e   :  { %6008 = dma.done.wait [#allocation7], 80  }
  0x4f   :  { %6009 = vsyncadd [#allocation7], 4294967216 }
  0x50   :  { %6010 = dma.done.wait [#allocation10], 1552  }
  0x51   :  { %6011 = vsyncadd [#allocation10], 4294965744 }
  0x52   :  { %6012 = dma.done.wait [#allocation13], 1536  }
  0x53   :  { %6013 = vsyncadd [#allocation13], 4294965760  ;;  %v4787_v1 = vld [vmem:[#allocation3 + $0xe4] ss:$16 sps:$4 sm:$0xff]   ;;  %v4791_v3 = vld [vmem:[#allocation3 + $0xe0] ss:$16 sps:$4 sm:$0xff]   ;;  %v595_v41 = vlaneseq }
  0x54   :  { %v4789_v2 = vld [vmem:[#allocation3 + $0x2e4] ss:$16 sps:$4 sm:$0xff]   ;;  %2661 = vmatprep.subr.bf16.mxu0 %v4787_v1  ;;  %v4792_v4 = vld [vmem:[#allocation3 + $0x2e0] ss:$16 sps:$4 sm:$0xff]   ;;  %v6028_v39 = vmov 1983009808  }
  0x55   :  { %2702 = vmatprep.subr.bf16.mxu1 %v4789_v2  ;;  %v4793_v5 = vld [vmem:[#allocation3 + $0xc4] ss:$16 sps:$4 sm:$0xff]   ;;  %2662 = vmatpush1.bf16.msra.mxu0 %v4791_v3  ;;  %v4797_v7 = vld [vmem:[#allocation3 + $0xc0] ss:$16 sps:$4 sm:$0xff]   ;;  %v593_v40 = vunpack.c.l.s4 %v6028_v39  ;;  %v6105_v47 = vshrl.u32 %v595_v41, 7  ;;  %vm3447_vm0 = vcmask 523264  }
  0x56   :  { %2703 = vmatpush1.bf16.msra.mxu1 %v4792_v4  ;;  %v4795_v6 = vld [vmem:[#allocation3 + $0x2c4] ss:$16 sps:$4 sm:$0xff]   ;;  %2663 = vmatprep.subr.bf16.mxu0 %v4793_v5  ;;  %v4798_v8 = vld [vmem:[#allocation3 + $0x2c0] ss:$16 sps:$4 sm:$0xff]   ;;  %vm3465_vm1 = vcmask 7168   ;;  %s6029_s4 = smov 1  }
  0x57   :  { %2704 = vmatprep.subr.bf16.mxu1 %v4795_v6  ;;  %v4799_v9 = vld [vmem:[#allocation3 + $0xa4] ss:$16 sps:$4 sm:$0xff]   ;;  %v4803_v11 = vld [vmem:[#allocation3 + $0xa0] ss:$16 sps:$4 sm:$0xff]   ;;  %v594_v46 = vunpack.c.0.s8 %v593_v40  ;;  %vm3471_vm2 = vcmask 15368  }
  0x58   :  { %v4801_v10 = vld [vmem:[#allocation3 + $0x2a4] ss:$16 sps:$4 sm:$0xff]   ;;  %v4804_v12 = vld [vmem:[#allocation3 + $0x2a0] ss:$16 sps:$4 sm:$0xff]  }
  0x59   :  { %2664 = vmatpush1.bf16.msra.mxu0 %v4797_v7  ;;  %v4805_v13 = vld [vmem:[#allocation3 + $0x84] ss:$16 sps:$4 sm:$0xff]   ;;  %v4809_v15 = vld [vmem:[#allocation3 + $0x80] ss:$16 sps:$4 sm:$0xff]   ;;  %v6108_v54 = vsub.s32 %v594_v46, %v6105_v47 }
  0x5a   :  { %2705 = vmatpush1.bf16.msra.mxu1 %v4798_v8  ;;  %2665 = vmatprep.subr.bf16.mxu0 %v4799_v9  ;;  %v4807_v14 = vld [vmem:[#allocation3 + $0x284] ss:$16 sps:$4 sm:$0xff]   ;;  %v4810_v16 = vld [vmem:[#allocation3 + $0x280] ss:$16 sps:$4 sm:$0xff]  }
  0x5b   :  { %2706 = vmatprep.subr.bf16.mxu1 %v4801_v10  ;;  %v4811_v17 = vld [vmem:[#allocation3 + $0x64] ss:$16 sps:$4 sm:$0xff]   ;;  %v4815_v19 = vld [vmem:[#allocation3 + $0x60] ss:$16 sps:$4 sm:$0xff]  }
  0x5c   :  { %v4813_v18 = vld [vmem:[#allocation3 + $0x264] ss:$16 sps:$4 sm:$0xff]   ;;  %v4816_v20 = vld [vmem:[#allocation3 + $0x260] ss:$16 sps:$4 sm:$0xff]  }
  0x5d   :  { %2666 = vmatpush1.bf16.msra.mxu0 %v4803_v11  ;;  %v4817_v21 = vld [vmem:[#allocation3 + $0x44] ss:$16 sps:$4 sm:$0xff]   ;;  %v4821_v23 = vld [vmem:[#allocation3 + $0x40] ss:$16 sps:$4 sm:$0xff]  }
  0x5e   :  { %2707 = vmatpush1.bf16.msra.mxu1 %v4804_v12  ;;  %2667 = vmatprep.subr.bf16.mxu0 %v4805_v13  ;;  %v4819_v22 = vld [vmem:[#allocation3 + $0x244] ss:$16 sps:$4 sm:$0xff]   ;;  %v4822_v24 = vld [vmem:[#allocation3 + $0x240] ss:$16 sps:$4 sm:$0xff]  }
  0x5f   :  { %2708 = vmatprep.subr.bf16.mxu1 %v4807_v14  ;;  %v4823_v25 = vld [vmem:[#allocation3 + $0x24] ss:$16 sps:$4 sm:$0xff]   ;;  %v4827_v27 = vld [vmem:[#allocation3 + $0x20] ss:$16 sps:$4 sm:$0xff]  }
  0x60   :  { %v4825_v26 = vld [vmem:[#allocation3 + $0x224] ss:$16 sps:$4 sm:$0xff]   ;;  %v4828_v28 = vld [vmem:[#allocation3 + $0x220] ss:$16 sps:$4 sm:$0xff]  }
  0x61   :  { %2668 = vmatpush1.bf16.msra.mxu0 %v4809_v15  ;;  %v4829_v29 = vld [vmem:[#allocation3 + $0x4] ss:$16 sps:$4 sm:$0xff]   ;;  %v4833_v31 = vld [vmem:[#allocation3] ss:$16 sps:$4 sm:$0xff]  }
  0x62   :  { %2709 = vmatpush1.bf16.msra.mxu1 %v4810_v16  ;;  %2669 = vmatprep.subr.bf16.mxu0 %v4811_v17  ;;  %v4831_v30 = vld [vmem:[#allocation3 + $0x204] ss:$16 sps:$4 sm:$0xff]   ;;  %v4834_v32 = vld [vmem:[#allocation3 + $0x200] ss:$16 sps:$4 sm:$0xff]  }
  0x63   :  { %2710 = vmatprep.subr.bf16.mxu1 %v4813_v18  ;;  %v4835_v33 = vld [vmem:[#allocation3 + $0x1e4] ss:$16 sps:$4 sm:$0xff]   ;;  %v4839_v35 = vld [vmem:[#allocation3 + $0x1e0] ss:$16 sps:$4 sm:$0xff]  }
  0x64   :  { %v4837_v34 = vld [vmem:[#allocation3 + $0x3e4] ss:$16 sps:$4 sm:$0xff]   ;;  %v4840_v36 = vld [vmem:[#allocation3 + $0x3e0] ss:$16 sps:$4 sm:$0xff]  }
  0x65   :  { %2670 = vmatpush1.bf16.msra.mxu0 %v4815_v19  ;;  %v4841_v37 = vld [vmem:[#allocation3 + $0x1c4] ss:$16 sps:$4 sm:$0xff]   ;;  %v4845_v42 = vld [vmem:[#allocation3 + $0x1c0] ss:$16 sps:$4 sm:$0xff]  }
  0x66   :  { %2711 = vmatpush1.bf16.msra.mxu1 %v4816_v20  ;;  %2671 = vmatprep.subr.bf16.mxu0 %v4817_v21  ;;  %v4843_v38 = vld [vmem:[#allocation3 + $0x3c4] ss:$16 sps:$4 sm:$0xff]   ;;  %v4846_v43 = vld [vmem:[#allocation3 + $0x3c0] ss:$16 sps:$4 sm:$0xff]  }
  0x67   :  { %2712 = vmatprep.subr.bf16.mxu1 %v4819_v22  ;;  %v4847_v44 = vld [vmem:[#allocation3 + $0x1a4] ss:$16 sps:$4 sm:$0xff]   ;;  %v4851_v48 = vld [vmem:[#allocation3 + $0x1a0] ss:$16 sps:$4 sm:$0xff]  }
  0x68   :  { %v4849_v45 = vld [vmem:[#allocation3 + $0x3a4] ss:$16 sps:$4 sm:$0xff]   ;;  %v4852_v49 = vld [vmem:[#allocation3 + $0x3a0] ss:$16 sps:$4 sm:$0xff]  }
  0x69   :  { %2672 = vmatpush1.bf16.msra.mxu0 %v4821_v23  ;;  %v4853_v50 = vld [vmem:[#allocation3 + $0x184] ss:$16 sps:$4 sm:$0xff]   ;;  %v4857_v52 = vld [vmem:[#allocation3 + $0x180] ss:$16 sps:$4 sm:$0xff]  }
  0x6a   :  { %2713 = vmatpush1.bf16.msra.mxu1 %v4822_v24  ;;  %2673 = vmatprep.subr.bf16.mxu0 %v4823_v25  ;;  %v4855_v51 = vld [vmem:[#allocation3 + $0x384] ss:$16 sps:$4 sm:$0xff]   ;;  %v4858_v53 = vld [vmem:[#allocation3 + $0x380] ss:$16 sps:$4 sm:$0xff]  }
  0x6b   :  { %2714 = vmatprep.subr.bf16.mxu1 %v4825_v26  ;;  %v4859_v55 = vld [vmem:[#allocation3 + $0x164] ss:$16 sps:$4 sm:$0xff]   ;;  %v4883_v57 = vld [vmem:[#allocation11] ss:$24 sps:$4 sm:$0xff]   ;;  %v4885_v58 = vld [vmem:[#allocation11 + $0x30] ss:$24 sps:$4 sm:$0xff]  }
  0x6c   :  { %v4861_v56 = vld [vmem:[#allocation3 + $0x364] ss:$16 sps:$4 sm:$0xff]   ;;  %v598_v61 = vrot.slane %v4883_v57, %v6108_v54  ;;  %v612_v62 = vrot.slane %v4885_v58, %v6108_v54  ;;  %v4863_v0 = vld [vmem:[#allocation3 + $0x160] ss:$16 sps:$4 sm:$0xff]  }
  0x6d   :  { %2674 = vmatpush1.bf16.msra.mxu0 %v4827_v27  ;;  %v4887_v59 = vld [vmem:[#allocation11 + $0x4] ss:$24 sps:$4 sm:$0xff]   ;;  %v4888_v60 = vld [vmem:[#allocation11 + $0x34] ss:$24 sps:$4 sm:$0xff]   ;;  %v4864_v1 = vld [vmem:[#allocation3 + $0x360] ss:$16 sps:$4 sm:$0xff]  }
  0x6e   :  { %2715 = vmatpush1.bf16.msra.mxu1 %v4828_v28  ;;  %2675 = vmatprep.subr.bf16.mxu0 %v4829_v29  ;;  %v605_v63 = vrot.slane %v4887_v59, %v6108_v54  ;;  %v619_v2 = vrot.slane %v4888_v60, %v6108_v54  ;;  %v4865_v3 = vld [vmem:[#allocation3 + $0x144] ss:$16 sps:$4 sm:$0xff]   ;;  %v621_v4 = vcombine.high %v598_v61, %v612_v62  ;;  %v4869_v8 = vld [vmem:[#allocation3 + $0x140] ss:$16 sps:$4 sm:$0xff]  }
  0x6f   :  { %2716 = vmatprep.subr.bf16.mxu1 %v4831_v30  ;;  %v4867_v5 = vld [vmem:[#allocation3 + $0x344] ss:$16 sps:$4 sm:$0xff]   ;;  %v4870_v9 = vld [vmem:[#allocation3 + $0x340] ss:$16 sps:$4 sm:$0xff]   ;;  %v620_v19 = vcombine.low %v598_v61, %v612_v62 }
  0x70   :  { %v623_v6 = vcombine.high %v605_v63, %v619_v2  ;;  %v6114_v7 = vpack.c.bf16 %v621_v4, %v621_v4  ;;  %v4871_v11 = vld [vmem:[#allocation3 + $0x124] ss:$16 sps:$4 sm:$0xff]   ;;  %v4875_v13 = vld [vmem:[#allocation3 + $0x120] ss:$16 sps:$4 sm:$0xff]   ;;  %v622_v20 = vcombine.low %v605_v63, %v619_v2 }
  0x71   :  { %2676 = vmatpush1.bf16.msra.mxu0 %v4833_v31  ;;  %v4873_v12 = vld [vmem:[#allocation3 + $0x324] ss:$16 sps:$4 sm:$0xff]   ;;  %v4876_v14 = vld [vmem:[#allocation3 + $0x320] ss:$16 sps:$4 sm:$0xff]   ;;  %v6120_v23 = vpack.c.bf16 %v620_v19, %v620_v19 }
  0x72   :  { %2717 = vmatpush1.bf16.msra.mxu1 %v4834_v32  ;;  %2677 = vmatprep.subr.bf16.mxu0 %v4835_v33  ;;  %v6116_v10 = vpack.c.bf16 %v623_v6, %v623_v6  ;;  %v4877_v15 = vld [vmem:[#allocation3 + $0x104] ss:$16 sps:$4 sm:$0xff]   ;;  %v4881_v17 = vld [vmem:[#allocation3 + $0x100] ss:$16 sps:$4 sm:$0xff]   ;;  %v6122_v24 = vpack.c.bf16 %v622_v20, %v622_v20 }
  0x73   :  { %2718 = vmatprep.subr.bf16.mxu1 %v4837_v34  ;;  %2693 = vmatprep.mubr.bf16.mxu0 %v6114_v7  ;;  %v4879_v16 = vld [vmem:[#allocation3 + $0x304] ss:$16 sps:$4 sm:$0xff]   ;;  %v4882_v18 = vld [vmem:[#allocation3 + $0x300] ss:$16 sps:$4 sm:$0xff]  }
  0x74   :  { %2734 = vmatprep.mubr.bf16.mxu1 %v6116_v10  ;;  %v4891_v21 = vld [vmem:[#allocation3 + $0x4e4] ss:$16 sps:$4 sm:$0xff]   ;;  %v4889_v25 = vld [vmem:[#allocation3 + $0x4e0] ss:$16 sps:$4 sm:$0xff]  }
  0x75   :  { %2678 = vmatpush2.bf16.msra.mxu0 %v4839_v35  ;;  %v4894_v22 = vld [vmem:[#allocation3 + $0x6e4] ss:$16 sps:$4 sm:$0xff]   ;;  %v4892_v26 = vld [vmem:[#allocation3 + $0x6e0] ss:$16 sps:$4 sm:$0xff]  }
  0x76   :  { %2719 = vmatpush2.bf16.msra.mxu1 %v4840_v36  ;;  %2679 = vmatprep.subr.bf16.mxu0 %v4841_v37  ;;  %v4897_v27 = vld [vmem:[#allocation3 + $0x4c4] ss:$16 sps:$4 sm:$0xff]   ;;  %v4895_v29 = vld [vmem:[#allocation3 + $0x4c0] ss:$16 sps:$4 sm:$0xff]  }
  0x77   :  { %2720 = vmatprep.subr.bf16.mxu1 %v4843_v38  ;;  %v4900_v28 = vld [vmem:[#allocation3 + $0x6c4] ss:$16 sps:$4 sm:$0xff]   ;;  %v4898_v30 = vld [vmem:[#allocation3 + $0x6c0] ss:$16 sps:$4 sm:$0xff]  }
  0x78   :  { %v4903_v31 = vld [vmem:[#allocation3 + $0x4a4] ss:$16 sps:$4 sm:$0xff]   ;;  %v4901_v33 = vld [vmem:[#allocation3 + $0x4a0] ss:$16 sps:$4 sm:$0xff]  }
  0x79   :  { %2680 = vmatpush2.bf16.msra.mxu0 %v4845_v42  ;;  %v4906_v32 = vld [vmem:[#allocation3 + $0x6a4] ss:$16 sps:$4 sm:$0xff]   ;;  %v4904_v34 = vld [vmem:[#allocation3 + $0x6a0] ss:$16 sps:$4 sm:$0xff]  }
  0x7a   :  { %2721 = vmatpush2.bf16.msra.mxu1 %v4846_v43  ;;  %2681 = vmatprep.subr.bf16.mxu0 %v4847_v44  ;;  %v4909_v35 = vld [vmem:[#allocation3 + $0x484] ss:$16 sps:$4 sm:$0xff]   ;;  %v4907_v37 = vld [vmem:[#allocation3 + $0x480] ss:$16 sps:$4 sm:$0xff]  }
  0x7b   :  { %2722 = vmatprep.subr.bf16.mxu1 %v4849_v45  ;;  %v4912_v36 = vld [vmem:[#allocation3 + $0x684] ss:$16 sps:$4 sm:$0xff]   ;;  %v4910_v38 = vld [vmem:[#allocation3 + $0x680] ss:$16 sps:$4 sm:$0xff]  }
  0x7c   :  { %v4915_v39 = vld [vmem:[#allocation3 + $0x464] ss:$16 sps:$4 sm:$0xff]   ;;  %v4913_v41 = vld [vmem:[#allocation3 + $0x460] ss:$16 sps:$4 sm:$0xff]  }
  0x7d   :  { %2682 = vmatpush2.bf16.msra.mxu0 %v4851_v48  ;;  %v4918_v40 = vld [vmem:[#allocation3 + $0x664] ss:$16 sps:$4 sm:$0xff]   ;;  %v4916_v42 = vld [vmem:[#allocation3 + $0x660] ss:$16 sps:$4 sm:$0xff]  }
  0x7e   :  { %2723 = vmatpush2.bf16.msra.mxu1 %v4852_v49  ;;  %2683 = vmatprep.subr.bf16.mxu0 %v4853_v50  ;;  %v4921_v43 = vld [vmem:[#allocation3 + $0x444] ss:$16 sps:$4 sm:$0xff]   ;;  %v4919_v45 = vld [vmem:[#allocation3 + $0x440] ss:$16 sps:$4 sm:$0xff]  }
  0x7f   :  { %2724 = vmatprep.subr.bf16.mxu1 %v4855_v51  ;;  %v4924_v44 = vld [vmem:[#allocation3 + $0x644] ss:$16 sps:$4 sm:$0xff]   ;;  %v4922_v46 = vld [vmem:[#allocation3 + $0x640] ss:$16 sps:$4 sm:$0xff]  }
  0x80   :  { %v4927_v48 = vld [vmem:[#allocation3 + $0x424] ss:$16 sps:$4 sm:$0xff]   ;;  %v4925_v50 = vld [vmem:[#allocation3 + $0x420] ss:$16 sps:$4 sm:$0xff]  }
  0x81   :  { %2684 = vmatpush2.bf16.msra.mxu0 %v4857_v52  ;;  %v4930_v49 = vld [vmem:[#allocation3 + $0x624] ss:$16 sps:$4 sm:$0xff]   ;;  %v4928_v51 = vld [vmem:[#allocation3 + $0x620] ss:$16 sps:$4 sm:$0xff]  }
  0x82   :  { %2725 = vmatpush2.bf16.msra.mxu1 %v4858_v53  ;;  %2685 = vmatprep.subr.bf16.mxu0 %v4859_v55  ;;  %v4933_v52 = vld [vmem:[#allocation3 + $0x404] ss:$16 sps:$4 sm:$0xff]   ;;  %v4985_v55 = vld [vmem:[#allocation11 + $0x8] ss:$24 sps:$4 sm:$0xff]  }
  0x83   :  { %2726 = vmatprep.subr.bf16.mxu1 %v4861_v56  ;;  %v4936_v53 = vld [vmem:[#allocation3 + $0x604] ss:$16 sps:$4 sm:$0xff]   ;;  %v4987_v56 = vld [vmem:[#allocation11 + $0x38] ss:$24 sps:$4 sm:$0xff]   ;;  %v6127_v61 = vrot.slane %v4985_v55, %v6108_v54 }
  0x84   :  { %v4989_v57 = vld [vmem:[#allocation11 + $0xc] ss:$24 sps:$4 sm:$0xff]   ;;  %v4990_v58 = vld [vmem:[#allocation11 + $0x3c] ss:$24 sps:$4 sm:$0xff]   ;;  %v4931_v59 = vld [vmem:[#allocation3 + $0x400] ss:$16 sps:$4 sm:$0xff]   ;;  %v6130_v62 = vrot.slane %v4987_v56, %v6108_v54 }
  0x85   :  { %2686 = vmatpush2.bf16.msra.mxu0 %v4863_v0  ;;  %v4934_v60 = vld [vmem:[#allocation3 + $0x600] ss:$16 sps:$4 sm:$0xff]   ;;  %v4939_v63 = vld [vmem:[#allocation3 + $0x5e4] ss:$16 sps:$4 sm:$0xff]   ;;  %v6133_v0 = vrot.slane %v4989_v57, %v6108_v54 }
  0x86   :  { %2727 = vmatpush2.bf16.msra.mxu1 %v4864_v1  ;;  %2687 = vmatprep.subr.bf16.mxu0 %v4865_v3  ;;  %v6136_v1 = vrot.slane %v4990_v58, %v6108_v54  ;;  %v4942_v2 = vld [vmem:[#allocation3 + $0x7e4] ss:$16 sps:$4 sm:$0xff]   ;;  %v657_v3 = vcombine.high %v6127_v61, %v6130_v62  ;;  %v4940_v6 = vld [vmem:[#allocation3 + $0x7e0] ss:$16 sps:$4 sm:$0xff]  }
  0x87   :  { %2728 = vmatprep.subr.bf16.mxu1 %v4867_v5  ;;  %v4937_v5 = vld [vmem:[#allocation3 + $0x5e0] ss:$16 sps:$4 sm:$0xff]   ;;  %v4957_v19 = vld [vmem:[#allocation3 + $0x584] ss:$16 sps:$4 sm:$0xff]  }
  0x88   :  { %v659_v4 = vcombine.high %v6133_v0, %v6136_v1  ;;  %v4960_v20 = vld [vmem:[#allocation3 + $0x784] ss:$16 sps:$4 sm:$0xff]   ;;  %v5003_v57 = vld [vmem:[#allocation3 + $0x8a0] ss:$16 sps:$4 sm:$0xff]  }
  0x89   :  { %2688 = vmatpush2.bf16.msra.mxu0 %v4869_v8  ;;  %v6142_v8 = vpack.c.bf16 %v657_v3, %v657_v3  ;;  %v5005_v55 = vld [vmem:[#allocation3 + $0x8a4] ss:$16 sps:$4 sm:$0xff]   ;;  %v5006_v58 = vld [vmem:[#allocation3 + $0xaa0] ss:$16 sps:$4 sm:$0xff]  }
  0x8a   :  { %2729 = vmatpush2.bf16.msra.mxu1 %v4870_v9  ;;  %2689 = vmatprep.subr.bf16.mxu0 %v4871_v11  ;;  %v4945_v9 = vld [vmem:[#allocation3 + $0x5c4] ss:$16 sps:$4 sm:$0xff]   ;;  %v6144_v11 = vpack.c.bf16 %v659_v4, %v659_v4 }
  0x8b   :  { %2730 = vmatprep.subr.bf16.mxu1 %v4873_v12  ;;  %v4948_v12 = vld [vmem:[#allocation3 + $0x7c4] ss:$16 sps:$4 sm:$0xff]  }
  0x8c   :  { %v5008_v56 = vld [vmem:[#allocation3 + $0xaa4] ss:$16 sps:$4 sm:$0xff]  }
  0x8d   :  { %2690 = vmatpush2.bf16.msra.mxu0 %v4875_v13  ;;  %v4943_v13 = vld [vmem:[#allocation3 + $0x5c0] ss:$16 sps:$4 sm:$0xff]  }
  0x8e   :  { %2731 = vmatpush2.bf16.msra.mxu1 %v4876_v14  ;;  %2691 = vmatprep.subr.bf16.mxu0 %v4877_v15  ;;  %v4946_v14 = vld [vmem:[#allocation3 + $0x7c0] ss:$16 sps:$4 sm:$0xff]   ;;  %v4951_v15 = vld [vmem:[#allocation3 + $0x5a4] ss:$16 sps:$4 sm:$0xff]  }
  0x8f   :  { %2732 = vmatprep.subr.bf16.mxu1 %v4879_v16  ;;  %v4954_v16 = vld [vmem:[#allocation3 + $0x7a4] ss:$16 sps:$4 sm:$0xff]  }
  0x91   :  { %2692 = vmatpush2.bf16.msra.mxu0 %v4881_v17  ;;  %v4949_v17 = vld [vmem:[#allocation3 + $0x5a0] ss:$16 sps:$4 sm:$0xff]  }
  0x92   :  { %2733 = vmatpush2.bf16.msra.mxu1 %v4882_v18  ;;  %2743 = vmatprep.subr.bf16.mxu0 %v4891_v21  ;;  %v4952_v18 = vld [vmem:[#allocation3 + $0x7a0] ss:$16 sps:$4 sm:$0xff]  }
  0x93   :  { %2784 = vmatprep.subr.bf16.mxu1 %v4894_v22  ;;  %v4955_v21 = vld [vmem:[#allocation3 + $0x580] ss:$16 sps:$4 sm:$0xff]  }
  0x94   :  { %2694 = vmatmul.mubr.bf16.vlgmr.msra.gmra.mxu0 %v6120_v23  ;;  %v4958_v22 = vld [vmem:[#allocation3 + $0x780] ss:$16 sps:$4 sm:$0xff]  }
  0x95   :  { %2735 = vmatmul.mubr.bf16.vlgmr.msra.gmra.mxu1 %v6122_v24  ;;  %2744 = vmatpush1.bf16.msra.mxu0 %v4889_v25  ;;  %v4963_v25 = vld [vmem:[#allocation3 + $0x564] ss:$16 sps:$4 sm:$0xff]  }
  0x96   :  { %2785 = vmatpush1.bf16.msra.mxu1 %v4892_v26  ;;  %2745 = vmatprep.subr.bf16.mxu0 %v4897_v27  ;;  %v4966_v26 = vld [vmem:[#allocation3 + $0x764] ss:$16 sps:$4 sm:$0xff]   ;;  %v4961_v27 = vld [vmem:[#allocation3 + $0x560] ss:$16 sps:$4 sm:$0xff]  }
  0x97   :  { %2786 = vmatprep.subr.bf16.mxu1 %v4900_v28  ;;  %2775 = vmatprep.mubr.bf16.mxu0 %v6142_v8  ;;  %v4964_v28 = vld [vmem:[#allocation3 + $0x760] ss:$16 sps:$4 sm:$0xff]  }
  0x98   :  { %2816 = vmatprep.mubr.bf16.mxu1 %v6144_v11 }
  0x99   :  { %2746 = vmatpush1.bf16.msra.mxu0 %v4895_v29  ;;  %v4969_v29 = vld [vmem:[#allocation3 + $0x544] ss:$16 sps:$4 sm:$0xff]  }
  0x9a   :  { %2787 = vmatpush1.bf16.msra.mxu1 %v4898_v30  ;;  %2747 = vmatprep.subr.bf16.mxu0 %v4903_v31  ;;  %v4972_v30 = vld [vmem:[#allocation3 + $0x744] ss:$16 sps:$4 sm:$0xff]   ;;  %v4967_v31 = vld [vmem:[#allocation3 + $0x540] ss:$16 sps:$4 sm:$0xff]  }
  0x9b   :  { %2788 = vmatprep.subr.bf16.mxu1 %v4906_v32  ;;  %v4970_v32 = vld [vmem:[#allocation3 + $0x740] ss:$16 sps:$4 sm:$0xff]  }
  0x9d   :  { %2748 = vmatpush1.bf16.msra.mxu0 %v4901_v33  ;;  %v4975_v33 = vld [vmem:[#allocation3 + $0x524] ss:$16 sps:$4 sm:$0xff]  }
  0x9e   :  { %2789 = vmatpush1.bf16.msra.mxu1 %v4904_v34  ;;  %2749 = vmatprep.subr.bf16.mxu0 %v4909_v35  ;;  %v4978_v34 = vld [vmem:[#allocation3 + $0x724] ss:$16 sps:$4 sm:$0xff]   ;;  %v4973_v35 = vld [vmem:[#allocation3 + $0x520] ss:$16 sps:$4 sm:$0xff]  }
  0x9f   :  { %2790 = vmatprep.subr.bf16.mxu1 %v4912_v36  ;;  %v4976_v36 = vld [vmem:[#allocation3 + $0x720] ss:$16 sps:$4 sm:$0xff]  }
  0xa1   :  { %2750 = vmatpush1.bf16.msra.mxu0 %v4907_v37  ;;  %v4981_v37 = vld [vmem:[#allocation3 + $0x504] ss:$16 sps:$4 sm:$0xff]  }
  0xa2   :  { %2791 = vmatpush1.bf16.msra.mxu1 %v4910_v38  ;;  %2751 = vmatprep.subr.bf16.mxu0 %v4915_v39  ;;  %v4984_v38 = vld [vmem:[#allocation3 + $0x704] ss:$16 sps:$4 sm:$0xff]   ;;  %v4979_v39 = vld [vmem:[#allocation3 + $0x500] ss:$16 sps:$4 sm:$0xff]  }
  0xa3   :  { %2792 = vmatprep.subr.bf16.mxu1 %v4918_v40  ;;  %v4982_v40 = vld [vmem:[#allocation3 + $0x700] ss:$16 sps:$4 sm:$0xff]  }
  0xa5   :  { %2752 = vmatpush1.bf16.msra.mxu0 %v4913_v41  ;;  %v656_v41 = vcombine.low %v6127_v61, %v6130_v62  ;;  %v5091_v61 = vld [vmem:[#allocation11 + $0x14] ss:$24 sps:$4 sm:$0xff]   ;;  %v5092_v62 = vld [vmem:[#allocation11 + $0x44] ss:$24 sps:$4 sm:$0xff]  }
  0xa6   :  { %2793 = vmatpush1.bf16.msra.mxu1 %v4916_v42  ;;  %2753 = vmatprep.subr.bf16.mxu0 %v4921_v43  ;;  %v658_v42 = vcombine.low %v6133_v0, %v6136_v1  ;;  %v4993_v43 = vld [vmem:[#allocation3 + $0x8e4] ss:$16 sps:$4 sm:$0xff]   ;;  %v6165_v3 = vrot.slane %v5091_v61, %v6108_v54  ;;  %v6168_v4 = vrot.slane %v5092_v62, %v6108_v54 }
  0xa7   :  { %2794 = vmatprep.subr.bf16.mxu1 %v4924_v44  ;;  %v4996_v44 = vld [vmem:[#allocation3 + $0xae4] ss:$16 sps:$4 sm:$0xff]  }
  0xa8   :  { %v5014_v1 = vld [vmem:[#allocation3 + $0xa84] ss:$16 sps:$4 sm:$0xff]  }
  0xa9   :  { %2754 = vmatpush1.bf16.msra.mxu0 %v4919_v45  ;;  %v6152_v45 = vpack.c.bf16 %v656_v41, %v656_v41  ;;  %v5053_v41 = vld [vmem:[#allocation3 + $0x9a4] ss:$16 sps:$4 sm:$0xff]  }
  0xaa   :  { %2795 = vmatpush1.bf16.msra.mxu1 %v4922_v46  ;;  %2755 = vmatprep.subr.bf16.mxu0 %v4927_v48  ;;  %v6154_v46 = vpack.c.bf16 %v658_v42, %v658_v42  ;;  %v4991_v48 = vld [vmem:[#allocation3 + $0x8e0] ss:$16 sps:$4 sm:$0xff]   ;;  %v5056_v42 = vld [vmem:[#allocation3 + $0xba4] ss:$16 sps:$4 sm:$0xff]  }
  0xab   :  { %2796 = vmatprep.subr.bf16.mxu1 %v4930_v49  ;;  %v4994_v49 = vld [vmem:[#allocation3 + $0xae0] ss:$16 sps:$4 sm:$0xff]   ;;  %v5077_v61 = vld [vmem:[#allocation3 + $0x924] ss:$16 sps:$4 sm:$0xff]  }
  0xac   :  { %v5080_v62 = vld [vmem:[#allocation3 + $0xb24] ss:$16 sps:$4 sm:$0xff]  }
  0xad   :  { %2756 = vmatpush1.bf16.msra.mxu0 %v4925_v50  ;;  %v4999_v50 = vld [vmem:[#allocation3 + $0x8c4] ss:$16 sps:$4 sm:$0xff]  }
  0xae   :  { %2797 = vmatpush1.bf16.msra.mxu1 %v4928_v51  ;;  %2757 = vmatprep.subr.bf16.mxu0 %v4933_v52  ;;  %v5002_v51 = vld [vmem:[#allocation3 + $0xac4] ss:$16 sps:$4 sm:$0xff]   ;;  %v4997_v52 = vld [vmem:[#allocation3 + $0x8c0] ss:$16 sps:$4 sm:$0xff]  }
  0xaf   :  { %2798 = vmatprep.subr.bf16.mxu1 %v4936_v53  ;;  %v5000_v53 = vld [vmem:[#allocation3 + $0xac0] ss:$16 sps:$4 sm:$0xff]  }
  0xb1   :  { %2758 = vmatpush1.bf16.msra.mxu0 %v4931_v59  ;;  %v5087_v59 = vld [vmem:[#allocation11 + $0x10] ss:$24 sps:$4 sm:$0xff]  }
  0xb2   :  { %2799 = vmatpush1.bf16.msra.mxu1 %v4934_v60  ;;  %2759 = vmatprep.subr.bf16.mxu0 %v4939_v63  ;;  %v5089_v60 = vld [vmem:[#allocation11 + $0x40] ss:$24 sps:$4 sm:$0xff]   ;;  %v5011_v63 = vld [vmem:[#allocation3 + $0x884] ss:$16 sps:$4 sm:$0xff]   ;;  %v6159_v0 = vrot.slane %v5087_v59, %v6108_v54 }
  0xb3   :  { %2800 = vmatprep.subr.bf16.mxu1 %v4942_v2  ;;  %v6162_v2 = vrot.slane %v5089_v60, %v6108_v54  ;;  %v5069_v59 = vld [vmem:[#allocation3 + $0x940] ss:$16 sps:$4 sm:$0xff]  }
  0xb4   :  { %v5072_v60 = vld [vmem:[#allocation3 + $0xb40] ss:$16 sps:$4 sm:$0xff]  }
  0xb5   :  { %2760 = vmatpush2.bf16.msra.mxu0 %v4937_v5  ;;  %v5009_v5 = vld [vmem:[#allocation3 + $0x880] ss:$16 sps:$4 sm:$0xff]  }
  0xb6   :  { %2801 = vmatpush2.bf16.msra.mxu1 %v4940_v6  ;;  %2761 = vmatprep.subr.bf16.mxu0 %v4945_v9  ;;  %v5012_v6 = vld [vmem:[#allocation3 + $0xa80] ss:$16 sps:$4 sm:$0xff]   ;;  %v693_v9 = vcombine.high %v6159_v0, %v6162_v2 }
  0xb7   :  { %2802 = vmatprep.subr.bf16.mxu1 %v4948_v12  ;;  %v695_v12 = vcombine.high %v6165_v3, %v6168_v4 }
  0xb9   :  { %2762 = vmatpush2.bf16.msra.mxu0 %v4943_v13  ;;  %v5017_v13 = vld [vmem:[#allocation3 + $0x864] ss:$16 sps:$4 sm:$0xff]  }
  0xba   :  { %2803 = vmatpush2.bf16.msra.mxu1 %v4946_v14  ;;  %2763 = vmatprep.subr.bf16.mxu0 %v4951_v15  ;;  %v5020_v14 = vld [vmem:[#allocation3 + $0xa64] ss:$16 sps:$4 sm:$0xff]   ;;  %v6174_v15 = vpack.c.bf16 %v693_v9, %v693_v9  ;;  %v5081_v9 = vld [vmem:[#allocation3 + $0x900] ss:$16 sps:$4 sm:$0xff]  }
  0xbb   :  { %2804 = vmatprep.subr.bf16.mxu1 %v4954_v16  ;;  %v6176_v16 = vpack.c.bf16 %v695_v12, %v695_v12  ;;  %v692_v12 = vcombine.low %v6159_v0, %v6162_v2  ;;  %v5101_v0 = vld [vmem:[#allocation3 + $0xcc] ss:$16 sps:$4 sm:$0xff]  }
  0xbc   :  { %v5104_v2 = vld [vmem:[#allocation3 + $0x2cc] ss:$16 sps:$4 sm:$0xff]  }
  0xbd   :  { %2764 = vmatpush2.bf16.msra.mxu0 %v4949_v17  ;;  %v5015_v17 = vld [vmem:[#allocation3 + $0x860] ss:$16 sps:$4 sm:$0xff]  }
  0xbe   :  { %2805 = vmatpush2.bf16.msra.mxu1 %v4952_v18  ;;  %2765 = vmatprep.subr.bf16.mxu0 %v4957_v19  ;;  %v5018_v18 = vld [vmem:[#allocation3 + $0xa60] ss:$16 sps:$4 sm:$0xff]   ;;  %v5023_v19 = vld [vmem:[#allocation3 + $0x844] ss:$16 sps:$4 sm:$0xff]  }
  0xbf   :  { %2806 = vmatprep.subr.bf16.mxu1 %v4960_v20  ;;  %v5026_v20 = vld [vmem:[#allocation3 + $0xa44] ss:$16 sps:$4 sm:$0xff]  }
  0xc1   :  { %2766 = vmatpush2.bf16.msra.mxu0 %v4955_v21  ;;  %v5021_v21 = vld [vmem:[#allocation3 + $0x840] ss:$16 sps:$4 sm:$0xff]  }
  0xc2   :  { %2807 = vmatpush2.bf16.msra.mxu1 %v4958_v22  ;;  %2767 = vmatprep.subr.bf16.mxu0 %v4963_v25  ;;  %v5024_v22 = vld [vmem:[#allocation3 + $0xa40] ss:$16 sps:$4 sm:$0xff]   ;;  %v5029_v25 = vld [vmem:[#allocation3 + $0x824] ss:$16 sps:$4 sm:$0xff]  }
  0xc3   :  { %2808 = vmatprep.subr.bf16.mxu1 %v4966_v26  ;;  %v5032_v26 = vld [vmem:[#allocation3 + $0xa24] ss:$16 sps:$4 sm:$0xff]  }
  0xc5   :  { %2768 = vmatpush2.bf16.msra.mxu0 %v4961_v27  ;;  %v5027_v27 = vld [vmem:[#allocation3 + $0x820] ss:$16 sps:$4 sm:$0xff]  }
  0xc6   :  { %2809 = vmatpush2.bf16.msra.mxu1 %v4964_v28  ;;  %2769 = vmatprep.subr.bf16.mxu0 %v4969_v29  ;;  %v5030_v28 = vld [vmem:[#allocation3 + $0xa20] ss:$16 sps:$4 sm:$0xff]   ;;  %v5035_v29 = vld [vmem:[#allocation3 + $0x804] ss:$16 sps:$4 sm:$0xff]  }
  0xc7   :  { %2810 = vmatprep.subr.bf16.mxu1 %v4972_v30  ;;  %v5038_v30 = vld [vmem:[#allocation3 + $0xa04] ss:$16 sps:$4 sm:$0xff]  }
  0xc9   :  { %2770 = vmatpush2.bf16.msra.mxu0 %v4967_v31  ;;  %v5033_v31 = vld [vmem:[#allocation3 + $0x800] ss:$16 sps:$4 sm:$0xff]  }
  0xca   :  { %2811 = vmatpush2.bf16.msra.mxu1 %v4970_v32  ;;  %2771 = vmatprep.subr.bf16.mxu0 %v4975_v33  ;;  %v5036_v32 = vld [vmem:[#allocation3 + $0xa00] ss:$16 sps:$4 sm:$0xff]   ;;  %v5041_v33 = vld [vmem:[#allocation3 + $0x9e4] ss:$16 sps:$4 sm:$0xff]  }
  0xcb   :  { %2812 = vmatprep.subr.bf16.mxu1 %v4978_v34  ;;  %v5044_v34 = vld [vmem:[#allocation3 + $0xbe4] ss:$16 sps:$4 sm:$0xff]  }
  0xcd   :  { %2772 = vmatpush2.bf16.msra.mxu0 %v4973_v35  ;;  %v5039_v35 = vld [vmem:[#allocation3 + $0x9e0] ss:$16 sps:$4 sm:$0xff]  }
  0xce   :  { %2813 = vmatpush2.bf16.msra.mxu1 %v4976_v36  ;;  %2773 = vmatprep.subr.bf16.mxu0 %v4981_v37  ;;  %v5042_v36 = vld [vmem:[#allocation3 + $0xbe0] ss:$16 sps:$4 sm:$0xff]   ;;  %v5047_v37 = vld [vmem:[#allocation3 + $0x9c4] ss:$16 sps:$4 sm:$0xff]  }
  0xcf   :  { %2814 = vmatprep.subr.bf16.mxu1 %v4984_v38  ;;  %v5050_v38 = vld [vmem:[#allocation3 + $0xbc4] ss:$16 sps:$4 sm:$0xff]  }
  0xd1   :  { %2774 = vmatpush2.bf16.msra.mxu0 %v4979_v39  ;;  %v5045_v39 = vld [vmem:[#allocation3 + $0x9c0] ss:$16 sps:$4 sm:$0xff]  }
  0xd2   :  { %2815 = vmatpush2.bf16.msra.mxu1 %v4982_v40  ;;  %2825 = vmatprep.subr.bf16.mxu0 %v4993_v43  ;;  %v5048_v40 = vld [vmem:[#allocation3 + $0xbc0] ss:$16 sps:$4 sm:$0xff]  }
  0xd3   :  { %2866 = vmatprep.subr.bf16.mxu1 %v4996_v44  ;;  %v5051_v43 = vld [vmem:[#allocation3 + $0x9a0] ss:$16 sps:$4 sm:$0xff]  }
  0xd4   :  { %2776 = vmatmul.mubr.bf16.vlgmr.msra.gmra.mxu0 %v6152_v45  ;;  %v5054_v44 = vld [vmem:[#allocation3 + $0xba0] ss:$16 sps:$4 sm:$0xff]  }
  0xd5   :  { %2817 = vmatmul.mubr.bf16.vlgmr.msra.gmra.mxu1 %v6154_v46  ;;  %2826 = vmatpush1.bf16.msra.mxu0 %v4991_v48  ;;  %v5059_v48 = vld [vmem:[#allocation3 + $0x984] ss:$16 sps:$4 sm:$0xff]  }
  0xd6   :  { %2867 = vmatpush1.bf16.msra.mxu1 %v4994_v49  ;;  %2827 = vmatprep.subr.bf16.mxu0 %v4999_v50  ;;  %v5062_v49 = vld [vmem:[#allocation3 + $0xb84] ss:$16 sps:$4 sm:$0xff]   ;;  %v5057_v50 = vld [vmem:[#allocation3 + $0x980] ss:$16 sps:$4 sm:$0xff]  }
  0xd7   :  { %2868 = vmatprep.subr.bf16.mxu1 %v5002_v51  ;;  %2857 = vmatprep.mubr.bf16.mxu0 %v6174_v15  ;;  %v5060_v51 = vld [vmem:[#allocation3 + $0xb80] ss:$16 sps:$4 sm:$0xff]  }
  0xd8   :  { %2898 = vmatprep.mubr.bf16.mxu1 %v6176_v16 }
  0xd9   :  { %2828 = vmatpush1.bf16.msra.mxu0 %v4997_v52  ;;  %v5065_v52 = vld [vmem:[#allocation3 + $0x964] ss:$16 sps:$4 sm:$0xff]  }
  0xda   :  { %2869 = vmatpush1.bf16.msra.mxu1 %v5000_v53  ;;  %2829 = vmatprep.subr.bf16.mxu0 %v5005_v55  ;;  %v5068_v53 = vld [vmem:[#allocation3 + $0xb64] ss:$16 sps:$4 sm:$0xff]   ;;  %v5063_v55 = vld [vmem:[#allocation3 + $0x960] ss:$16 sps:$4 sm:$0xff]  }
  0xdb   :  { %2870 = vmatprep.subr.bf16.mxu1 %v5008_v56  ;;  %v5066_v56 = vld [vmem:[#allocation3 + $0xb60] ss:$16 sps:$4 sm:$0xff]  }
  0xdd   :  { %2830 = vmatpush1.bf16.msra.mxu0 %v5003_v57  ;;  %v5071_v57 = vld [vmem:[#allocation3 + $0x944] ss:$16 sps:$4 sm:$0xff]  }
  0xde   :  { %2871 = vmatpush1.bf16.msra.mxu1 %v5006_v58  ;;  %2831 = vmatprep.subr.bf16.mxu0 %v5011_v63  ;;  %v5074_v58 = vld [vmem:[#allocation3 + $0xb44] ss:$16 sps:$4 sm:$0xff]   ;;  %v5075_v63 = vld [vmem:[#allocation3 + $0x920] ss:$16 sps:$4 sm:$0xff]  }
  0xdf   :  { %2872 = vmatprep.subr.bf16.mxu1 %v5014_v1  ;;  %v5078_v1 = vld [vmem:[#allocation3 + $0xb20] ss:$16 sps:$4 sm:$0xff]  }
  0xe1   :  { %2832 = vmatpush1.bf16.msra.mxu0 %v5009_v5  ;;  %v5083_v5 = vld [vmem:[#allocation3 + $0x904] ss:$16 sps:$4 sm:$0xff]  }
  0xe2   :  { %2873 = vmatpush1.bf16.msra.mxu1 %v5012_v6  ;;  %2833 = vmatprep.subr.bf16.mxu0 %v5017_v13  ;;  %v5086_v6 = vld [vmem:[#allocation3 + $0xb04] ss:$16 sps:$4 sm:$0xff]   ;;  %v694_v13 = vcombine.low %v6165_v3, %v6168_v4  ;;  %v5099_v3 = vld [vmem:[#allocation3 + $0xc8] ss:$16 sps:$4 sm:$0xff]  }
  0xe3   :  { %2874 = vmatprep.subr.bf16.mxu1 %v5020_v14  ;;  %v5084_v14 = vld [vmem:[#allocation3 + $0xb00] ss:$16 sps:$4 sm:$0xff]   ;;  %v5102_v4 = vld [vmem:[#allocation3 + $0x2c8] ss:$16 sps:$4 sm:$0xff]  }
  0xe5   :  { %2834 = vmatpush1.bf16.msra.mxu0 %v5015_v17  ;;  %v5095_v17 = vld [vmem:[#allocation3 + $0xec] ss:$16 sps:$4 sm:$0xff]  }
  0xe6   :  { %2875 = vmatpush1.bf16.msra.mxu1 %v5018_v18  ;;  %2835 = vmatprep.subr.bf16.mxu0 %v5023_v19  ;;  %v5098_v18 = vld [vmem:[#allocation3 + $0x2ec] ss:$16 sps:$4 sm:$0xff]   ;;  %v6184_v19 = vpack.c.bf16 %v692_v12, %v692_v12 }
  0xe7   :  { %2876 = vmatprep.subr.bf16.mxu1 %v5026_v20  ;;  %v6186_v20 = vpack.c.bf16 %v694_v13, %v694_v13  ;;  %v5170_v12 = vld [vmem:[#allocation3 + $0x36c] ss:$16 sps:$4 sm:$0xff]   ;;  %v5165_v13 = vld [vmem:[#allocation3 + $0x168] ss:$16 sps:$4 sm:$0xff]  }
  0xe9   :  { %2836 = vmatpush1.bf16.msra.mxu0 %v5021_v21  ;;  %v5093_v21 = vld [vmem:[#allocation3 + $0xe8] ss:$16 sps:$4 sm:$0xff]  }
  0xea   :  { %2877 = vmatpush1.bf16.msra.mxu1 %v5024_v22  ;;  %2837 = vmatprep.subr.bf16.mxu0 %v5029_v25  ;;  %v5096_v22 = vld [vmem:[#allocation3 + $0x2e8] ss:$16 sps:$4 sm:$0xff]   ;;  %v5107_v25 = vld [vmem:[#allocation3 + $0xac] ss:$16 sps:$4 sm:$0xff]  }
  0xeb   :  { %2878 = vmatprep.subr.bf16.mxu1 %v5032_v26  ;;  %v5110_v26 = vld [vmem:[#allocation3 + $0x2ac] ss:$16 sps:$4 sm:$0xff]  }
  0xed   :  { %2838 = vmatpush1.bf16.msra.mxu0 %v5027_v27  ;;  %v5105_v27 = vld [vmem:[#allocation3 + $0xa8] ss:$16 sps:$4 sm:$0xff]  }
  0xee   :  { %2879 = vmatpush1.bf16.msra.mxu1 %v5030_v28  ;;  %2839 = vmatprep.subr.bf16.mxu0 %v5035_v29  ;;  %v5108_v28 = vld [vmem:[#allocation3 + $0x2a8] ss:$16 sps:$4 sm:$0xff]   ;;  %v5113_v29 = vld [vmem:[#allocation3 + $0x8c] ss:$16 sps:$4 sm:$0xff]  }
  0xef   :  { %2880 = vmatprep.subr.bf16.mxu1 %v5038_v30  ;;  %v5116_v30 = vld [vmem:[#allocation3 + $0x28c] ss:$16 sps:$4 sm:$0xff]  }
  0xf1   :  { %2840 = vmatpush1.bf16.msra.mxu0 %v5033_v31  ;;  %v5111_v31 = vld [vmem:[#allocation3 + $0x88] ss:$16 sps:$4 sm:$0xff]  }
  0xf2   :  { %2881 = vmatpush1.bf16.msra.mxu1 %v5036_v32  ;;  %2841 = vmatprep.subr.bf16.mxu0 %v5041_v33  ;;  %v5114_v32 = vld [vmem:[#allocation3 + $0x288] ss:$16 sps:$4 sm:$0xff]   ;;  %v5119_v33 = vld [vmem:[#allocation3 + $0x6c] ss:$16 sps:$4 sm:$0xff]  }
  0xf3   :  { %2882 = vmatprep.subr.bf16.mxu1 %v5044_v34  ;;  %v5122_v34 = vld [vmem:[#allocation3 + $0x26c] ss:$16 sps:$4 sm:$0xff]  }
  0xf5   :  { %2842 = vmatpush2.bf16.msra.mxu0 %v5039_v35  ;;  %v5117_v35 = vld [vmem:[#allocation3 + $0x68] ss:$16 sps:$4 sm:$0xff]  }
  0xf6   :  { %2883 = vmatpush2.bf16.msra.mxu1 %v5042_v36  ;;  %2843 = vmatprep.subr.bf16.mxu0 %v5047_v37  ;;  %v5128_v36 = vld [vmem:[#allocation3 + $0x24c] ss:$16 sps:$4 sm:$0xff]   ;;  %v5123_v37 = vld [vmem:[#allocation3 + $0x48] ss:$16 sps:$4 sm:$0xff]  }
  0xf7   :  { %2884 = vmatprep.subr.bf16.mxu1 %v5050_v38  ;;  %v5126_v38 = vld [vmem:[#allocation3 + $0x248] ss:$16 sps:$4 sm:$0xff]  }
  0xf9   :  { %2844 = vmatpush2.bf16.msra.mxu0 %v5045_v39  ;;  %v5131_v39 = vld [vmem:[#allocation3 + $0x2c] ss:$16 sps:$4 sm:$0xff]  }
  0xfa   :  { %2885 = vmatpush2.bf16.msra.mxu1 %v5048_v40  ;;  %2845 = vmatprep.subr.bf16.mxu0 %v5053_v41  ;;  %v5134_v40 = vld [vmem:[#allocation3 + $0x22c] ss:$16 sps:$4 sm:$0xff]   ;;  %v5129_v41 = vld [vmem:[#allocation3 + $0x28] ss:$16 sps:$4 sm:$0xff]  }
  0xfb   :  { %2886 = vmatprep.subr.bf16.mxu1 %v5056_v42  ;;  %v5132_v42 = vld [vmem:[#allocation3 + $0x228] ss:$16 sps:$4 sm:$0xff]  }
  0xfd   :  { %2846 = vmatpush2.bf16.msra.mxu0 %v5051_v43  ;;  %v5137_v43 = vld [vmem:[#allocation3 + $0xc] ss:$16 sps:$4 sm:$0xff]  }
  0xfe   :  { %2887 = vmatpush2.bf16.msra.mxu1 %v5054_v44  ;;  %2847 = vmatprep.subr.bf16.mxu0 %v5059_v48  ;;  %v5140_v44 = vld [vmem:[#allocation3 + $0x20c] ss:$16 sps:$4 sm:$0xff]   ;;  %v5135_v48 = vld [vmem:[#allocation3 + $0x8] ss:$16 sps:$4 sm:$0xff]  }
  0xff   :  { %2888 = vmatprep.subr.bf16.mxu1 %v5062_v49  ;;  %v5138_v49 = vld [vmem:[#allocation3 + $0x208] ss:$16 sps:$4 sm:$0xff]  }
 0x101   :  { %2848 = vmatpush2.bf16.msra.mxu0 %v5057_v50  ;;  %v5143_v50 = vld [vmem:[#allocation3 + $0x1ec] ss:$16 sps:$4 sm:$0xff]  }
 0x102   :  { %2889 = vmatpush2.bf16.msra.mxu1 %v5060_v51  ;;  %2849 = vmatprep.subr.bf16.mxu0 %v5065_v52  ;;  %v5146_v51 = vld [vmem:[#allocation3 + $0x3ec] ss:$16 sps:$4 sm:$0xff]   ;;  %v5141_v52 = vld [vmem:[#allocation3 + $0x1e8] ss:$16 sps:$4 sm:$0xff]  }
 0x103   :  { %2890 = vmatprep.subr.bf16.mxu1 %v5068_v53  ;;  %v5144_v53 = vld [vmem:[#allocation3 + $0x3e8] ss:$16 sps:$4 sm:$0xff]  }
 0x105   :  { %2850 = vmatpush2.bf16.msra.mxu0 %v5063_v55  ;;  %v5149_v55 = vld [vmem:[#allocation3 + $0x1cc] ss:$16 sps:$4 sm:$0xff]  }
 0x106   :  { %2891 = vmatpush2.bf16.msra.mxu1 %v5066_v56  ;;  %2851 = vmatprep.subr.bf16.mxu0 %v5071_v57  ;;  %v5152_v56 = vld [vmem:[#allocation3 + $0x3cc] ss:$16 sps:$4 sm:$0xff]   ;;  %v5147_v57 = vld [vmem:[#allocation3 + $0x1c8] ss:$16 sps:$4 sm:$0xff]  }
 0x107   :  { %2892 = vmatprep.subr.bf16.mxu1 %v5074_v58  ;;  %v5150_v58 = vld [vmem:[#allocation3 + $0x3c8] ss:$16 sps:$4 sm:$0xff]  }
 0x109   :  { %2852 = vmatpush2.bf16.msra.mxu0 %v5069_v59  ;;  %v5155_v59 = vld [vmem:[#allocation3 + $0x1ac] ss:$16 sps:$4 sm:$0xff]  }
 0x10a   :  { %2893 = vmatpush2.bf16.msra.mxu1 %v5072_v60  ;;  %2853 = vmatprep.subr.bf16.mxu0 %v5077_v61  ;;  %v5158_v60 = vld [vmem:[#allocation3 + $0x3ac] ss:$16 sps:$4 sm:$0xff]   ;;  %v5153_v61 = vld [vmem:[#allocation3 + $0x1a8] ss:$16 sps:$4 sm:$0xff]  }
 0x10b   :  { %2894 = vmatprep.subr.bf16.mxu1 %v5080_v62  ;;  %v5156_v62 = vld [vmem:[#allocation3 + $0x3a8] ss:$16 sps:$4 sm:$0xff]  }
 0x10d   :  { %2854 = vmatpush2.bf16.msra.mxu0 %v5075_v63  ;;  %v5161_v63 = vld [vmem:[#allocation3 + $0x18c] ss:$16 sps:$4 sm:$0xff]  }
 0x10e   :  { %2895 = vmatpush2.bf16.msra.mxu1 %v5078_v1  ;;  %2855 = vmatprep.subr.bf16.mxu0 %v5083_v5  ;;  %v5164_v1 = vld [vmem:[#allocation3 + $0x38c] ss:$16 sps:$4 sm:$0xff]   ;;  %v5159_v5 = vld [vmem:[#allocation3 + $0x188] ss:$16 sps:$4 sm:$0xff]  }
 0x10f   :  { %2896 = vmatprep.subr.bf16.mxu1 %v5086_v6  ;;  %v5162_v6 = vld [vmem:[#allocation3 + $0x388] ss:$16 sps:$4 sm:$0xff]  }
 0x111   :  { %2856 = vmatpush2.bf16.msra.mxu0 %v5081_v9  ;;  %v5167_v9 = vld [vmem:[#allocation3 + $0x16c] ss:$16 sps:$4 sm:$0xff]  }
 0x112   :  { %2897 = vmatpush2.bf16.msra.mxu1 %v5084_v14  ;;  %2907 = vmatprep.subr.bf16.mxu0 %v5095_v17  ;;  %v5168_v14 = vld [vmem:[#allocation3 + $0x368] ss:$16 sps:$4 sm:$0xff]   ;;  %v5173_v17 = vld [vmem:[#allocation3 + $0x14c] ss:$16 sps:$4 sm:$0xff]  }
 0x113   :  { %2948 = vmatprep.subr.bf16.mxu1 %v5098_v18  ;;  %v5176_v18 = vld [vmem:[#allocation3 + $0x34c] ss:$16 sps:$4 sm:$0xff]  }
 0x114   :  { %2858 = vmatmul.mubr.bf16.vlgmr.msra.gmra.mxu0 %v6184_v19 }
 0x115   :  { %2899 = vmatmul.mubr.bf16.vlgmr.msra.gmra.mxu1 %v6186_v20  ;;  %2908 = vmatpush1.bf16.msra.mxu0 %v5093_v21  ;;  %v5171_v21 = vld [vmem:[#allocation3 + $0x148] ss:$16 sps:$4 sm:$0xff]  }
 0x116   :  { %2949 = vmatpush1.bf16.msra.mxu1 %v5096_v22  ;;  %2909 = vmatprep.subr.bf16.mxu0 %v5101_v0  ;;  %v5174_v22 = vld [vmem:[#allocation3 + $0x348] ss:$16 sps:$4 sm:$0xff]   ;;  %v5179_v0 = vld [vmem:[#allocation3 + $0x12c] ss:$16 sps:$4 sm:$0xff]  }
 0x117   :  { %2950 = vmatprep.subr.bf16.mxu1 %v5104_v2  ;;  %2939 = vmatprep.mubr.bf16.mxu0 %v6114_v7  ;;  %v5120_v7 = vld [vmem:[#allocation3 + $0x268] ss:$16 sps:$4 sm:$0xff]   ;;  %v5182_v2 = vld [vmem:[#allocation3 + $0x32c] ss:$16 sps:$4 sm:$0xff]  }
 0x118   :  { %2980 = vmatprep.mubr.bf16.mxu1 %v6116_v10  ;;  %v5125_v10 = vld [vmem:[#allocation3 + $0x4c] ss:$16 sps:$4 sm:$0xff]  }
 0x119   :  { %2910 = vmatpush1.bf16.msra.mxu0 %v5099_v3  ;;  %v5177_v3 = vld [vmem:[#allocation3 + $0x128] ss:$16 sps:$4 sm:$0xff]  }
 0x11a   :  { %2951 = vmatpush1.bf16.msra.mxu1 %v5102_v4  ;;  %2911 = vmatprep.subr.bf16.mxu0 %v5107_v25  ;;  %v5180_v4 = vld [vmem:[#allocation3 + $0x328] ss:$16 sps:$4 sm:$0xff]   ;;  %v5185_v25 = vld [vmem:[#allocation3 + $0x10c] ss:$16 sps:$4 sm:$0xff]  }
 0x11b   :  { %2952 = vmatprep.subr.bf16.mxu1 %v5110_v26  ;;  %v5188_v26 = vld [vmem:[#allocation3 + $0x30c] ss:$16 sps:$4 sm:$0xff]  }
 0x11d   :  { %2912 = vmatpush1.bf16.msra.mxu0 %v5105_v27  ;;  %v5183_v27 = vld [vmem:[#allocation3 + $0x108] ss:$16 sps:$4 sm:$0xff]  }
 0x11e   :  { %2953 = vmatpush1.bf16.msra.mxu1 %v5108_v28  ;;  %2913 = vmatprep.subr.bf16.mxu0 %v5113_v29  ;;  %v5186_v28 = vld [vmem:[#allocation3 + $0x308] ss:$16 sps:$4 sm:$0xff]   ;;  %v6192_v29 = vld [vmem:[#allocation6] sm:$0xf] }
 0x11f   :  { %2954 = vmatprep.subr.bf16.mxu1 %v5116_v30  ;;  %v723_v30 = vsub.s32 0, %v6105_v47 }
 0x121   :  { %2914 = vmatpush1.bf16.msra.mxu0 %v5111_v31  ;;  %v5191_v31 = vld [vmem:[#allocation3 + $0x4ec] ss:$16 sps:$4 sm:$0xff]  }
 0x122   :  { %2955 = vmatpush1.bf16.msra.mxu1 %v5114_v32  ;;  %2915 = vmatprep.subr.bf16.mxu0 %v5119_v33  ;;  %v5194_v32 = vld [vmem:[#allocation3 + $0x6ec] ss:$16 sps:$4 sm:$0xff]   ;;  %v727_v33 = vsub.s32 1, %v6105_v47 }
 0x123   :  { %2956 = vmatprep.subr.bf16.mxu1 %v5122_v34  ;;  %v5189_v34 = vld [vmem:[#allocation3 + $0x4e8] ss:$16 sps:$4 sm:$0xff]  }
 0x125   :  { %2916 = vmatpush1.bf16.msra.mxu0 %v5117_v35  ;;  %v6197_v35 = vrot.slane %v6192_v29, %v723_v30  ;;  %v5246_v30 = vld [vmem:[#allocation3 + $0x7c8] ss:$16 sps:$4 sm:$0xff]  }
 0x126   :  { %2957 = vmatpush1.bf16.msra.mxu1 %v5120_v7  ;;  %2917 = vmatprep.subr.bf16.mxu0 %v5125_v10  ;;  %v5192_v7 = vld [vmem:[#allocation3 + $0x6e8] ss:$16 sps:$4 sm:$0xff]   ;;  %v5197_v10 = vld [vmem:[#allocation3 + $0x4cc] ss:$16 sps:$4 sm:$0xff]  }
 0x127   :  { %2958 = vmatprep.subr.bf16.mxu1 %v5128_v36  ;;  %v5200_v36 = vld [vmem:[#allocation3 + $0x6cc] ss:$16 sps:$4 sm:$0xff]  }
 0x129   :  { %2918 = vmatpush1.bf16.msra.mxu0 %v5123_v37  ;;  %v6200_v37 = vrot.slane %v6192_v29, %v727_v33  ;;  %v5249_v33 = vld [vmem:[#allocation3 + $0x5a8] ss:$16 sps:$4 sm:$0xff]  }
 0x12a   :  { %2959 = vmatpush1.bf16.msra.mxu1 %v5126_v38  ;;  %2919 = vmatprep.subr.bf16.mxu0 %v5131_v39 }
 0x12b   :  { %2960 = vmatprep.subr.bf16.mxu1 %v5134_v40  ;;  %v5195_v40 = vld [vmem:[#allocation3 + $0x4c8] ss:$16 sps:$4 sm:$0xff]  }
 0x12d   :  { %2920 = vmatpush1.bf16.msra.mxu0 %v5129_v41 }
 0x12e   :  { %2961 = vmatpush1.bf16.msra.mxu1 %v5132_v42  ;;  %2921 = vmatprep.subr.bf16.mxu0 %v5137_v43  ;;  %v5198_v42 = vld [vmem:[#allocation3 + $0x6c8] ss:$16 sps:$4 sm:$0xff]  }
 0x12f   :  { %2962 = vmatprep.subr.bf16.mxu1 %v5140_v44 }
 0x131   :  { %2922 = vmatpush1.bf16.msra.mxu0 %v5135_v48  ;;  %v5203_v48 = vld [vmem:[#allocation3 + $0x4ac] ss:$16 sps:$4 sm:$0xff]  }
 0x132   :  { %2963 = vmatpush1.bf16.msra.mxu1 %v5138_v49  ;;  %2923 = vmatprep.subr.bf16.mxu0 %v5143_v50  ;;  %v5206_v49 = vld [vmem:[#allocation3 + $0x6ac] ss:$16 sps:$4 sm:$0xff]  }
 0x133   :  { %2964 = vmatprep.subr.bf16.mxu1 %v5146_v51 }
 0x135   :  { %2924 = vmatpush2.bf16.msra.mxu0 %v5141_v52  ;;  %v5201_v52 = vld [vmem:[#allocation3 + $0x4a8] ss:$16 sps:$4 sm:$0xff]  }
 0x136   :  { %2965 = vmatpush2.bf16.msra.mxu1 %v5144_v53  ;;  %2925 = vmatprep.subr.bf16.mxu0 %v5149_v55  ;;  %v5204_v53 = vld [vmem:[#allocation3 + $0x6a8] ss:$16 sps:$4 sm:$0xff]  }
 0x137   :  { %2966 = vmatprep.subr.bf16.mxu1 %v5152_v56  ;;  %v5209_v56 = vld [vmem:[#allocation3 + $0x48c] ss:$16 sps:$4 sm:$0xff]  }
 0x139   :  { %2926 = vmatpush2.bf16.msra.mxu0 %v5147_v57 }
 0x13a   :  { %2967 = vmatpush2.bf16.msra.mxu1 %v5150_v58  ;;  %2927 = vmatprep.subr.bf16.mxu0 %v5155_v59  ;;  %v5212_v59 = vld [vmem:[#allocation3 + $0x68c] ss:$16 sps:$4 sm:$0xff]  }
 0x13b   :  { %2968 = vmatprep.subr.bf16.mxu1 %v5158_v60  ;;  %v5207_v60 = vld [vmem:[#allocation3 + $0x488] ss:$16 sps:$4 sm:$0xff]  }
 0x13d   :  { %2928 = vmatpush2.bf16.msra.mxu0 %v5153_v61  ;;  %v5210_v61 = vld [vmem:[#allocation3 + $0x688] ss:$16 sps:$4 sm:$0xff]  }
 0x13e   :  { %2969 = vmatpush2.bf16.msra.mxu1 %v5156_v62  ;;  %2929 = vmatprep.subr.bf16.mxu0 %v5161_v63  ;;  %v5213_v62 = vld [vmem:[#allocation3 + $0x468] ss:$16 sps:$4 sm:$0xff]  }
 0x13f   :  { %2970 = vmatprep.subr.bf16.mxu1 %v5164_v1  ;;  %v5216_v63 = vld [vmem:[#allocation3 + $0x668] ss:$16 sps:$4 sm:$0xff]   ;;  %v5221_v1 = vld [vmem:[#allocation3 + $0x44c] ss:$16 sps:$4 sm:$0xff]  }
 0x141   :  { %2930 = vmatpush2.bf16.msra.mxu0 %v5159_v5  ;;  %v5224_v5 = vld [vmem:[#allocation3 + $0x64c] ss:$16 sps:$4 sm:$0xff]  }
 0x142   :  { %2971 = vmatpush2.bf16.msra.mxu1 %v5162_v6  ;;  %2931 = vmatprep.subr.bf16.mxu0 %v5167_v9  ;;  %v5219_v6 = vld [vmem:[#allocation3 + $0x448] ss:$16 sps:$4 sm:$0xff]  }
 0x143   :  { %2972 = vmatprep.subr.bf16.mxu1 %v5170_v12  ;;  %v5222_v9 = vld [vmem:[#allocation3 + $0x648] ss:$16 sps:$4 sm:$0xff]   ;;  %v5227_v12 = vld [vmem:[#allocation3 + $0x42c] ss:$16 sps:$4 sm:$0xff]  }
 0x145   :  { %2932 = vmatpush2.bf16.msra.mxu0 %v5165_v13  ;;  %v5230_v13 = vld [vmem:[#allocation3 + $0x62c] ss:$16 sps:$4 sm:$0xff]  }
 0x146   :  { %2973 = vmatpush2.bf16.msra.mxu1 %v5168_v14  ;;  %2933 = vmatprep.subr.bf16.mxu0 %v5173_v17  ;;  %v5225_v14 = vld [vmem:[#allocation3 + $0x428] ss:$16 sps:$4 sm:$0xff]  }
 0x147   :  { %2974 = vmatprep.subr.bf16.mxu1 %v5176_v18  ;;  %v5228_v17 = vld [vmem:[#allocation3 + $0x628] ss:$16 sps:$4 sm:$0xff]   ;;  %v5233_v18 = vld [vmem:[#allocation3 + $0x40c] ss:$16 sps:$4 sm:$0xff]  }
 0x149   :  { %2934 = vmatpush2.bf16.msra.mxu0 %v5171_v21  ;;  %v5236_v21 = vld [vmem:[#allocation3 + $0x60c] ss:$16 sps:$4 sm:$0xff]  }
 0x14a   :  { %2975 = vmatpush2.bf16.msra.mxu1 %v5174_v22  ;;  %2935 = vmatprep.subr.bf16.mxu0 %v5179_v0  ;;  %v5231_v22 = vld [vmem:[#allocation3 + $0x408] ss:$16 sps:$4 sm:$0xff]  }
 0x14b   :  { %2976 = vmatprep.subr.bf16.mxu1 %v5182_v2  ;;  %v5234_v0 = vld [vmem:[#allocation3 + $0x608] ss:$16 sps:$4 sm:$0xff]   ;;  %v5239_v2 = vld [vmem:[#allocation3 + $0x5ec] ss:$16 sps:$4 sm:$0xff]  }
 0x14d   :  { %2936 = vmatpush2.bf16.msra.mxu0 %v5177_v3  ;;  %v5242_v3 = vld [vmem:[#allocation3 + $0x7ec] ss:$16 sps:$4 sm:$0xff]  }
 0x14e   :  { %2977 = vmatpush2.bf16.msra.mxu1 %v5180_v4  ;;  %2937 = vmatprep.subr.bf16.mxu0 %v5185_v25  ;;  %v5237_v4 = vld [vmem:[#allocation3 + $0x5e8] ss:$16 sps:$4 sm:$0xff]  }
 0x14f   :  { %2978 = vmatprep.subr.bf16.mxu1 %v5188_v26  ;;  %v5240_v25 = vld [vmem:[#allocation3 + $0x7e8] ss:$16 sps:$4 sm:$0xff]   ;;  %v5245_v26 = vld [vmem:[#allocation3 + $0x5cc] ss:$16 sps:$4 sm:$0xff]  }
 0x151   :  { %2938 = vmatpush2.bf16.msra.mxu0 %v5183_v27  ;;  %v5248_v27 = vld [vmem:[#allocation3 + $0x7cc] ss:$16 sps:$4 sm:$0xff]  }
 0x152   :  { %2979 = vmatpush2.bf16.msra.mxu1 %v5186_v28  ;;  %2989 = vmatprep.subr.bf16.mxu0 %v5191_v31  ;;  %v5243_v28 = vld [vmem:[#allocation3 + $0x5c8] ss:$16 sps:$4 sm:$0xff]   ;;  %v5251_v31 = vld [vmem:[#allocation3 + $0x5ac] ss:$16 sps:$4 sm:$0xff]  }
 0x153   :  { %3030 = vmatprep.subr.bf16.mxu1 %v5194_v32  ;;  %v5254_v32 = vld [vmem:[#allocation3 + $0x7ac] ss:$16 sps:$4 sm:$0xff]  }
 0x154   :  { %v2695_v38 = vpop.f32.mrf.mxu0  ;;  %2940 = vmatmul.mubr.bf16.vlgmr.msra.gmra.mxu0 %v6120_v23 }
 0x155   :  { %v2736_v39 = vpop.f32.mrf.mxu1  ;;  %2981 = vmatmul.mubr.bf16.vlgmr.msra.gmra.mxu1 %v6122_v24  ;;  %v2696_v41 = vadd.f32 %v2695_v38, %v6197_v35  ;;  %2990 = vmatpush1.bf16.msra.mxu0 %v5189_v34  ;;  %v5252_v34 = vld [vmem:[#allocation3 + $0x7a8] ss:$16 sps:$4 sm:$0xff]  }
 0x156   :  { %3031 = vmatpush1.bf16.msra.mxu1 %v5192_v7  ;;  %v2697_v43 = vpop.f32.mrf.mxu0  ;;  %2991 = vmatprep.subr.bf16.mxu0 %v5197_v10  ;;  %v5257_v7 = vld [vmem:[#allocation3 + $0x58c] ss:$16 sps:$4 sm:$0xff]   ;;  %v5258_v38 = vld [vmem:[#allocation3 + $0x788] ss:$16 sps:$4 sm:$0xff]  }
 0x157   :  { %v2738_v44 = vpop.f32.mrf.mxu1  ;;  %3032 = vmatprep.subr.bf16.mxu1 %v5200_v36  ;;  %v6205_v50 = vadd.f32 %v2736_v39, %v2696_v41  ;;  %v2698_v51 = vadd.f32 %v2697_v43, %v6200_v37  ;;  %3021 = vmatprep.mubr.bf16.mxu0 %v6142_v8  ;;  %v5215_v8 = vld [vmem:[#allocation3 + $0x46c] ss:$16 sps:$4 sm:$0xff]   ;;  %v5255_v36 = vld [vmem:[#allocation3 + $0x588] ss:$16 sps:$4 sm:$0xff]  }
 0x158   :  { %3062 = vmatprep.mubr.bf16.mxu1 %v6144_v11  ;;  %v2699_v23 = vpop.f32.mrf.mxu0  ;;  %v5218_v11 = vld [vmem:[#allocation3 + $0x66c] ss:$16 sps:$4 sm:$0xff]   ;;  %v5261_v41 = vld [vmem:[#allocation3 + $0x568] ss:$16 sps:$4 sm:$0xff]  }
 0x159   :  { %v2740_v24 = vpop.f32.mrf.mxu1  ;;  %v6210_v55 = vadd.f32 %v2738_v44, %v2698_v51  ;;  %2992 = vmatpush1.bf16.msra.mxu0 %v5195_v40  ;;  %v5260_v10 = vld [vmem:[#allocation3 + $0x78c] ss:$16 sps:$4 sm:$0xff]   ;;  %v5273_v23 = vld [vmem:[#allocation3 + $0x528] ss:$16 sps:$4 sm:$0xff]  }
 0x15a   :  { %3033 = vmatpush1.bf16.msra.mxu1 %v5198_v42  ;;  %v2700_v57 = vpop.f32.mrf.mxu0  ;;  %2993 = vmatprep.subr.bf16.mxu0 %v5203_v48  ;;  %v5263_v39 = vld [vmem:[#allocation3 + $0x56c] ss:$16 sps:$4 sm:$0xff]   ;;  %v5264_v42 = vld [vmem:[#allocation3 + $0x768] ss:$16 sps:$4 sm:$0xff]  }
 0x15b   :  { %v2741_v58 = vpop.f32.mrf.mxu1  ;;  %3034 = vmatprep.subr.bf16.mxu1 %v5206_v49  ;;  %v5266_v40 = vld [vmem:[#allocation3 + $0x76c] ss:$16 sps:$4 sm:$0xff]   ;;  %v5267_v48 = vld [vmem:[#allocation3 + $0x548] ss:$16 sps:$4 sm:$0xff]  }
 0x15c   :  { %v5269_v43 = vld [vmem:[#allocation3 + $0x54c] ss:$16 sps:$4 sm:$0xff]   ;;  %v5270_v49 = vld [vmem:[#allocation3 + $0x748] ss:$16 sps:$4 sm:$0xff]  }
 0x15d   :  { %2994 = vmatpush1.bf16.msra.mxu0 %v5201_v52  ;;  %v5272_v44 = vld [vmem:[#allocation3 + $0x74c] ss:$16 sps:$4 sm:$0xff]   ;;  %v5276_v24 = vld [vmem:[#allocation3 + $0x728] ss:$16 sps:$4 sm:$0xff]  }
 0x15e   :  { %3035 = vmatpush1.bf16.msra.mxu1 %v5204_v53  ;;  %2995 = vmatprep.subr.bf16.mxu0 %v5209_v56  ;;  %v5275_v51 = vld [vmem:[#allocation3 + $0x52c] ss:$16 sps:$4 sm:$0xff]   ;;  %v5279_v57 = vld [vmem:[#allocation3 + $0x508] ss:$16 sps:$4 sm:$0xff]  }
 0x15f   :  { %3036 = vmatprep.subr.bf16.mxu1 %v5212_v59  ;;  %v5278_v52 = vld [vmem:[#allocation3 + $0x72c] ss:$16 sps:$4 sm:$0xff]   ;;  %v5282_v58 = vld [vmem:[#allocation3 + $0x708] ss:$16 sps:$4 sm:$0xff]  }
 0x160   :  { %v5281_v53 = vld [vmem:[#allocation3 + $0x50c] ss:$16 sps:$4 sm:$0xff]  }
 0x161   :  { %2996 = vmatpush1.bf16.msra.mxu0 %v5207_v60  ;;  %v5284_v56 = vld [vmem:[#allocation3 + $0x70c] ss:$16 sps:$4 sm:$0xff]  }
 0x162   :  { %3037 = vmatpush1.bf16.msra.mxu1 %v5210_v61  ;;  %2997 = vmatprep.subr.bf16.mxu0 %v5215_v8  ;;  %v5287_v59 = vld [vmem:[#allocation3 + $0x8ec] ss:$16 sps:$4 sm:$0xff]   ;;  %v5285_v61 = vld [vmem:[#allocation3 + $0x8e8] ss:$16 sps:$4 sm:$0xff]  }
 0x163   :  { %3038 = vmatprep.subr.bf16.mxu1 %v5218_v11  ;;  %v5290_v60 = vld [vmem:[#allocation3 + $0xaec] ss:$16 sps:$4 sm:$0xff]   ;;  %v5288_v8 = vld [vmem:[#allocation3 + $0xae8] ss:$16 sps:$4 sm:$0xff]  }
 0x164   :  { %v5293_v11 = vld [vmem:[#allocation3 + $0x8cc] ss:$16 sps:$4 sm:$0xff]  }
 0x165   :  { %2998 = vmatpush1.bf16.msra.mxu0 %v5213_v62  ;;  %v5296_v62 = vld [vmem:[#allocation3 + $0xacc] ss:$16 sps:$4 sm:$0xff]  }
 0x166   :  { %3039 = vmatpush1.bf16.msra.mxu1 %v5216_v63  ;;  %2999 = vmatprep.subr.bf16.mxu0 %v5221_v1 }
 0x167   :  { %3040 = vmatprep.subr.bf16.mxu1 %v5224_v5 }
 0x169   :  { %3000 = vmatpush1.bf16.msra.mxu0 %v5219_v6  ;;  %v5291_v6 = vld [vmem:[#allocation3 + $0x8c8] ss:$16 sps:$4 sm:$0xff]  }
 0x16a   :  { %3041 = vmatpush1.bf16.msra.mxu1 %v5222_v9  ;;  %3001 = vmatprep.subr.bf16.mxu0 %v5227_v12  ;;  %v5294_v9 = vld [vmem:[#allocation3 + $0xac8] ss:$16 sps:$4 sm:$0xff]  }
 0x16b   :  { %3042 = vmatprep.subr.bf16.mxu1 %v5230_v13 }
 0x16d   :  { %3002 = vmatpush1.bf16.msra.mxu0 %v5225_v14  ;;  %v5299_v14 = vld [vmem:[#allocation3 + $0x8ac] ss:$16 sps:$4 sm:$0xff]  }
 0x16e   :  { %3043 = vmatpush1.bf16.msra.mxu1 %v5228_v17  ;;  %3003 = vmatprep.subr.bf16.mxu0 %v5233_v18  ;;  %v5302_v17 = vld [vmem:[#allocation3 + $0xaac] ss:$16 sps:$4 sm:$0xff]  }
 0x16f   :  { %3044 = vmatprep.subr.bf16.mxu1 %v5236_v21  ;;  %v5300_v21 = vld [vmem:[#allocation3 + $0xaa8] ss:$16 sps:$4 sm:$0xff]  }
 0x171   :  { %3004 = vmatpush1.bf16.msra.mxu0 %v5231_v22 }
 0x172   :  { %3045 = vmatpush1.bf16.msra.mxu1 %v5234_v0  ;;  %3005 = vmatprep.subr.bf16.mxu0 %v5239_v2  ;;  %v5305_v2 = vld [vmem:[#allocation3 + $0x88c] ss:$16 sps:$4 sm:$0xff]  }
 0x173   :  { %3046 = vmatprep.subr.bf16.mxu1 %v5242_v3  ;;  %v5308_v3 = vld [vmem:[#allocation3 + $0xa8c] ss:$16 sps:$4 sm:$0xff]  }
 0x175   :  { %3006 = vmatpush2.bf16.msra.mxu0 %v5237_v4  ;;  %v5303_v4 = vld [vmem:[#allocation3 + $0x888] ss:$16 sps:$4 sm:$0xff]  }
 0x176   :  { %3047 = vmatpush2.bf16.msra.mxu1 %v5240_v25  ;;  %3007 = vmatprep.subr.bf16.mxu0 %v5245_v26  ;;  %v5306_v25 = vld [vmem:[#allocation3 + $0xa88] ss:$16 sps:$4 sm:$0xff]  }
 0x177   :  { %3048 = vmatprep.subr.bf16.mxu1 %v5248_v27  ;;  %v5309_v26 = vld [vmem:[#allocation3 + $0x868] ss:$16 sps:$4 sm:$0xff]  }
 0x178   :  { %v5312_v27 = vld [vmem:[#allocation3 + $0xa68] ss:$16 sps:$4 sm:$0xff]  }
 0x179   :  { %3008 = vmatpush2.bf16.msra.mxu0 %v5243_v28  ;;  %v5317_v28 = vld [vmem:[#allocation3 + $0x84c] ss:$16 sps:$4 sm:$0xff]  }
 0x17a   :  { %3049 = vmatpush2.bf16.msra.mxu1 %v5246_v30  ;;  %3009 = vmatprep.subr.bf16.mxu0 %v5251_v31  ;;  %v5320_v30 = vld [vmem:[#allocation3 + $0xa4c] ss:$16 sps:$4 sm:$0xff]   ;;  %v5315_v31 = vld [vmem:[#allocation3 + $0x848] ss:$16 sps:$4 sm:$0xff]  }
 0x17b   :  { %3050 = vmatprep.subr.bf16.mxu1 %v5254_v32  ;;  %v5318_v32 = vld [vmem:[#allocation3 + $0xa48] ss:$16 sps:$4 sm:$0xff]  }
 0x17d   :  { %3010 = vmatpush2.bf16.msra.mxu0 %v5249_v33  ;;  %v5323_v33 = vld [vmem:[#allocation3 + $0x82c] ss:$16 sps:$4 sm:$0xff]  }
 0x17e   :  { %3051 = vmatpush2.bf16.msra.mxu1 %v5252_v34  ;;  %3011 = vmatprep.subr.bf16.mxu0 %v5257_v7  ;;  %v5326_v34 = vld [vmem:[#allocation3 + $0xa2c] ss:$16 sps:$4 sm:$0xff]   ;;  %v5321_v7 = vld [vmem:[#allocation3 + $0x828] ss:$16 sps:$4 sm:$0xff]  }
 0x17f   :  { %3052 = vmatprep.subr.bf16.mxu1 %v5260_v10  ;;  %v5324_v10 = vld [vmem:[#allocation3 + $0xa28] ss:$16 sps:$4 sm:$0xff]  }
 0x181   :  { %3012 = vmatpush2.bf16.msra.mxu0 %v5255_v36  ;;  %v5329_v36 = vld [vmem:[#allocation3 + $0x80c] ss:$16 sps:$4 sm:$0xff]  }
 0x182   :  { %3053 = vmatpush2.bf16.msra.mxu1 %v5258_v38  ;;  %3013 = vmatprep.subr.bf16.mxu0 %v5263_v39  ;;  %v5332_v38 = vld [vmem:[#allocation3 + $0xa0c] ss:$16 sps:$4 sm:$0xff]   ;;  %v5327_v39 = vld [vmem:[#allocation3 + $0x808] ss:$16 sps:$4 sm:$0xff]  }
 0x183   :  { %3054 = vmatprep.subr.bf16.mxu1 %v5266_v40  ;;  %v5330_v40 = vld [vmem:[#allocation3 + $0xa08] ss:$16 sps:$4 sm:$0xff]  }
 0x185   :  { %3014 = vmatpush2.bf16.msra.mxu0 %v5261_v41  ;;  %v5335_v41 = vld [vmem:[#allocation3 + $0x9ec] ss:$16 sps:$4 sm:$0xff]  }
 0x186   :  { %3055 = vmatpush2.bf16.msra.mxu1 %v5264_v42  ;;  %3015 = vmatprep.subr.bf16.mxu0 %v5269_v43  ;;  %v5338_v42 = vld [vmem:[#allocation3 + $0xbec] ss:$16 sps:$4 sm:$0xff]   ;;  %v5333_v43 = vld [vmem:[#allocation3 + $0x9e8] ss:$16 sps:$4 sm:$0xff]  }
 0x187   :  { %3056 = vmatprep.subr.bf16.mxu1 %v5272_v44  ;;  %v5336_v44 = vld [vmem:[#allocation3 + $0xbe8] ss:$16 sps:$4 sm:$0xff]  }
 0x189   :  { %3016 = vmatpush2.bf16.msra.mxu0 %v5267_v48  ;;  %v5341_v48 = vld [vmem:[#allocation3 + $0x9cc] ss:$16 sps:$4 sm:$0xff]  }
 0x18a   :  { %3057 = vmatpush2.bf16.msra.mxu1 %v5270_v49  ;;  %3017 = vmatprep.subr.bf16.mxu0 %v5275_v51  ;;  %v5344_v49 = vld [vmem:[#allocation3 + $0xbcc] ss:$16 sps:$4 sm:$0xff]   ;;  %v5339_v51 = vld [vmem:[#allocation3 + $0x9c8] ss:$16 sps:$4 sm:$0xff]  }
 0x18b   :  { %3058 = vmatprep.subr.bf16.mxu1 %v5278_v52  ;;  %v5342_v52 = vld [vmem:[#allocation3 + $0xbc8] ss:$16 sps:$4 sm:$0xff]  }
 0x18d   :  { %3018 = vmatpush2.bf16.msra.mxu0 %v5273_v23  ;;  %v5347_v23 = vld [vmem:[#allocation3 + $0x9ac] ss:$16 sps:$4 sm:$0xff]  }
 0x18e   :  { %3059 = vmatpush2.bf16.msra.mxu1 %v5276_v24  ;;  %3019 = vmatprep.subr.bf16.mxu0 %v5281_v53  ;;  %v5350_v24 = vld [vmem:[#allocation3 + $0xbac] ss:$16 sps:$4 sm:$0xff]   ;;  %v5345_v53 = vld [vmem:[#allocation3 + $0x9a8] ss:$16 sps:$4 sm:$0xff]  }
 0x18f   :  { %3060 = vmatprep.subr.bf16.mxu1 %v5284_v56  ;;  %v5348_v56 = vld [vmem:[#allocation3 + $0xba8] ss:$16 sps:$4 sm:$0xff]  }
 0x191   :  { %3020 = vmatpush2.bf16.msra.mxu0 %v5279_v57  ;;  %v5353_v57 = vld [vmem:[#allocation3 + $0x98c] ss:$16 sps:$4 sm:$0xff]  }
 0x192   :  { %3061 = vmatpush2.bf16.msra.mxu1 %v5282_v58  ;;  %3071 = vmatprep.subr.bf16.mxu0 %v5287_v59  ;;  %v5356_v58 = vld [vmem:[#allocation3 + $0xb8c] ss:$16 sps:$4 sm:$0xff]   ;;  %v5351_v59 = vld [vmem:[#allocation3 + $0x988] ss:$16 sps:$4 sm:$0xff]  }
 0x193   :  { %3112 = vmatprep.subr.bf16.mxu1 %v5290_v60  ;;  %v5354_v60 = vld [vmem:[#allocation3 + $0xb88] ss:$16 sps:$4 sm:$0xff]  }
 0x194   :  { %v2777_v63 = vpop.f32.mrf.mxu0  ;;  %3022 = vmatmul.mubr.bf16.vlgmr.msra.gmra.mxu0 %v6152_v45 }
 0x195   :  { %v2818_v1 = vpop.f32.mrf.mxu1  ;;  %3063 = vmatmul.mubr.bf16.vlgmr.msra.gmra.mxu1 %v6154_v46  ;;  %v2778_v5 = vadd.f32 %v2777_v63, %v6205_v50  ;;  %3072 = vmatpush1.bf16.msra.mxu0 %v5285_v61  ;;  %v5297_v50 = vld [vmem:[#allocation3 + $0x8a8] ss:$16 sps:$4 sm:$0xff]   ;;  %v5359_v61 = vld [vmem:[#allocation3 + $0x96c] ss:$16 sps:$4 sm:$0xff]  }
 0x196   :  { %3113 = vmatpush1.bf16.msra.mxu1 %v5288_v8  ;;  %v6215_v12 = vpop.f32.mrf.mxu0  ;;  %3073 = vmatprep.subr.bf16.mxu0 %v5293_v11  ;;  %v5362_v8 = vld [vmem:[#allocation3 + $0xb6c] ss:$16 sps:$4 sm:$0xff]   ;;  %v5357_v11 = vld [vmem:[#allocation3 + $0x968] ss:$16 sps:$4 sm:$0xff]  }
 0x197   :  { %v6217_v13 = vpop.f32.mrf.mxu1  ;;  %3114 = vmatprep.subr.bf16.mxu1 %v5296_v62  ;;  %v6219_v18 = vadd.f32 %v2818_v1, %v2778_v5  ;;  %3103 = vmatprep.mubr.bf16.mxu0 %v6174_v15  ;;  %v5311_v15 = vld [vmem:[#allocation3 + $0x86c] ss:$16 sps:$4 sm:$0xff]   ;;  %v5360_v62 = vld [vmem:[#allocation3 + $0xb68] ss:$16 sps:$4 sm:$0xff]  }
 0x198   :  { %3144 = vmatprep.mubr.bf16.mxu1 %v6176_v16  ;;  %v2781_v45 = vpop.f32.mrf.mxu0  ;;  %v5314_v16 = vld [vmem:[#allocation3 + $0xa6c] ss:$16 sps:$4 sm:$0xff]   ;;  %v5363_v5 = vld [vmem:[#allocation3 + $0x948] ss:$16 sps:$4 sm:$0xff]  }
 0x199   :  { %v2822_v46 = vpop.f32.mrf.mxu1  ;;  %3074 = vmatpush1.bf16.msra.mxu0 %v5291_v6  ;;  %v5365_v63 = vld [vmem:[#allocation3 + $0x94c] ss:$16 sps:$4 sm:$0xff]   ;;  %v5366_v6 = vld [vmem:[#allocation3 + $0xb48] ss:$16 sps:$4 sm:$0xff]  }
 0x19a   :  { %3115 = vmatpush1.bf16.msra.mxu1 %v5294_v9  ;;  %v2782_v22 = vpop.f32.mrf.mxu0  ;;  %3075 = vmatprep.subr.bf16.mxu0 %v5299_v14  ;;  %v5368_v1 = vld [vmem:[#allocation3 + $0xb4c] ss:$16 sps:$4 sm:$0xff]   ;;  %v5372_v45 = vld [vmem:[#allocation3 + $0xb28] ss:$16 sps:$4 sm:$0xff]  }
 0x19b   :  { %v2823_v0 = vpop.f32.mrf.mxu1  ;;  %3116 = vmatprep.subr.bf16.mxu1 %v5302_v17  ;;  %v5371_v9 = vld [vmem:[#allocation3 + $0x92c] ss:$16 sps:$4 sm:$0xff]   ;;  %v5369_v17 = vld [vmem:[#allocation3 + $0x928] ss:$16 sps:$4 sm:$0xff]  }
 0x19c   :  { %v5374_v14 = vld [vmem:[#allocation3 + $0xb2c] ss:$16 sps:$4 sm:$0xff]   ;;  %v5378_v22 = vld [vmem:[#allocation3 + $0xb08] ss:$16 sps:$4 sm:$0xff]  }
 0x19d   :  { %3076 = vmatpush1.bf16.msra.mxu0 %v5297_v50  ;;  %v5377_v46 = vld [vmem:[#allocation3 + $0x90c] ss:$16 sps:$4 sm:$0xff]  }
 0x19e   :  { %3117 = vmatpush1.bf16.msra.mxu1 %v5300_v21  ;;  %3077 = vmatprep.subr.bf16.mxu0 %v5305_v2  ;;  %v5380_v50 = vld [vmem:[#allocation3 + $0xb0c] ss:$16 sps:$4 sm:$0xff]   ;;  %v5375_v21 = vld [vmem:[#allocation3 + $0x908] ss:$16 sps:$4 sm:$0xff]   ;;  %v2780_v2 = vadd.f32 %v6215_v12, %v6210_v55 }
 0x19f   :  { %3118 = vmatprep.subr.bf16.mxu1 %v5308_v3  ;;  %v5381_v0 = vld [vmem:[%s6628_s2 + $0x78] sm:$0xff]   ;;  %v5384_v55 = vld [vmem:[%s6628_s2 + $0x30] sm:$0xff]  }
 0x1a0   :  { %v5382_v3 = vld [vmem:[%s6628_s2 + $0x38] sm:$0xff]  }
 0x1a1   :  { %3078 = vmatpush1.bf16.msra.mxu0 %v5303_v4  ;;  %v5383_v4 = vld [vmem:[%s6628_s2 + $0x70] sm:$0xff]  }
 0x1a2   :  { %3119 = vmatpush1.bf16.msra.mxu1 %v5306_v25  ;;  %3079 = vmatprep.subr.bf16.mxu0 %v5311_v15 }
 0x1a3   :  { %3120 = vmatprep.subr.bf16.mxu1 %v5314_v16  ;;  %v2821_v16 = vadd.f32 %v6217_v13, %v2780_v2  ;;  %v5387_v13 = vld [vmem:[%s6628_s2 + $0x60] sm:$0xff]  }
 0x1a4   :  { %v5453_v2 = vld [vmem:[#allocation3 + $0x4] ss:$16 sps:$4 sm:$0xff]  }
 0x1a5   :  { %3080 = vmatpush1.bf16.msra.mxu0 %v5309_v26 }
 0x1a6   :  { %3121 = vmatpush1.bf16.msra.mxu1 %v5312_v27  ;;  %3081 = vmatprep.subr.bf16.mxu0 %v5317_v28  ;;  %v5385_v27 = vld [vmem:[%s6628_s2 + $0x68] sm:$0xff]  }
 0x1a7   :  { %3122 = vmatprep.subr.bf16.mxu1 %v5320_v30 }
 0x1a9   :  { %3082 = vmatpush1.bf16.msra.mxu0 %v5315_v31 }
 0x1aa   :  { %3123 = vmatpush1.bf16.msra.mxu1 %v5318_v32  ;;  %3083 = vmatprep.subr.bf16.mxu0 %v5323_v33 }
 0x1ab   :  { %3124 = vmatprep.subr.bf16.mxu1 %v5326_v34  ;;  %v5397_v34 = vld [vmem:[%s6628_s2 + $0xf8] sm:$0xff]  }
 0x1ad   :  { %3084 = vmatpush1.bf16.msra.mxu0 %v5321_v7  ;;  %v5398_v7 = vld [vmem:[%s6628_s2 + $0xb8] sm:$0xff]  }
 0x1ae   :  { %3125 = vmatpush1.bf16.msra.mxu1 %v5324_v10  ;;  %3085 = vmatprep.subr.bf16.mxu0 %v5329_v36  ;;  %v5399_v10 = vld [vmem:[%s6628_s2 + $0xf0] sm:$0xff]  }
 0x1af   :  { %3126 = vmatprep.subr.bf16.mxu1 %v5332_v38 }
 0x1b1   :  { %3086 = vmatpush1.bf16.msra.mxu0 %v5327_v39  ;;  %v6261_v39 = vld [vmem:[%s6628_s2 + $0x20] sm:$0xff]  }
 0x1b2   :  { %3127 = vmatpush1.bf16.msra.mxu1 %v5330_v40  ;;  %3087 = vmatprep.subr.bf16.mxu0 %v5335_v41  ;;  %v5400_v40 = vld [vmem:[%s6628_s2 + $0xb0] sm:$0xff]   ;;  %v6269_v41 = vld [vmem:[%s6628_s2 + $0x58] sm:$0xff]  }
 0x1b3   :  { %3128 = vmatprep.subr.bf16.mxu1 %v5338_v42  ;;  %v5401_v42 = vld [vmem:[%s6628_s2 + $0xe8] sm:$0xff]  }
 0x1b5   :  { %3088 = vmatpush2.bf16.msra.mxu0 %v5333_v43  ;;  %v6278_v43 = vld [vmem:[%s6628_s2 + $0x18] sm:$0xff]  }
 0x1b6   :  { %3129 = vmatpush2.bf16.msra.mxu1 %v5336_v44  ;;  %3089 = vmatprep.subr.bf16.mxu0 %v5341_v48  ;;  %v5402_v44 = vld [vmem:[%s6628_s2 + $0xa8] sm:$0xff]   ;;  %v6287_v48 = vld [vmem:[%s6628_s2 + $0x50] sm:$0xff]  }
 0x1b7   :  { %3130 = vmatprep.subr.bf16.mxu1 %v5344_v49  ;;  %v5403_v49 = vld [vmem:[%s6628_s2 + $0xe0] sm:$0xff]  }
 0x1b9   :  { %3090 = vmatpush2.bf16.msra.mxu0 %v5339_v51  ;;  %v6296_v51 = vld [vmem:[%s6628_s2 + $0x10] sm:$0xff]  }
 0x1ba   :  { %3131 = vmatpush2.bf16.msra.mxu1 %v5342_v52  ;;  %3091 = vmatprep.subr.bf16.mxu0 %v5347_v23  ;;  %v5404_v52 = vld [vmem:[%s6628_s2 + $0xa0] sm:$0xff]  }
 0x1bb   :  { %3132 = vmatprep.subr.bf16.mxu1 %v5350_v24  ;;  %v6306_v24 = vld [vmem:[%s6628_s2 + $0x48] sm:$0xff]  }
 0x1bd   :  { %3092 = vmatpush2.bf16.msra.mxu0 %v5345_v53  ;;  %v5405_v53 = vld [vmem:[%s6628_s2 + $0xd8] sm:$0xff]  }
 0x1be   :  { %3133 = vmatpush2.bf16.msra.mxu1 %v5348_v56  ;;  %3093 = vmatprep.subr.bf16.mxu0 %v5353_v57  ;;  %v6315_v56 = vld [vmem:[%s6628_s2 + $0x8] sm:$0xff]  }
 0x1bf   :  { %3134 = vmatprep.subr.bf16.mxu1 %v5356_v58  ;;  %v6324_v58 = vld [vmem:[%s6628_s2 + $0x40] sm:$0xff]  }
 0x1c1   :  { %3094 = vmatpush2.bf16.msra.mxu0 %v5351_v59  ;;  %v5407_v59 = vld [vmem:[%s6628_s2 + $0xd0] sm:$0xff]  }
 0x1c2   :  { %3135 = vmatpush2.bf16.msra.mxu1 %v5354_v60  ;;  %3095 = vmatprep.subr.bf16.mxu0 %v5359_v61  ;;  %v6333_v60 = vld [vmem:[%s6628_s2] sm:$0xff]  }
 0x1c3   :  { %3136 = vmatprep.subr.bf16.mxu1 %v5362_v8 }
 0x1c5   :  { %3096 = vmatpush2.bf16.msra.mxu0 %v5357_v11  ;;  %v5439_v11 = vld [vmem:[#allocation3 + $0xe4] ss:$16 sps:$4 sm:$0xff]  }
 0x1c6   :  { %3137 = vmatpush2.bf16.msra.mxu1 %v5360_v62  ;;  %3097 = vmatprep.subr.bf16.mxu0 %v5365_v63  ;;  %v5440_v62 = vld [vmem:[#allocation3 + $0xe0] ss:$16 sps:$4 sm:$0xff]   ;;  %v5441_v63 = vld [vmem:[#allocation3 + $0xc4] ss:$16 sps:$4 sm:$0xff]  }
 0x1c7   :  { %3138 = vmatprep.subr.bf16.mxu1 %v5368_v1  ;;  %v5442_v1 = vld [vmem:[#allocation3 + $0xc0] ss:$16 sps:$4 sm:$0xff]  }
 0x1c9   :  { %3098 = vmatpush2.bf16.msra.mxu0 %v5363_v5  ;;  %v5443_v5 = vld [vmem:[#allocation3 + $0xa4] ss:$16 sps:$4 sm:$0xff]  }
 0x1ca   :  { %3139 = vmatpush2.bf16.msra.mxu1 %v5366_v6  ;;  %3099 = vmatprep.subr.bf16.mxu0 %v5371_v9  ;;  %v5444_v6 = vld [vmem:[#allocation3 + $0xa0] ss:$16 sps:$4 sm:$0xff]   ;;  %v5445_v9 = vld [vmem:[#allocation3 + $0x84] ss:$16 sps:$4 sm:$0xff]  }
 0x1cb   :  { %3140 = vmatprep.subr.bf16.mxu1 %v5374_v14  ;;  %v5446_v14 = vld [vmem:[#allocation3 + $0x80] ss:$16 sps:$4 sm:$0xff]  }
 0x1cd   :  { %3100 = vmatpush2.bf16.msra.mxu0 %v5369_v17  ;;  %v5447_v17 = vld [vmem:[#allocation3 + $0x64] ss:$16 sps:$4 sm:$0xff]  }
 0x1ce   :  { %3141 = vmatpush2.bf16.msra.mxu1 %v5372_v45  ;;  %3101 = vmatprep.subr.bf16.mxu0 %v5377_v46  ;;  %v5448_v45 = vld [vmem:[#allocation3 + $0x60] ss:$16 sps:$4 sm:$0xff]   ;;  %v5449_v46 = vld [vmem:[#allocation3 + $0x44] ss:$16 sps:$4 sm:$0xff]  }
 0x1cf   :  { %3142 = vmatprep.subr.bf16.mxu1 %v5380_v50  ;;  %v5450_v50 = vld [vmem:[#allocation3 + $0x40] ss:$16 sps:$4 sm:$0xff]  }
 0x1d1   :  { %3102 = vmatpush2.bf16.msra.mxu0 %v5375_v21  ;;  %v5451_v21 = vld [vmem:[#allocation3 + $0x24] ss:$16 sps:$4 sm:$0xff]  }
 0x1d2   :  { %3143 = vmatpush2.bf16.msra.mxu1 %v5378_v22  ;;  %4683 = vmatprep.subr.bf16.mxu0 %v5381_v0  ;;  %v731_v22 = vsub.s32 2, %v6105_v47  ;;  %v5452_v0 = vld [vmem:[#allocation3 + $0x20] ss:$16 sps:$4 sm:$0xff]  }
 0x1d3   :  { %4705 = vmatprep.subr.bf16.mxu1 %v5397_v34 }
 0x1d4   :  { %v2859_v25 = vpop.f32.mrf.mxu0  ;;  %3104 = vmatmul.mubr.bf16.vlgmr.msra.gmra.mxu0 %v6184_v19 }
 0x1d5   :  { %v2900_v15 = vpop.f32.mrf.mxu1  ;;  %3145 = vmatmul.mubr.bf16.vlgmr.msra.gmra.mxu1 %v6186_v20  ;;  %4684 = vmatpush3.bf16.msra.mxu0 %v5382_v3  ;;  %v5386_v20 = vld [vmem:[%s6628_s2 + $0x28] sm:$0xff]   ;;  %v2860_v23 = vadd.f32 %v2859_v25, %v6219_v18  ;;  %v5406_v18 = vld [vmem:[%s6628_s2 + $0x98] sm:$0xff]   ;;  %v735_v3 = vsub.s32 3, %v6105_v47  ;;  %v5454_v25 = vld [vmem:[#allocation3] ss:$16 sps:$4 sm:$0xff]  }
 0x1d6   :  { %v2861_v12 = vpop.f32.mrf.mxu0  ;;  %4685 = vmatprep.subr.bf16.mxu0 %v5383_v4  ;;  %4706 = vmatpush3.bf16.msra.mxu1 %v5398_v7  ;;  %v6340_v4 = vrot.slane %v6192_v29, %v731_v22  ;;  %v5456_v47 = vld [vmem:[#allocation3 + $0x1e0] ss:$16 sps:$4 sm:$0xff]  }
 0x1d7   :  { %v2902_v26 = vpop.f32.mrf.mxu1  ;;  %v2862_v28 = vadd.f32 %v2861_v12, %v2821_v16  ;;  %4707 = vmatprep.subr.bf16.mxu1 %v5399_v10  ;;  %v2901_v57 = vadd.f32 %v2900_v15, %v2860_v23  ;;  %v5455_v15 = vld [vmem:[#allocation3 + $0x1e4] ss:$16 sps:$4 sm:$0xff]   ;;  %v5458_v7 = vld [vmem:[#allocation3 + $0x1c0] ss:$16 sps:$4 sm:$0xff]  }
 0x1d8   :  { %v2863_v30 = vpop.f32.mrf.mxu0  ;;  %v5408_v16 = vld [vmem:[%s6628_s2 + $0x90] sm:$0xff]   ;;  %v5411_v10 = vld [vmem:[%s6628_s2 + $0xc0] sm:$0xff]  }
 0x1d9   :  { %v2904_v31 = vpop.f32.mrf.mxu1  ;;  %v2903_v19 = vadd.f32 %v2902_v26, %v2862_v28  ;;  %4686 = vmatpush3.bf16.msra.mxu0 %v5384_v55  ;;  %v3153_v61 = vmax.f32 %v2901_v57, 0.0  ;;  %v6346_v55 = vrot.slane %v6192_v29, %v735_v3  ;;  %v5409_v28 = vld [vmem:[%s6628_s2 + $0xc8] sm:$0xff]   ;;  %v5475_v22 = vld [vmem:[#allocation3 + $0x4c0] ss:$16 sps:$4 sm:$0xff]  }
 0x1da   :  { %v2864_v32 = vpop.f32.mrf.mxu0  ;;  %4687 = vmatprep.subr.bf16.mxu0 %v5385_v27  ;;  %4708 = vmatpush3.bf16.msra.mxu1 %v5400_v40  ;;  %v5410_v29 = vld [vmem:[%s6628_s2 + $0x88] sm:$0xff]  }
 0x1db   :  { %v2905_v33 = vpop.f32.mrf.mxu1  ;;  %v3154_v36 = vmax.f32 %v2903_v19, 0.0  ;;  %4709 = vmatprep.subr.bf16.mxu1 %v5401_v42  ;;  %v3157_v8 = vpack.c.bf16 %v3153_v61, %v3153_v61  ;;  %v5457_v19 = vld [vmem:[#allocation3 + $0x1c4] ss:$16 sps:$4 sm:$0xff]  }
 0x1dc   :  { %v5459_v40 = vld [vmem:[#allocation3 + $0x1a4] ss:$16 sps:$4 sm:$0xff]  }
 0x1dd   :  { %v3158_v38 = vpack.c.bf16 %v3154_v36, %v3154_v36  ;;  %4688 = vmatpush3.bf16.msra.mxu0 %v5386_v20  ;;  %v5412_v42 = vld [vmem:[%s6628_s2 + $0x80] sm:$0xff]  }
 0x1de   :  { %4689 = vmatprep.subr.bf16.mxu0 %v5387_v13  ;;  %4710 = vmatpush3.bf16.msra.mxu1 %v5402_v44  ;;  %v5413_v44 = vld [vmem:[#allocation12] ss:$24 sps:$4 sm:$0xff]   ;;  %v5462_v57 = vld [vmem:[#allocation3 + $0x184] ss:$16 sps:$4 sm:$0xff]  }
 0x1df   :  { %3391 = vmatprep.mubr.bf16.mxu0 %v3158_v38  ;;  %4711 = vmatprep.subr.bf16.mxu1 %v5403_v49  ;;  %v5415_v49 = vld [vmem:[#allocation12 + $0x30] ss:$24 sps:$4 sm:$0xff]   ;;  %v5478_v3 = vld [vmem:[#allocation3 + $0x484] ss:$16 sps:$4 sm:$0xff]  }
 0x1e0   :  { %v3521_v23 = vrot.slane %v5415_v49, %v6108_v54  ;;  %v5491_v49 = vld [vmem:[#allocation3 + $0x5c0] ss:$16 sps:$4 sm:$0xff]  }
 0x1e1   :  { %4690 = vmatpush3.bf16.msra.mxu0 %v6261_v39 }
 0x1e2   :  { %4691 = vmatprep.subr.bf16.mxu0 %v6269_v41  ;;  %4712 = vmatpush3.bf16.msra.mxu1 %v5404_v52  ;;  %v3507_v52 = vrot.slane %v5413_v44, %v6108_v54 }
 0x1e3   :  { %4713 = vmatprep.subr.bf16.mxu1 %v5405_v53  ;;  %v5460_v53 = vld [vmem:[#allocation3 + $0x1a0] ss:$16 sps:$4 sm:$0xff]  }
 0x1e5   :  { %4692 = vmatpush3.bf16.msra.mxu0 %v6278_v43 }
 0x1e6   :  { %4693 = vmatprep.subr.bf16.mxu0 %v6287_v48  ;;  %4714 = vmatpush3.bf16.msra.mxu1 %v5406_v18  ;;  %v5461_v18 = vld [vmem:[#allocation3 + $0x2e4] ss:$16 sps:$4 sm:$0xff]  }
 0x1e7   :  { %4715 = vmatprep.subr.bf16.mxu1 %v5407_v59  ;;  %v3530_v59 = vcombine.high %v3507_v52, %v3521_v23 }
 0x1e9   :  { %4694 = vmatpush3.bf16.msra.mxu0 %v6296_v51  ;;  %v6368_v61 = vpack.c.bf16 %v3530_v59, %v3530_v59  ;;  %v5492_v59 = vld [vmem:[#allocation3 + $0x5a4] ss:$16 sps:$4 sm:$0xff]  }
 0x1ea   :  { %4695 = vmatprep.subr.bf16.mxu0 %v6306_v24  ;;  %4716 = vmatpush3.bf16.msra.mxu1 %v5408_v16  ;;  %v5481_v16 = vld [vmem:[#allocation3 + $0x460] ss:$16 sps:$4 sm:$0xff]  }
 0x1eb   :  { %4717 = vmatprep.subr.bf16.mxu1 %v5409_v28  ;;  %v5486_v28 = vld [vmem:[#allocation3 + $0x404] ss:$16 sps:$4 sm:$0xff]  }
 0x1ed   :  { %4696 = vmatpush3.bf16.msra.mxu0 %v6315_v56 }
 0x1ee   :  { %4697 = vmatprep.subr.bf16.mxu0 %v6324_v58  ;;  %4718 = vmatpush3.bf16.msra.mxu1 %v5410_v29 }
 0x1ef   :  { %4719 = vmatprep.subr.bf16.mxu1 %v5411_v10  ;;  %v5490_v10 = vld [vmem:[#allocation3 + $0x5c4] ss:$16 sps:$4 sm:$0xff]  }
 0x1f1   :  { %4698 = vmatpush3.bf16.msra.mxu0 %v6333_v60 }
 0x1f2   :  { %3629 = vmatprep.subr.bf16.mxu0 %v5439_v11  ;;  %4720 = vmatpush3.bf16.msra.mxu1 %v5412_v42  ;;  %v5464_v11 = vld [vmem:[#allocation3 + $0x164] ss:$16 sps:$4 sm:$0xff]  }
 0x1f3   :  { %3670 = vmatprep.subr.bf16.mxu1 %v5461_v18 }
 0x1f4   :  { %3392 = vmatmul.mubr.bf16.vlgmr.msra.gmra.mxu0 %v3157_v8  ;;  %v5463_v8 = vld [vmem:[#allocation3 + $0x180] ss:$16 sps:$4 sm:$0xff]  }
 0x1f5   :  { %3630 = vmatpush1.bf16.msra.mxu0 %v5440_v62  ;;  %3661 = vmatprep.mubr.bf16.mxu0 %v6368_v61  ;;  %v5465_v62 = vld [vmem:[#allocation3 + $0x160] ss:$16 sps:$4 sm:$0xff]  }
 0x1f6   :  { %3631 = vmatprep.subr.bf16.mxu0 %v5441_v63  ;;  %v5466_v63 = vld [vmem:[#allocation3 + $0x144] ss:$16 sps:$4 sm:$0xff]  }
 0x1f9   :  { %3632 = vmatpush1.bf16.msra.mxu0 %v5442_v1  ;;  %v5467_v1 = vld [vmem:[#allocation3 + $0x140] ss:$16 sps:$4 sm:$0xff]  }
 0x1fa   :  { %3633 = vmatprep.subr.bf16.mxu0 %v5443_v5  ;;  %v5468_v5 = vld [vmem:[#allocation3 + $0x124] ss:$16 sps:$4 sm:$0xff]  }
 0x1fd   :  { %3634 = vmatpush1.bf16.msra.mxu0 %v5444_v6  ;;  %v3529_v6 = vcombine.low %v3507_v52, %v3521_v23  ;;  %v5419_v23 = vld [vmem:[#allocation12 + $0x8] ss:$24 sps:$4 sm:$0xff]  }
 0x1fe   :  { %3635 = vmatprep.subr.bf16.mxu0 %v5445_v9  ;;  %v5469_v9 = vld [vmem:[#allocation3 + $0x120] ss:$16 sps:$4 sm:$0xff]  }
 0x201   :  { %3636 = vmatpush1.bf16.msra.mxu0 %v5446_v14  ;;  %v5470_v14 = vld [vmem:[#allocation3 + $0x104] ss:$16 sps:$4 sm:$0xff]  }
 0x202   :  { %3637 = vmatprep.subr.bf16.mxu0 %v5447_v17  ;;  %v6371_v17 = vpack.c.bf16 %v3529_v6, %v3529_v6 }
 0x205   :  { %3638 = vmatpush1.bf16.msra.mxu0 %v5448_v45  ;;  %v5471_v45 = vld [vmem:[#allocation3 + $0x100] ss:$16 sps:$4 sm:$0xff]  }
 0x206   :  { %3639 = vmatprep.subr.bf16.mxu0 %v5449_v46  ;;  %v5472_v46 = vld [vmem:[#allocation3 + $0x4e4] ss:$16 sps:$4 sm:$0xff]  }
 0x209   :  { %3640 = vmatpush1.bf16.msra.mxu0 %v5450_v50  ;;  %v5473_v50 = vld [vmem:[#allocation3 + $0x4e0] ss:$16 sps:$4 sm:$0xff]  }
 0x20a   :  { %3641 = vmatprep.subr.bf16.mxu0 %v5451_v21  ;;  %v5474_v21 = vld [vmem:[#allocation3 + $0x4c4] ss:$16 sps:$4 sm:$0xff]  }
 0x20d   :  { %3642 = vmatpush1.bf16.msra.mxu0 %v5452_v0  ;;  %v5476_v0 = vld [vmem:[#allocation3 + $0x4a4] ss:$16 sps:$4 sm:$0xff]  }
 0x20e   :  { %3643 = vmatprep.subr.bf16.mxu0 %v5453_v2  ;;  %v5477_v2 = vld [vmem:[#allocation3 + $0x4a0] ss:$16 sps:$4 sm:$0xff]  }
 0x211   :  { %3644 = vmatpush1.bf16.msra.mxu0 %v5454_v25  ;;  %v5479_v25 = vld [vmem:[#allocation3 + $0x480] ss:$16 sps:$4 sm:$0xff]  }
 0x212   :  { %3645 = vmatprep.subr.bf16.mxu0 %v5455_v15  ;;  %v5480_v15 = vld [vmem:[#allocation3 + $0x464] ss:$16 sps:$4 sm:$0xff]  }
 0x214   :  { %v2941_v12 = vpop.f32.mrf.mxu0 }
 0x215   :  { %v2982_v26 = vpop.f32.mrf.mxu1  ;;  %v2942_v27 = vadd.f32 %v2941_v12, %v6340_v4  ;;  %3646 = vmatpush2.bf16.msra.mxu0 %v5456_v47  ;;  %v5482_v12 = vld [vmem:[#allocation3 + $0x444] ss:$16 sps:$4 sm:$0xff]   ;;  %v5485_v47 = vld [vmem:[#allocation3 + $0x420] ss:$16 sps:$4 sm:$0xff]  }
 0x216   :  { %v2943_v30 = vpop.f32.mrf.mxu0  ;;  %3647 = vmatprep.subr.bf16.mxu0 %v5457_v19 }
 0x217   :  { %v2984_v31 = vpop.f32.mrf.mxu1  ;;  %v6355_v20 = vadd.f32 %v2982_v26, %v2942_v27  ;;  %v2944_v13 = vadd.f32 %v2943_v30, %v6346_v55  ;;  %v5483_v26 = vld [vmem:[#allocation3 + $0x440] ss:$16 sps:$4 sm:$0xff]   ;;  %v5484_v27 = vld [vmem:[#allocation3 + $0x424] ss:$16 sps:$4 sm:$0xff]  }
 0x218   :  { %v2945_v32 = vpop.f32.mrf.mxu0  ;;  %v5487_v30 = vld [vmem:[#allocation3 + $0x400] ss:$16 sps:$4 sm:$0xff]  }
 0x219   :  { %v2986_v33 = vpop.f32.mrf.mxu1  ;;  %v6358_v34 = vadd.f32 %v2984_v31, %v2944_v13  ;;  %3648 = vmatpush2.bf16.msra.mxu0 %v5458_v7  ;;  %v5488_v31 = vld [vmem:[#allocation3 + $0x5e4] ss:$16 sps:$4 sm:$0xff]   ;;  %v5489_v32 = vld [vmem:[#allocation3 + $0x5e0] ss:$16 sps:$4 sm:$0xff]  }
 0x21a   :  { %v2946_v36 = vpop.f32.mrf.mxu0  ;;  %3649 = vmatprep.subr.bf16.mxu0 %v5459_v40  ;;  %v5418_v40 = vld [vmem:[#allocation12 + $0x34] ss:$24 sps:$4 sm:$0xff]  }
 0x21b   :  { %v2987_v38 = vpop.f32.mrf.mxu1 }
 0x21c   :  { %v5417_v38 = vld [vmem:[#allocation12 + $0x4] ss:$24 sps:$4 sm:$0xff]  }
 0x21d   :  { %3650 = vmatpush2.bf16.msra.mxu0 %v5460_v53  ;;  %v6382_v52 = vrot.slane %v5417_v38, %v6108_v54  ;;  %v5421_v53 = vld [vmem:[#allocation12 + $0x38] ss:$24 sps:$4 sm:$0xff]   ;;  %v5518_v38 = vld [vmem:[#allocation3 + $0x804] ss:$16 sps:$4 sm:$0xff]  }
 0x21e   :  { %3651 = vmatprep.subr.bf16.mxu0 %v5462_v57 }
 0x221   :  { %3652 = vmatpush2.bf16.msra.mxu0 %v5463_v8  ;;  %v3543_v8 = vrot.slane %v5419_v23, %v6108_v54 }
 0x222   :  { %3653 = vmatprep.subr.bf16.mxu0 %v5464_v11  ;;  %v3557_v11 = vrot.slane %v5421_v53, %v6108_v54 }
 0x225   :  { %3654 = vmatpush2.bf16.msra.mxu0 %v5465_v62 }
 0x226   :  { %3655 = vmatprep.subr.bf16.mxu0 %v5466_v63  ;;  %v5493_v63 = vld [vmem:[#allocation3 + $0x5a0] ss:$16 sps:$4 sm:$0xff]  }
 0x229   :  { %3656 = vmatpush2.bf16.msra.mxu0 %v5467_v1  ;;  %v3566_v1 = vcombine.high %v3543_v8, %v3557_v11 }
 0x22a   :  { %3657 = vmatprep.subr.bf16.mxu0 %v5468_v5  ;;  %v5494_v5 = vld [vmem:[#allocation3 + $0x584] ss:$16 sps:$4 sm:$0xff]  }
 0x22b   :  { %v6393_v6 = vpack.c.bf16 %v3566_v1, %v3566_v1 }
 0x22d   :  { %3658 = vmatpush2.bf16.msra.mxu0 %v5469_v9  ;;  %v5495_v9 = vld [vmem:[#allocation3 + $0x580] ss:$16 sps:$4 sm:$0xff]  }
 0x22e   :  { %3659 = vmatprep.subr.bf16.mxu0 %v5470_v14  ;;  %v5496_v14 = vld [vmem:[#allocation3 + $0x564] ss:$16 sps:$4 sm:$0xff]  }
 0x231   :  { %3660 = vmatpush2.bf16.msra.mxu0 %v5471_v45  ;;  %v5497_v45 = vld [vmem:[#allocation3 + $0x560] ss:$16 sps:$4 sm:$0xff]  }
 0x232   :  { %3711 = vmatprep.subr.bf16.mxu0 %v5472_v46  ;;  %v5498_v46 = vld [vmem:[#allocation3 + $0x544] ss:$16 sps:$4 sm:$0xff]  }
 0x234   :  { %3662 = vmatmul.mubr.bf16.vlgmr.msra.gmra.mxu0 %v6371_v17 }
 0x235   :  { %3712 = vmatpush1.bf16.msra.mxu0 %v5473_v50  ;;  %3743 = vmatprep.mubr.bf16.mxu0 %v6393_v6  ;;  %v5499_v50 = vld [vmem:[#allocation3 + $0x540] ss:$16 sps:$4 sm:$0xff]  }
 0x236   :  { %3713 = vmatprep.subr.bf16.mxu0 %v5474_v21  ;;  %v5500_v21 = vld [vmem:[#allocation3 + $0x524] ss:$16 sps:$4 sm:$0xff]  }
 0x239   :  { %3714 = vmatpush1.bf16.msra.mxu0 %v5475_v22  ;;  %v3565_v22 = vcombine.low %v3543_v8, %v3557_v11  ;;  %v5522_v11 = vld [vmem:[#allocation3 + $0x9c4] ss:$16 sps:$4 sm:$0xff]  }
 0x23a   :  { %3715 = vmatprep.subr.bf16.mxu0 %v5476_v0  ;;  %v5501_v0 = vld [vmem:[#allocation3 + $0x520] ss:$16 sps:$4 sm:$0xff]  }
 0x23d   :  { %3716 = vmatpush1.bf16.msra.mxu0 %v5477_v2  ;;  %v5502_v2 = vld [vmem:[#allocation3 + $0x504] ss:$16 sps:$4 sm:$0xff]  }
 0x23e   :  { %3717 = vmatprep.subr.bf16.mxu0 %v5478_v3  ;;  %v6396_v3 = vpack.c.bf16 %v3565_v22, %v3565_v22 }
 0x241   :  { %3718 = vmatpush1.bf16.msra.mxu0 %v5479_v25  ;;  %v5503_v25 = vld [vmem:[#allocation3 + $0x500] ss:$16 sps:$4 sm:$0xff]  }
 0x242   :  { %3719 = vmatprep.subr.bf16.mxu0 %v5480_v15  ;;  %v5504_v15 = vld [vmem:[#allocation3 + $0x8e4] ss:$16 sps:$4 sm:$0xff]  }
 0x245   :  { %3720 = vmatpush1.bf16.msra.mxu0 %v5481_v16  ;;  %v5505_v16 = vld [vmem:[#allocation3 + $0x8e0] ss:$16 sps:$4 sm:$0xff]  }
 0x246   :  { %3721 = vmatprep.subr.bf16.mxu0 %v5482_v12  ;;  %v5506_v12 = vld [vmem:[#allocation3 + $0x8c4] ss:$16 sps:$4 sm:$0xff]  }
 0x249   :  { %3722 = vmatpush1.bf16.msra.mxu0 %v5483_v26  ;;  %v5507_v26 = vld [vmem:[#allocation3 + $0x8c0] ss:$16 sps:$4 sm:$0xff]  }
 0x24a   :  { %3723 = vmatprep.subr.bf16.mxu0 %v5484_v27  ;;  %v5508_v27 = vld [vmem:[#allocation3 + $0x8a4] ss:$16 sps:$4 sm:$0xff]  }
 0x24d   :  { %3724 = vmatpush1.bf16.msra.mxu0 %v5485_v47  ;;  %v5509_v47 = vld [vmem:[#allocation3 + $0x8a0] ss:$16 sps:$4 sm:$0xff]  }
 0x24e   :  { %3725 = vmatprep.subr.bf16.mxu0 %v5486_v28  ;;  %v5510_v28 = vld [vmem:[#allocation3 + $0x884] ss:$16 sps:$4 sm:$0xff]  }
 0x251   :  { %3726 = vmatpush1.bf16.msra.mxu0 %v5487_v30  ;;  %v5511_v30 = vld [vmem:[#allocation3 + $0x880] ss:$16 sps:$4 sm:$0xff]  }
 0x252   :  { %3727 = vmatprep.subr.bf16.mxu0 %v5488_v31  ;;  %v5512_v31 = vld [vmem:[#allocation3 + $0x864] ss:$16 sps:$4 sm:$0xff]  }
 0x254   :  { %v3023_v19 = vpop.f32.mrf.mxu0 }
 0x255   :  { %v3064_v29 = vpop.f32.mrf.mxu1  ;;  %v3024_v13 = vadd.f32 %v3023_v19, %v6355_v20  ;;  %3728 = vmatpush2.bf16.msra.mxu0 %v5489_v32  ;;  %v6385_v20 = vrot.slane %v5418_v40, %v6108_v54  ;;  %v5513_v19 = vld [vmem:[#allocation3 + $0x860] ss:$16 sps:$4 sm:$0xff]   ;;  %v5516_v32 = vld [vmem:[#allocation3 + $0x824] ss:$16 sps:$4 sm:$0xff]  }
 0x256   :  { %v6375_v33 = vpop.f32.mrf.mxu0  ;;  %3729 = vmatprep.subr.bf16.mxu0 %v5490_v10  ;;  %v5517_v10 = vld [vmem:[#allocation3 + $0x820] ss:$16 sps:$4 sm:$0xff]  }
 0x257   :  { %v6377_v7 = vpop.f32.mrf.mxu1  ;;  %v6379_v36 = vadd.f32 %v3064_v29, %v3024_v13  ;;  %v6391_v62 = vcombine.low %v6382_v52, %v6385_v20  ;;  %v5514_v29 = vld [vmem:[#allocation3 + $0x844] ss:$16 sps:$4 sm:$0xff]   ;;  %v5515_v13 = vld [vmem:[#allocation3 + $0x840] ss:$16 sps:$4 sm:$0xff]   ;;  %v3026_v40 = vadd.f32 %v6375_v33, %v6358_v34 }
 0x258   :  { %v3027_v42 = vpop.f32.mrf.mxu0  ;;  %v5424_v34 = vld [vmem:[#allocation12 + $0x3c] ss:$24 sps:$4 sm:$0xff]  }
 0x259   :  { %v3068_v44 = vpop.f32.mrf.mxu1  ;;  %3730 = vmatpush2.bf16.msra.mxu0 %v5491_v49  ;;  %v5519_v42 = vld [vmem:[#allocation3 + $0x800] ss:$16 sps:$4 sm:$0xff]   ;;  %v3067_v53 = vadd.f32 %v6377_v7, %v3026_v40 }
 0x25a   :  { %v3028_v18 = vpop.f32.mrf.mxu0  ;;  %3731 = vmatprep.subr.bf16.mxu0 %v5492_v59  ;;  %v5520_v44 = vld [vmem:[#allocation3 + $0x9e4] ss:$16 sps:$4 sm:$0xff]   ;;  %v5533_v40 = vld [vmem:[#allocation3 + $0x960] ss:$16 sps:$4 sm:$0xff]  }
 0x25b   :  { %v3069_v57 = vpop.f32.mrf.mxu1 }
 0x25c   :  { %v5521_v57 = vld [vmem:[#allocation3 + $0x9e0] ss:$16 sps:$4 sm:$0xff]  }
 0x25d   :  { %3732 = vmatpush2.bf16.msra.mxu0 %v5493_v63 }
 0x25e   :  { %3733 = vmatprep.subr.bf16.mxu0 %v5494_v5  ;;  %v5423_v5 = vld [vmem:[#allocation12 + $0xc] ss:$24 sps:$4 sm:$0xff]  }
 0x25f   :  { %v6406_v7 = vrot.slane %v5423_v5, %v6108_v54  ;;  %v5544_v5 = vld [vmem:[#allocation3 + $0x244] ss:$16 sps:$4 sm:$0xff]  }
 0x261   :  { %3734 = vmatpush2.bf16.msra.mxu0 %v5495_v9 }
 0x262   :  { %3735 = vmatprep.subr.bf16.mxu0 %v5496_v14 }
 0x265   :  { %3736 = vmatpush2.bf16.msra.mxu0 %v5497_v45  ;;  %v3532_v45 = vcombine.high %v6382_v52, %v6385_v20 }
 0x266   :  { %3737 = vmatprep.subr.bf16.mxu0 %v5498_v46  ;;  %v5523_v46 = vld [vmem:[#allocation3 + $0x9c0] ss:$16 sps:$4 sm:$0xff]  }
 0x269   :  { %3738 = vmatpush2.bf16.msra.mxu0 %v5499_v50  ;;  %v5425_v50 = vld [vmem:[#allocation12 + $0x10] ss:$24 sps:$4 sm:$0xff]  }
 0x26a   :  { %3739 = vmatprep.subr.bf16.mxu0 %v5500_v21  ;;  %v5427_v21 = vld [vmem:[#allocation12 + $0x40] ss:$24 sps:$4 sm:$0xff]  }
 0x26b   :  { %v3593_v20 = vrot.slane %v5427_v21, %v6108_v54 }
 0x26d   :  { %3740 = vmatpush2.bf16.msra.mxu0 %v5501_v0 }
 0x26e   :  { %3741 = vmatprep.subr.bf16.mxu0 %v5502_v2 }
 0x271   :  { %3742 = vmatpush2.bf16.msra.mxu0 %v5503_v25  ;;  %v5524_v25 = vld [vmem:[#allocation3 + $0x9a4] ss:$16 sps:$4 sm:$0xff]  }
 0x272   :  { %3793 = vmatprep.subr.bf16.mxu0 %v5504_v15 }
 0x274   :  { %3744 = vmatmul.mubr.bf16.vlgmr.msra.gmra.mxu0 %v6396_v3 }
 0x275   :  { %3794 = vmatpush1.bf16.msra.mxu0 %v5505_v16  ;;  %v3579_v16 = vrot.slane %v5425_v50, %v6108_v54  ;;  %v5549_v50 = vld [vmem:[#allocation3 + $0xe8] ss:$16 sps:$4 sm:$0xff]  }
 0x276   :  { %3795 = vmatprep.subr.bf16.mxu0 %v5506_v12 }
 0x279   :  { %3796 = vmatpush1.bf16.msra.mxu0 %v5507_v26  ;;  %v6417_v26 = vpack.c.bf16 %v3532_v45, %v3532_v45 }
 0x27a   :  { %3797 = vmatprep.subr.bf16.mxu0 %v5508_v27  ;;  %v5525_v27 = vld [vmem:[#allocation3 + $0x9a0] ss:$16 sps:$4 sm:$0xff]  }
 0x27d   :  { %3798 = vmatpush1.bf16.msra.mxu0 %v5509_v47 }
 0x27e   :  { %3799 = vmatprep.subr.bf16.mxu0 %v5510_v28  ;;  %v5526_v28 = vld [vmem:[#allocation3 + $0x984] ss:$16 sps:$4 sm:$0xff]  }
 0x281   :  { %3800 = vmatpush1.bf16.msra.mxu0 %v5511_v30  ;;  %v3602_v30 = vcombine.high %v3579_v16, %v3593_v20 }
 0x282   :  { %3801 = vmatprep.subr.bf16.mxu0 %v5512_v31 }
 0x283   :  { %v6419_v31 = vpack.c.bf16 %v3602_v30, %v3602_v30  ;;  %v5559_v30 = vld [vmem:[#allocation3 + $0x3e0] ss:$16 sps:$4 sm:$0xff]  }
 0x285   :  { %3802 = vmatpush1.bf16.msra.mxu0 %v5513_v19  ;;  %v5527_v19 = vld [vmem:[#allocation3 + $0x2e0] ss:$16 sps:$4 sm:$0xff]   ;;  %3825 = vmatprep.mubr.bf16.mxu0 %v6419_v31 }
 0x286   :  { %3803 = vmatprep.subr.bf16.mxu0 %v5514_v29  ;;  %v5528_v29 = vld [vmem:[#allocation3 + $0x2c4] ss:$16 sps:$4 sm:$0xff]  }
 0x289   :  { %3804 = vmatpush1.bf16.msra.mxu0 %v5515_v13  ;;  %v5529_v13 = vld [vmem:[#allocation3 + $0x980] ss:$16 sps:$4 sm:$0xff]  }
 0x28a   :  { %3805 = vmatprep.subr.bf16.mxu0 %v5516_v32  ;;  %v5530_v32 = vld [vmem:[#allocation3 + $0x964] ss:$16 sps:$4 sm:$0xff]  }
 0x28d   :  { %3806 = vmatpush1.bf16.msra.mxu0 %v5517_v10  ;;  %v5531_v10 = vld [vmem:[#allocation3 + $0x2c0] ss:$16 sps:$4 sm:$0xff]  }
 0x28e   :  { %3807 = vmatprep.subr.bf16.mxu0 %v5518_v38  ;;  %v5532_v38 = vld [vmem:[#allocation3 + $0x2a4] ss:$16 sps:$4 sm:$0xff]  }
 0x291   :  { %3808 = vmatpush1.bf16.msra.mxu0 %v5519_v42  ;;  %v5534_v42 = vld [vmem:[#allocation3 + $0x944] ss:$16 sps:$4 sm:$0xff]  }
 0x292   :  { %3809 = vmatprep.subr.bf16.mxu0 %v5520_v44  ;;  %v5535_v44 = vld [vmem:[#allocation3 + $0x2a0] ss:$16 sps:$4 sm:$0xff]  }
 0x294   :  { %v3105_v49 = vpop.f32.mrf.mxu0 }
 0x295   :  { %v3146_v23 = vpop.f32.mrf.mxu1  ;;  %v3106_v18 = vadd.f32 %v3105_v49, %v6379_v36  ;;  %3810 = vmatpush2.bf16.msra.mxu0 %v5521_v57  ;;  %v6409_v36 = vrot.slane %v5424_v34, %v6108_v54  ;;  %v5536_v49 = vld [vmem:[#allocation3 + $0x284] ss:$16 sps:$4 sm:$0xff]   ;;  %v3601_v57 = vcombine.low %v3579_v16, %v3593_v20  ;;  %v5545_v34 = vld [vmem:[#allocation3 + $0x900] ss:$16 sps:$4 sm:$0xff]   ;;  %v5553_v16 = vld [vmem:[#allocation3 + $0xc8] ss:$16 sps:$4 sm:$0xff]  }
 0x296   :  { %v3107_v59 = vpop.f32.mrf.mxu0  ;;  %3811 = vmatprep.subr.bf16.mxu0 %v5522_v11  ;;  %v5542_v11 = vld [vmem:[#allocation3 + $0x904] ss:$16 sps:$4 sm:$0xff]   ;;  %v5554_v20 = vld [vmem:[#allocation3 + $0xac] ss:$16 sps:$4 sm:$0xff]  }
 0x297   :  { %v3148_v8 = vpop.f32.mrf.mxu1  ;;  %v3147_v63 = vadd.f32 %v3146_v23, %v3106_v18  ;;  %v3108_v1 = vadd.f32 %v3107_v59, %v3067_v53  ;;  %v6414_v52 = vcombine.low %v6406_v7, %v6409_v36  ;;  %v5537_v23 = vld [vmem:[#allocation3 + $0x940] ss:$16 sps:$4 sm:$0xff]   ;;  %v5538_v53 = vld [vmem:[#allocation3 + $0x924] ss:$16 sps:$4 sm:$0xff]  }
 0x298   :  { %v3109_v33 = vpop.f32.mrf.mxu0  ;;  %v5539_v18 = vld [vmem:[#allocation3 + $0x280] ss:$16 sps:$4 sm:$0xff]   ;;  %v5540_v59 = vld [vmem:[#allocation3 + $0x264] ss:$16 sps:$4 sm:$0xff]  }
 0x299   :  { %v3150_v9 = vpop.f32.mrf.mxu1  ;;  %v3149_v14 = vadd.f32 %v3148_v8, %v3108_v1  ;;  %3812 = vmatpush2.bf16.msra.mxu0 %v5523_v46  ;;  %v3155_v22 = vmax.f32 %v3147_v63, 0.0  ;;  %v5541_v8 = vld [vmem:[#allocation3 + $0x920] ss:$16 sps:$4 sm:$0xff]   ;;  %v6423_v1 = vpack.c.bf16 %v3601_v57, %v3601_v57  ;;  %v5546_v33 = vld [vmem:[#allocation3 + $0xec] ss:$16 sps:$4 sm:$0xff]  }
 0x29a   :  { %v3110_v0 = vpop.f32.mrf.mxu0  ;;  %3813 = vmatprep.subr.bf16.mxu0 %v5524_v25  ;;  %v5543_v63 = vld [vmem:[#allocation3 + $0x260] ss:$16 sps:$4 sm:$0xff]   ;;  %v5548_v46 = vld [vmem:[#allocation3 + $0x224] ss:$16 sps:$4 sm:$0xff]   ;;  %v5574_v57 = vld [vmem:[#allocation3 + $0xc] ss:$16 sps:$4 sm:$0xff]  }
 0x29b   :  { %v3151_v2 = vpop.f32.mrf.mxu1  ;;  %v3156_v15 = vmax.f32 %v3149_v14, 0.0  ;;  %v3159_v47 = vpack.c.bf16 %v3155_v22, %v3155_v22  ;;  %v5547_v14 = vld [vmem:[#allocation3 + $0x240] ss:$16 sps:$4 sm:$0xff]   ;;  %v5550_v22 = vld [vmem:[#allocation3 + $0xcc] ss:$16 sps:$4 sm:$0xff]  }
 0x29c   :  { %v5551_v2 = vld [vmem:[#allocation3 + $0x220] ss:$16 sps:$4 sm:$0xff]  }
 0x29d   :  { %v3160_v12 = vpack.c.bf16 %v3156_v15, %v3156_v15  ;;  %3814 = vmatpush2.bf16.msra.mxu0 %v5525_v27  ;;  %v5552_v15 = vld [vmem:[#allocation3 + $0x204] ss:$16 sps:$4 sm:$0xff]  }
 0x29e   :  { %3815 = vmatprep.subr.bf16.mxu0 %v5526_v28  ;;  %v5556_v27 = vld [vmem:[#allocation3 + $0x3e4] ss:$16 sps:$4 sm:$0xff]   ;;  %v5558_v28 = vld [vmem:[#allocation3 + $0x8c] ss:$16 sps:$4 sm:$0xff]  }
 0x29f   :  { %3431 = vmatprep.mubr.bf16.mxu1 %v3160_v12  ;;  %v5555_v12 = vld [vmem:[#allocation3 + $0x200] ss:$16 sps:$4 sm:$0xff]  }
 0x2a0   :  { %3432 = vmatmul.mubr.bf16.vlgmr.msra.gmra.mxu1 %v3159_v47  ;;  %v5557_v47 = vld [vmem:[#allocation3 + $0xa8] ss:$16 sps:$4 sm:$0xff]  }
 0x2a1   :  { %3671 = vmatpush1.bf16.msra.mxu1 %v5527_v19  ;;  %3702 = vmatprep.mubr.bf16.mxu1 %v6417_v26  ;;  %v5561_v19 = vld [vmem:[#allocation3 + $0x88] ss:$16 sps:$4 sm:$0xff]  }
 0x2a2   :  { %3672 = vmatprep.subr.bf16.mxu1 %v5528_v29  ;;  %3816 = vmatpush2.bf16.msra.mxu0 %v5529_v13  ;;  %v5562_v29 = vld [vmem:[#allocation3 + $0x6c] ss:$16 sps:$4 sm:$0xff]   ;;  %v5563_v13 = vld [vmem:[#allocation3 + $0x3c0] ss:$16 sps:$4 sm:$0xff]  }
 0x2a3   :  { %3817 = vmatprep.subr.bf16.mxu0 %v5530_v32  ;;  %v5564_v32 = vld [vmem:[#allocation3 + $0x3a4] ss:$16 sps:$4 sm:$0xff]  }
 0x2a5   :  { %3673 = vmatpush1.bf16.msra.mxu1 %v5531_v10  ;;  %v5565_v10 = vld [vmem:[#allocation3 + $0x68] ss:$16 sps:$4 sm:$0xff]  }
 0x2a6   :  { %3674 = vmatprep.subr.bf16.mxu1 %v5532_v38  ;;  %3818 = vmatpush2.bf16.msra.mxu0 %v5533_v40  ;;  %v5566_v38 = vld [vmem:[#allocation3 + $0x4c] ss:$16 sps:$4 sm:$0xff]   ;;  %v5567_v40 = vld [vmem:[#allocation3 + $0x3a0] ss:$16 sps:$4 sm:$0xff]  }
 0x2a7   :  { %3819 = vmatprep.subr.bf16.mxu0 %v5534_v42  ;;  %v5568_v42 = vld [vmem:[#allocation3 + $0x384] ss:$16 sps:$4 sm:$0xff]  }
 0x2a9   :  { %3675 = vmatpush1.bf16.msra.mxu1 %v5535_v44  ;;  %v5569_v44 = vld [vmem:[#allocation3 + $0x48] ss:$16 sps:$4 sm:$0xff]  }
 0x2aa   :  { %3676 = vmatprep.subr.bf16.mxu1 %v5536_v49  ;;  %3820 = vmatpush2.bf16.msra.mxu0 %v5537_v23  ;;  %v5570_v49 = vld [vmem:[#allocation3 + $0x2c] ss:$16 sps:$4 sm:$0xff]   ;;  %v5571_v23 = vld [vmem:[#allocation3 + $0x380] ss:$16 sps:$4 sm:$0xff]  }
 0x2ab   :  { %3821 = vmatprep.subr.bf16.mxu0 %v5538_v53  ;;  %v5572_v53 = vld [vmem:[#allocation3 + $0x364] ss:$16 sps:$4 sm:$0xff]  }
 0x2ad   :  { %3677 = vmatpush1.bf16.msra.mxu1 %v5539_v18  ;;  %v5573_v18 = vld [vmem:[#allocation3 + $0x28] ss:$16 sps:$4 sm:$0xff]  }
 0x2ae   :  { %3678 = vmatprep.subr.bf16.mxu1 %v5540_v59  ;;  %3822 = vmatpush2.bf16.msra.mxu0 %v5541_v8  ;;  %v5575_v59 = vld [vmem:[#allocation3 + $0x360] ss:$16 sps:$4 sm:$0xff]   ;;  %v5576_v8 = vld [vmem:[#allocation3 + $0x344] ss:$16 sps:$4 sm:$0xff]  }
 0x2af   :  { %3823 = vmatprep.subr.bf16.mxu0 %v5542_v11  ;;  %v5577_v11 = vld [vmem:[#allocation3 + $0x8] ss:$16 sps:$4 sm:$0xff]  }
 0x2b1   :  { %3679 = vmatpush1.bf16.msra.mxu1 %v5543_v63  ;;  %v5578_v63 = vld [vmem:[#allocation3 + $0x1ec] ss:$16 sps:$4 sm:$0xff]  }
 0x2b2   :  { %3680 = vmatprep.subr.bf16.mxu1 %v5544_v5  ;;  %3824 = vmatpush2.bf16.msra.mxu0 %v5545_v34  ;;  %v5579_v5 = vld [vmem:[#allocation3 + $0x340] ss:$16 sps:$4 sm:$0xff]   ;;  %v5580_v34 = vld [vmem:[#allocation3 + $0x324] ss:$16 sps:$4 sm:$0xff]  }
 0x2b3   :  { %3875 = vmatprep.subr.bf16.mxu0 %v5546_v33  ;;  %v5581_v33 = vld [vmem:[#allocation3 + $0x1e8] ss:$16 sps:$4 sm:$0xff]  }
 0x2b4   :  { %v4699_v9 = vpop.f32.mrf.mxu0 }
 0x2b5   :  { %3681 = vmatpush1.bf16.msra.mxu1 %v5547_v14  ;;  %3826 = vmatmul.mubr.bf16.vlgmr.msra.gmra.mxu0 %v6423_v1  ;;  %v5429_v14 = vld [vmem:[#allocation12 + $0x14] ss:$24 sps:$4 sm:$0xff]  }
 0x2b6   :  { %v4700_v45 = vpop.f32.mrf.mxu0  ;;  %3682 = vmatprep.subr.bf16.mxu1 %v5548_v46  ;;  %3876 = vmatpush1.bf16.msra.mxu0 %v5549_v50  ;;  %v5583_v46 = vld [vmem:[#allocation3 + $0x320] ss:$16 sps:$4 sm:$0xff]   ;;  %v3568_v50 = vcombine.high %v6406_v7, %v6409_v36 }
 0x2b7   :  { %v6426_v21 = vadd.f32 %v4700_v45, %v4699_v9  ;;  %3877 = vmatprep.subr.bf16.mxu0 %v5550_v22  ;;  %3907 = vmatprep.mubr.bf16.mxu0 %v6368_v61  ;;  %v5560_v61 = vld [vmem:[#allocation3 + $0x3c4] ss:$16 sps:$4 sm:$0xff]   ;;  %v5582_v9 = vld [vmem:[#allocation3 + $0x1cc] ss:$16 sps:$4 sm:$0xff]   ;;  %v6432_v22 = vrot.slane %v5429_v14, %v6108_v54  ;;  %v5587_v7 = vld [vmem:[#allocation3 + $0x300] ss:$16 sps:$4 sm:$0xff]  }
 0x2b8   :  { %v4702_v0 = vpop.f32.mrf.mxu0  ;;  %v5430_v45 = vld [vmem:[#allocation12 + $0x44] ss:$24 sps:$4 sm:$0xff]   ;;  %v6445_v36 = vpack.c.bf16 %v3568_v50, %v3568_v50 }
 0x2b9   :  { %3683 = vmatpush1.bf16.msra.mxu1 %v5551_v2  ;;  %v6435_v0 = vrot.slane %v5430_v45, %v6108_v54  ;;  %v5584_v2 = vld [vmem:[#allocation3 + $0x304] ss:$16 sps:$4 sm:$0xff]   ;;  %v5618_v14 = vld [vmem:[#allocation3 + $0x4ac] ss:$16 sps:$4 sm:$0xff]   ;;  %v5619_v45 = vld [vmem:[#allocation3 + $0x600] ss:$16 sps:$4 sm:$0xff]  }
 0x2ba   :  { %v4703_v25 = vpop.f32.mrf.mxu0  ;;  %3684 = vmatprep.subr.bf16.mxu1 %v5552_v15  ;;  %3878 = vmatpush1.bf16.msra.mxu0 %v5553_v16  ;;  %v5586_v15 = vld [vmem:[#allocation3 + $0x1ac] ss:$16 sps:$4 sm:$0xff]   ;;  %v6439_v16 = vpack.c.bf16 %v6391_v62, %v6391_v62  ;;  %v5588_v54 = vld [vmem:[#allocation3 + $0x6e4] ss:$16 sps:$4 sm:$0xff]  }
 0x2bb   :  { %3879 = vmatprep.subr.bf16.mxu0 %v5554_v20  ;;  %v5585_v25 = vld [vmem:[#allocation3 + $0x1c8] ss:$16 sps:$4 sm:$0xff]   ;;  %v6443_v20 = vcombine.low %v6432_v22, %v6435_v0  ;;  %v5592_v62 = vld [vmem:[#allocation3 + $0x6c4] ss:$16 sps:$4 sm:$0xff]   ;;  %v5622_v50 = vld [vmem:[#allocation3 + $0x48c] ss:$16 sps:$4 sm:$0xff]  }
 0x2bd   :  { %3685 = vmatpush1.bf16.msra.mxu1 %v5555_v12  ;;  %v5589_v12 = vld [vmem:[#allocation3 + $0x1a8] ss:$16 sps:$4 sm:$0xff]  }
 0x2be   :  { %3686 = vmatprep.subr.bf16.mxu1 %v5556_v27  ;;  %3880 = vmatpush1.bf16.msra.mxu0 %v5557_v47  ;;  %v5590_v27 = vld [vmem:[#allocation3 + $0x18c] ss:$16 sps:$4 sm:$0xff]   ;;  %v5591_v47 = vld [vmem:[#allocation3 + $0x6e0] ss:$16 sps:$4 sm:$0xff]  }
 0x2bf   :  { %3881 = vmatprep.subr.bf16.mxu0 %v5558_v28  ;;  %v5593_v28 = vld [vmem:[#allocation3 + $0x188] ss:$16 sps:$4 sm:$0xff]  }
 0x2c1   :  { %3687 = vmatpush2.bf16.msra.mxu1 %v5559_v30  ;;  %v5594_v30 = vld [vmem:[#allocation3 + $0x16c] ss:$16 sps:$4 sm:$0xff]  }
 0x2c2   :  { %3688 = vmatprep.subr.bf16.mxu1 %v5560_v61  ;;  %3882 = vmatpush1.bf16.msra.mxu0 %v5561_v19  ;;  %v5595_v61 = vld [vmem:[#allocation3 + $0x6c0] ss:$16 sps:$4 sm:$0xff]   ;;  %v5596_v19 = vld [vmem:[#allocation3 + $0x6a4] ss:$16 sps:$4 sm:$0xff]  }
 0x2c3   :  { %3883 = vmatprep.subr.bf16.mxu0 %v5562_v29  ;;  %v5597_v29 = vld [vmem:[#allocation3 + $0x168] ss:$16 sps:$4 sm:$0xff]  }
 0x2c5   :  { %3689 = vmatpush2.bf16.msra.mxu1 %v5563_v13  ;;  %v5598_v13 = vld [vmem:[#allocation3 + $0x14c] ss:$16 sps:$4 sm:$0xff]  }
 0x2c6   :  { %3690 = vmatprep.subr.bf16.mxu1 %v5564_v32  ;;  %3884 = vmatpush1.bf16.msra.mxu0 %v5565_v10  ;;  %v5599_v32 = vld [vmem:[#allocation3 + $0x6a0] ss:$16 sps:$4 sm:$0xff]   ;;  %v5600_v10 = vld [vmem:[#allocation3 + $0x684] ss:$16 sps:$4 sm:$0xff]  }
 0x2c7   :  { %3885 = vmatprep.subr.bf16.mxu0 %v5566_v38  ;;  %v5601_v38 = vld [vmem:[#allocation3 + $0x148] ss:$16 sps:$4 sm:$0xff]  }
 0x2c9   :  { %3691 = vmatpush2.bf16.msra.mxu1 %v5567_v40  ;;  %v5602_v40 = vld [vmem:[#allocation3 + $0x12c] ss:$16 sps:$4 sm:$0xff]  }
 0x2ca   :  { %3692 = vmatprep.subr.bf16.mxu1 %v5568_v42  ;;  %3886 = vmatpush1.bf16.msra.mxu0 %v5569_v44  ;;  %v5603_v42 = vld [vmem:[#allocation3 + $0x680] ss:$16 sps:$4 sm:$0xff]   ;;  %v5604_v44 = vld [vmem:[#allocation3 + $0x664] ss:$16 sps:$4 sm:$0xff]  }
 0x2cb   :  { %3887 = vmatprep.subr.bf16.mxu0 %v5570_v49  ;;  %v5605_v49 = vld [vmem:[#allocation3 + $0x128] ss:$16 sps:$4 sm:$0xff]  }
 0x2cd   :  { %3693 = vmatpush2.bf16.msra.mxu1 %v5571_v23  ;;  %v5606_v23 = vld [vmem:[#allocation3 + $0x10c] ss:$16 sps:$4 sm:$0xff]  }
 0x2ce   :  { %3694 = vmatprep.subr.bf16.mxu1 %v5572_v53  ;;  %3888 = vmatpush1.bf16.msra.mxu0 %v5573_v18  ;;  %v5607_v53 = vld [vmem:[#allocation3 + $0x660] ss:$16 sps:$4 sm:$0xff]   ;;  %v5608_v18 = vld [vmem:[#allocation3 + $0x644] ss:$16 sps:$4 sm:$0xff]  }
 0x2cf   :  { %3889 = vmatprep.subr.bf16.mxu0 %v5574_v57  ;;  %v5609_v57 = vld [vmem:[#allocation3 + $0x108] ss:$16 sps:$4 sm:$0xff]  }
 0x2d1   :  { %3695 = vmatpush2.bf16.msra.mxu1 %v5575_v59  ;;  %v5610_v59 = vld [vmem:[#allocation3 + $0x4ec] ss:$16 sps:$4 sm:$0xff]  }
 0x2d2   :  { %3696 = vmatprep.subr.bf16.mxu1 %v5576_v8  ;;  %3890 = vmatpush1.bf16.msra.mxu0 %v5577_v11  ;;  %v5611_v8 = vld [vmem:[#allocation3 + $0x640] ss:$16 sps:$4 sm:$0xff]   ;;  %v5612_v11 = vld [vmem:[#allocation3 + $0x624] ss:$16 sps:$4 sm:$0xff]  }
 0x2d3   :  { %3891 = vmatprep.subr.bf16.mxu0 %v5578_v63  ;;  %v5613_v63 = vld [vmem:[#allocation3 + $0x4e8] ss:$16 sps:$4 sm:$0xff]  }
 0x2d5   :  { %3697 = vmatpush2.bf16.msra.mxu1 %v5579_v5  ;;  %v5614_v5 = vld [vmem:[#allocation3 + $0x4cc] ss:$16 sps:$4 sm:$0xff]  }
 0x2d6   :  { %3698 = vmatprep.subr.bf16.mxu1 %v5580_v34  ;;  %3892 = vmatpush2.bf16.msra.mxu0 %v5581_v33  ;;  %v5615_v34 = vld [vmem:[#allocation3 + $0x620] ss:$16 sps:$4 sm:$0xff]   ;;  %v5616_v33 = vld [vmem:[#allocation3 + $0x604] ss:$16 sps:$4 sm:$0xff]  }
 0x2d7   :  { %3893 = vmatprep.subr.bf16.mxu0 %v5582_v9  ;;  %v5617_v9 = vld [vmem:[#allocation3 + $0x4c8] ss:$16 sps:$4 sm:$0xff]  }
 0x2d9   :  { %3699 = vmatpush2.bf16.msra.mxu1 %v5583_v46  ;;  %v5620_v46 = vld [vmem:[#allocation3 + $0x7e4] ss:$16 sps:$4 sm:$0xff]  }
 0x2da   :  { %3700 = vmatprep.subr.bf16.mxu1 %v5584_v2  ;;  %3894 = vmatpush2.bf16.msra.mxu0 %v5585_v25  ;;  %v5623_v2 = vld [vmem:[#allocation3 + $0x7e0] ss:$16 sps:$4 sm:$0xff]   ;;  %v5624_v25 = vld [vmem:[#allocation3 + $0x7c4] ss:$16 sps:$4 sm:$0xff]  }
 0x2db   :  { %3895 = vmatprep.subr.bf16.mxu0 %v5586_v15  ;;  %v5626_v15 = vld [vmem:[#allocation3 + $0x46c] ss:$16 sps:$4 sm:$0xff]  }
 0x2dd   :  { %3701 = vmatpush2.bf16.msra.mxu1 %v5587_v7  ;;  %v5627_v7 = vld [vmem:[#allocation3 + $0x7c0] ss:$16 sps:$4 sm:$0xff]  }
 0x2de   :  { %3752 = vmatprep.subr.bf16.mxu1 %v5588_v54  ;;  %3896 = vmatpush2.bf16.msra.mxu0 %v5589_v12  ;;  %v5628_v54 = vld [vmem:[#allocation3 + $0x7a4] ss:$16 sps:$4 sm:$0xff]   ;;  %v5629_v12 = vld [vmem:[#allocation3 + $0x468] ss:$16 sps:$4 sm:$0xff]  }
 0x2df   :  { %3897 = vmatprep.subr.bf16.mxu0 %v5590_v27  ;;  %v5630_v27 = vld [vmem:[#allocation3 + $0x44c] ss:$16 sps:$4 sm:$0xff]  }
 0x2e0   :  { %3703 = vmatmul.mubr.bf16.vlgmr.msra.gmra.mxu1 %v6439_v16 }
 0x2e1   :  { %3753 = vmatpush1.bf16.msra.mxu1 %v5591_v47  ;;  %3784 = vmatprep.mubr.bf16.mxu1 %v6445_v36  ;;  %v5631_v47 = vld [vmem:[#allocation3 + $0x7a0] ss:$16 sps:$4 sm:$0xff]  }
 0x2e2   :  { %3754 = vmatprep.subr.bf16.mxu1 %v5592_v62  ;;  %3898 = vmatpush2.bf16.msra.mxu0 %v5593_v28  ;;  %v5632_v62 = vld [vmem:[#allocation3 + $0x784] ss:$16 sps:$4 sm:$0xff]   ;;  %v5633_v28 = vld [vmem:[#allocation3 + $0x448] ss:$16 sps:$4 sm:$0xff]  }
 0x2e3   :  { %3899 = vmatprep.subr.bf16.mxu0 %v5594_v30  ;;  %v5634_v30 = vld [vmem:[#allocation3 + $0x42c] ss:$16 sps:$4 sm:$0xff]  }
 0x2e5   :  { %3755 = vmatpush1.bf16.msra.mxu1 %v5595_v61  ;;  %v5635_v61 = vld [vmem:[#allocation3 + $0x780] ss:$16 sps:$4 sm:$0xff]  }
 0x2e6   :  { %3756 = vmatprep.subr.bf16.mxu1 %v5596_v19  ;;  %3900 = vmatpush2.bf16.msra.mxu0 %v5597_v29  ;;  %v5636_v19 = vld [vmem:[#allocation3 + $0x764] ss:$16 sps:$4 sm:$0xff]   ;;  %v5637_v29 = vld [vmem:[#allocation3 + $0x428] ss:$16 sps:$4 sm:$0xff]  }
 0x2e7   :  { %3901 = vmatprep.subr.bf16.mxu0 %v5598_v13  ;;  %v5638_v13 = vld [vmem:[#allocation3 + $0x40c] ss:$16 sps:$4 sm:$0xff]  }
 0x2e9   :  { %3757 = vmatpush1.bf16.msra.mxu1 %v5599_v32  ;;  %v5639_v32 = vld [vmem:[#allocation3 + $0x760] ss:$16 sps:$4 sm:$0xff]  }
 0x2ea   :  { %3758 = vmatprep.subr.bf16.mxu1 %v5600_v10  ;;  %3902 = vmatpush2.bf16.msra.mxu0 %v5601_v38  ;;  %v5640_v10 = vld [vmem:[#allocation3 + $0x744] ss:$16 sps:$4 sm:$0xff]   ;;  %v5641_v38 = vld [vmem:[#allocation3 + $0x408] ss:$16 sps:$4 sm:$0xff]  }
 0x2eb   :  { %3903 = vmatprep.subr.bf16.mxu0 %v5602_v40  ;;  %v5642_v40 = vld [vmem:[#allocation3 + $0x5ec] ss:$16 sps:$4 sm:$0xff]  }
 0x2ed   :  { %3759 = vmatpush1.bf16.msra.mxu1 %v5603_v42  ;;  %v5643_v42 = vld [vmem:[#allocation3 + $0x740] ss:$16 sps:$4 sm:$0xff]  }
 0x2ee   :  { %3760 = vmatprep.subr.bf16.mxu1 %v5604_v44  ;;  %3904 = vmatpush2.bf16.msra.mxu0 %v5605_v49  ;;  %v5644_v44 = vld [vmem:[#allocation3 + $0x724] ss:$16 sps:$4 sm:$0xff]   ;;  %v5645_v49 = vld [vmem:[#allocation3 + $0x5e8] ss:$16 sps:$4 sm:$0xff]  }
 0x2ef   :  { %3905 = vmatprep.subr.bf16.mxu0 %v5606_v23 }
 0x2f1   :  { %3761 = vmatpush1.bf16.msra.mxu1 %v5607_v53  ;;  %v5646_v53 = vld [vmem:[#allocation3 + $0x5cc] ss:$16 sps:$4 sm:$0xff]  }
 0x2f2   :  { %3762 = vmatprep.subr.bf16.mxu1 %v5608_v18  ;;  %3906 = vmatpush2.bf16.msra.mxu0 %v5609_v57  ;;  %v5647_v18 = vld [vmem:[#allocation3 + $0x720] ss:$16 sps:$4 sm:$0xff]   ;;  %v3604_v57 = vcombine.high %v6432_v22, %v6435_v0  ;;  %v5653_v22 = vld [vmem:[#allocation3 + $0x5a8] ss:$16 sps:$4 sm:$0xff]   ;;  %v5654_v0 = vld [vmem:[#allocation3 + $0x58c] ss:$16 sps:$4 sm:$0xff]  }
 0x2f3   :  { %3957 = vmatprep.subr.bf16.mxu0 %v5610_v59 }
 0x2f4   :  { %v6451_v23 = vpop.f32.mrf.mxu0 }
 0x2f5   :  { %3763 = vmatpush1.bf16.msra.mxu1 %v5611_v8  ;;  %3908 = vmatmul.mubr.bf16.vlgmr.msra.gmra.mxu0 %v6371_v17  ;;  %v5621_v17 = vld [vmem:[#allocation3 + $0x4a8] ss:$16 sps:$4 sm:$0xff]   ;;  %v5648_v8 = vld [vmem:[#allocation3 + $0x704] ss:$16 sps:$4 sm:$0xff]  }
 0x2f6   :  { %3764 = vmatprep.subr.bf16.mxu1 %v5612_v11  ;;  %3958 = vmatpush1.bf16.msra.mxu0 %v5613_v63  ;;  %v6455_v59 = vpop.f32.mrf.mxu0  ;;  %v5649_v11 = vld [vmem:[#allocation3 + $0x5c8] ss:$16 sps:$4 sm:$0xff]   ;;  %v5650_v63 = vld [vmem:[#allocation3 + $0x5ac] ss:$16 sps:$4 sm:$0xff]  }
 0x2f7   :  { %3959 = vmatprep.subr.bf16.mxu0 %v5614_v5  ;;  %3989 = vmatprep.mubr.bf16.mxu0 %v6393_v6  ;;  %v5625_v6 = vld [vmem:[#allocation3 + $0x488] ss:$16 sps:$4 sm:$0xff]  }
 0x2f8   :  { %v3667_v5 = vpop.f32.mrf.mxu0 }
 0x2f9   :  { %3765 = vmatpush1.bf16.msra.mxu1 %v5615_v34  ;;  %v6459_v34 = vpack.c.bf16 %v6414_v52, %v6414_v52  ;;  %v5657_v52 = vld [vmem:[#allocation3 + $0x588] ss:$16 sps:$4 sm:$0xff]  }
 0x2fa   :  { %3766 = vmatprep.subr.bf16.mxu1 %v5616_v33  ;;  %3960 = vmatpush1.bf16.msra.mxu0 %v5617_v9  ;;  %v5651_v33 = vld [vmem:[#allocation3 + $0x700] ss:$16 sps:$4 sm:$0xff]   ;;  %v6461_v9 = vpack.c.bf16 %v3604_v57, %v3604_v57  ;;  %v5681_v57 = vld [vmem:[#allocation3 + $0x8c8] ss:$16 sps:$4 sm:$0xff]  }
 0x2fb   :  { %3961 = vmatprep.subr.bf16.mxu0 %v5618_v14  ;;  %v3668_v14 = vpop.f32.mrf.mxu0  ;;  %v5685_v5 = vld [vmem:[#allocation3 + $0x8a8] ss:$16 sps:$4 sm:$0xff]  }
 0x2fc   :  { %v5687_v14 = vld [vmem:[#allocation3 + $0xbe0] ss:$16 sps:$4 sm:$0xff]  }
 0x2fd   :  { %3767 = vmatpush1.bf16.msra.mxu1 %v5619_v45  ;;  %v5652_v45 = vld [vmem:[#allocation3 + $0xae4] ss:$16 sps:$4 sm:$0xff]  }
 0x2fe   :  { %3768 = vmatprep.subr.bf16.mxu1 %v5620_v46  ;;  %3962 = vmatpush1.bf16.msra.mxu0 %v5621_v17  ;;  %v5655_v46 = vld [vmem:[#allocation3 + $0xae0] ss:$16 sps:$4 sm:$0xff]   ;;  %v5656_v17 = vld [vmem:[#allocation3 + $0xac4] ss:$16 sps:$4 sm:$0xff]  }
 0x2ff   :  { %3963 = vmatprep.subr.bf16.mxu0 %v5622_v50  ;;  %v5658_v50 = vld [vmem:[#allocation3 + $0x56c] ss:$16 sps:$4 sm:$0xff]  }
 0x301   :  { %3769 = vmatpush2.bf16.msra.mxu1 %v5623_v2  ;;  %v5659_v2 = vld [vmem:[#allocation3 + $0xac0] ss:$16 sps:$4 sm:$0xff]  }
 0x302   :  { %3770 = vmatprep.subr.bf16.mxu1 %v5624_v25  ;;  %3964 = vmatpush1.bf16.msra.mxu0 %v5625_v6  ;;  %v5660_v25 = vld [vmem:[#allocation3 + $0xaa4] ss:$16 sps:$4 sm:$0xff]   ;;  %v5661_v6 = vld [vmem:[#allocation3 + $0x568] ss:$16 sps:$4 sm:$0xff]  }
 0x303   :  { %3965 = vmatprep.subr.bf16.mxu0 %v5626_v15  ;;  %v5662_v15 = vld [vmem:[#allocation3 + $0x54c] ss:$16 sps:$4 sm:$0xff]  }
 0x305   :  { %3771 = vmatpush2.bf16.msra.mxu1 %v5627_v7  ;;  %v5663_v7 = vld [vmem:[#allocation3 + $0xaa0] ss:$16 sps:$4 sm:$0xff]  }
 0x306   :  { %3772 = vmatprep.subr.bf16.mxu1 %v5628_v54  ;;  %3966 = vmatpush1.bf16.msra.mxu0 %v5629_v12  ;;  %v5664_v54 = vld [vmem:[#allocation3 + $0xa84] ss:$16 sps:$4 sm:$0xff]   ;;  %v5665_v12 = vld [vmem:[#allocation3 + $0x548] ss:$16 sps:$4 sm:$0xff]  }
 0x307   :  { %3967 = vmatprep.subr.bf16.mxu0 %v5630_v27  ;;  %v5666_v27 = vld [vmem:[#allocation3 + $0x52c] ss:$16 sps:$4 sm:$0xff]  }
 0x309   :  { %3773 = vmatpush2.bf16.msra.mxu1 %v5631_v47  ;;  %v5667_v47 = vld [vmem:[#allocation3 + $0xa80] ss:$16 sps:$4 sm:$0xff]  }
 0x30a   :  { %3774 = vmatprep.subr.bf16.mxu1 %v5632_v62  ;;  %3968 = vmatpush1.bf16.msra.mxu0 %v5633_v28  ;;  %v5668_v62 = vld [vmem:[#allocation3 + $0xa64] ss:$16 sps:$4 sm:$0xff]   ;;  %v5669_v28 = vld [vmem:[#allocation3 + $0x528] ss:$16 sps:$4 sm:$0xff]  }
 0x30b   :  { %3969 = vmatprep.subr.bf16.mxu0 %v5634_v30  ;;  %v5670_v30 = vld [vmem:[#allocation3 + $0x50c] ss:$16 sps:$4 sm:$0xff]  }
 0x30d   :  { %3775 = vmatpush2.bf16.msra.mxu1 %v5635_v61  ;;  %v5671_v61 = vld [vmem:[#allocation3 + $0xa60] ss:$16 sps:$4 sm:$0xff]  }
 0x30e   :  { %3776 = vmatprep.subr.bf16.mxu1 %v5636_v19  ;;  %3970 = vmatpush1.bf16.msra.mxu0 %v5637_v29  ;;  %v5672_v19 = vld [vmem:[#allocation3 + $0xa44] ss:$16 sps:$4 sm:$0xff]   ;;  %v5673_v29 = vld [vmem:[#allocation3 + $0x508] ss:$16 sps:$4 sm:$0xff]  }
 0x30f   :  { %3971 = vmatprep.subr.bf16.mxu0 %v5638_v13  ;;  %v5674_v13 = vld [vmem:[#allocation3 + $0x8ec] ss:$16 sps:$4 sm:$0xff]  }
 0x311   :  { %3777 = vmatpush2.bf16.msra.mxu1 %v5639_v32 }
 0x312   :  { %3778 = vmatprep.subr.bf16.mxu1 %v5640_v10  ;;  %3972 = vmatpush1.bf16.msra.mxu0 %v5641_v38  ;;  %v5675_v10 = vld [vmem:[#allocation3 + $0xa40] ss:$16 sps:$4 sm:$0xff]   ;;  %v5676_v38 = vld [vmem:[#allocation3 + $0xa24] ss:$16 sps:$4 sm:$0xff]  }
 0x313   :  { %3973 = vmatprep.subr.bf16.mxu0 %v5642_v40  ;;  %v5677_v40 = vld [vmem:[#allocation3 + $0x8e8] ss:$16 sps:$4 sm:$0xff]  }
 0x315   :  { %3779 = vmatpush2.bf16.msra.mxu1 %v5643_v42 }
 0x316   :  { %3780 = vmatprep.subr.bf16.mxu1 %v5644_v44  ;;  %3974 = vmatpush2.bf16.msra.mxu0 %v5645_v49  ;;  %v5678_v44 = vld [vmem:[#allocation3 + $0x8cc] ss:$16 sps:$4 sm:$0xff]  }
 0x317   :  { %3975 = vmatprep.subr.bf16.mxu0 %v5646_v53  ;;  %v5679_v53 = vld [vmem:[#allocation3 + $0xa20] ss:$16 sps:$4 sm:$0xff]  }
 0x319   :  { %3781 = vmatpush2.bf16.msra.mxu1 %v5647_v18  ;;  %v5680_v18 = vld [vmem:[#allocation3 + $0xa04] ss:$16 sps:$4 sm:$0xff]  }
 0x31a   :  { %3782 = vmatprep.subr.bf16.mxu1 %v5648_v8  ;;  %3976 = vmatpush2.bf16.msra.mxu0 %v5649_v11  ;;  %v5682_v11 = vld [vmem:[#allocation3 + $0x8ac] ss:$16 sps:$4 sm:$0xff]  }
 0x31b   :  { %3977 = vmatprep.subr.bf16.mxu0 %v5650_v63  ;;  %v5684_v63 = vld [vmem:[#allocation3 + $0xbe4] ss:$16 sps:$4 sm:$0xff]  }
 0x31d   :  { %3783 = vmatpush2.bf16.msra.mxu1 %v5651_v33  ;;  %v5686_v33 = vld [vmem:[#allocation3 + $0x88c] ss:$16 sps:$4 sm:$0xff]  }
 0x31e   :  { %3834 = vmatprep.subr.bf16.mxu1 %v5652_v45  ;;  %3978 = vmatpush2.bf16.msra.mxu0 %v5653_v22  ;;  %v5689_v45 = vld [vmem:[#allocation3 + $0x888] ss:$16 sps:$4 sm:$0xff]   ;;  %v5690_v22 = vld [vmem:[#allocation3 + $0x86c] ss:$16 sps:$4 sm:$0xff]  }
 0x31f   :  { %3979 = vmatprep.subr.bf16.mxu0 %v5654_v0  ;;  %v5691_v0 = vld [vmem:[#allocation3 + $0xbc0] ss:$16 sps:$4 sm:$0xff]  }
 0x320   :  { %3785 = vmatmul.mubr.bf16.vlgmr.msra.gmra.mxu1 %v6459_v34 }
 0x321   :  { %3835 = vmatpush1.bf16.msra.mxu1 %v5655_v46  ;;  %3866 = vmatprep.mubr.bf16.mxu1 %v6461_v9  ;;  %v5692_v46 = vld [vmem:[#allocation3 + $0xba4] ss:$16 sps:$4 sm:$0xff]  }
 0x322   :  { %3836 = vmatprep.subr.bf16.mxu1 %v5656_v17  ;;  %3980 = vmatpush2.bf16.msra.mxu0 %v5657_v52  ;;  %v5693_v17 = vld [vmem:[#allocation3 + $0x868] ss:$16 sps:$4 sm:$0xff]   ;;  %v5694_v52 = vld [vmem:[#allocation3 + $0x84c] ss:$16 sps:$4 sm:$0xff]  }
 0x323   :  { %3981 = vmatprep.subr.bf16.mxu0 %v5658_v50  ;;  %v5695_v50 = vld [vmem:[#allocation3 + $0xba0] ss:$16 sps:$4 sm:$0xff]  }
 0x325   :  { %3837 = vmatpush1.bf16.msra.mxu1 %v5659_v2  ;;  %v5696_v2 = vld [vmem:[#allocation3 + $0xb84] ss:$16 sps:$4 sm:$0xff]  }
 0x326   :  { %3838 = vmatprep.subr.bf16.mxu1 %v5660_v25  ;;  %3982 = vmatpush2.bf16.msra.mxu0 %v5661_v6  ;;  %v5697_v25 = vld [vmem:[#allocation3 + $0x848] ss:$16 sps:$4 sm:$0xff]   ;;  %v5698_v6 = vld [vmem:[#allocation3 + $0x82c] ss:$16 sps:$4 sm:$0xff]  }
 0x327   :  { %3983 = vmatprep.subr.bf16.mxu0 %v5662_v15  ;;  %v5699_v15 = vld [vmem:[#allocation3 + $0xb80] ss:$16 sps:$4 sm:$0xff]  }
 0x329   :  { %3839 = vmatpush1.bf16.msra.mxu1 %v5663_v7  ;;  %v5700_v7 = vld [vmem:[#allocation3 + $0xb64] ss:$16 sps:$4 sm:$0xff]  }
 0x32a   :  { %3840 = vmatprep.subr.bf16.mxu1 %v5664_v54  ;;  %3984 = vmatpush2.bf16.msra.mxu0 %v5665_v12  ;;  %v5701_v54 = vld [vmem:[#allocation3 + $0x828] ss:$16 sps:$4 sm:$0xff]   ;;  %v5702_v12 = vld [vmem:[#allocation3 + $0x80c] ss:$16 sps:$4 sm:$0xff]  }
 0x32b   :  { %3985 = vmatprep.subr.bf16.mxu0 %v5666_v27  ;;  %v5703_v27 = vld [vmem:[#allocation3 + $0xb60] ss:$16 sps:$4 sm:$0xff]  }
 0x32d   :  { %3841 = vmatpush1.bf16.msra.mxu1 %v5667_v47  ;;  %v5704_v47 = vld [vmem:[#allocation3 + $0xb44] ss:$16 sps:$4 sm:$0xff]  }
 0x32e   :  { %3842 = vmatprep.subr.bf16.mxu1 %v5668_v62  ;;  %3986 = vmatpush2.bf16.msra.mxu0 %v5669_v28  ;;  %v5705_v62 = vld [vmem:[#allocation3 + $0x808] ss:$16 sps:$4 sm:$0xff]   ;;  %v5706_v28 = vld [vmem:[#allocation3 + $0x9ec] ss:$16 sps:$4 sm:$0xff]  }
 0x32f   :  { %3987 = vmatprep.subr.bf16.mxu0 %v5670_v30  ;;  %v5707_v30 = vld [vmem:[#allocation3 + $0xb40] ss:$16 sps:$4 sm:$0xff]  }
 0x331   :  { %3843 = vmatpush1.bf16.msra.mxu1 %v5671_v61  ;;  %v5708_v61 = vld [vmem:[#allocation3 + $0xb24] ss:$16 sps:$4 sm:$0xff]  }
 0x332   :  { %3844 = vmatprep.subr.bf16.mxu1 %v5672_v19  ;;  %3988 = vmatpush2.bf16.msra.mxu0 %v5673_v29  ;;  %v5709_v19 = vld [vmem:[#allocation3 + $0x9e8] ss:$16 sps:$4 sm:$0xff]   ;;  %v5710_v29 = vld [vmem:[#allocation3 + $0x9cc] ss:$16 sps:$4 sm:$0xff]  }
 0x333   :  { %4039 = vmatprep.subr.bf16.mxu0 %v5674_v13  ;;  %v5711_v13 = vld [vmem:[#allocation3 + $0xb20] ss:$16 sps:$4 sm:$0xff]  }
 0x334   :  { %v6465_v32 = vpop.f32.mrf.mxu0 }
 0x335   :  { %3845 = vmatpush1.bf16.msra.mxu1 %v5675_v10  ;;  %3990 = vmatmul.mubr.bf16.vlgmr.msra.gmra.mxu0 %v6396_v3  ;;  %v5683_v3 = vld [vmem:[#allocation3 + $0xa00] ss:$16 sps:$4 sm:$0xff]   ;;  %v5712_v10 = vld [vmem:[#allocation3 + $0xb04] ss:$16 sps:$4 sm:$0xff]  }
 0x336   :  { %3846 = vmatprep.subr.bf16.mxu1 %v5676_v38  ;;  %4040 = vmatpush1.bf16.msra.mxu0 %v5677_v40  ;;  %v6468_v42 = vpop.f32.mrf.mxu0  ;;  %v5713_v38 = vld [vmem:[#allocation3 + $0x9c8] ss:$16 sps:$4 sm:$0xff]   ;;  %v5714_v40 = vld [vmem:[#allocation3 + $0x9ac] ss:$16 sps:$4 sm:$0xff]  }
 0x337   :  { %4041 = vmatprep.subr.bf16.mxu0 %v5678_v44  ;;  %4071 = vmatprep.mubr.bf16.mxu0 %v6419_v31  ;;  %v5688_v31 = vld [vmem:[#allocation3 + $0xbc4] ss:$16 sps:$4 sm:$0xff]   ;;  %v6473_v44 = vpack.c.bf16 %v6443_v20, %v6443_v20  ;;  %v5720_v20 = vld [vmem:[#allocation3 + $0x2cc] ss:$16 sps:$4 sm:$0xff]  }
 0x338   :  { %v3749_v49 = vpop.f32.mrf.mxu0 }
 0x339   :  { %3847 = vmatpush1.bf16.msra.mxu1 %v5679_v53  ;;  %v5715_v49 = vld [vmem:[#allocation3 + $0xb00] ss:$16 sps:$4 sm:$0xff]   ;;  %v5716_v53 = vld [vmem:[#allocation3 + $0x2ec] ss:$16 sps:$4 sm:$0xff]  }
 0x33a   :  { %3848 = vmatprep.subr.bf16.mxu1 %v5680_v18  ;;  %4042 = vmatpush1.bf16.msra.mxu0 %v5681_v57  ;;  %v3750_v8 = vpop.f32.mrf.mxu0  ;;  %v5717_v18 = vld [vmem:[#allocation3 + $0x9a8] ss:$16 sps:$4 sm:$0xff]   ;;  %v5718_v57 = vld [vmem:[#allocation3 + $0x98c] ss:$16 sps:$4 sm:$0xff]  }
 0x33b   :  { %4043 = vmatprep.subr.bf16.mxu0 %v5682_v11  ;;  %v6475_v8 = vld [vmem:[#allocation8] ss:$0 sm:$0xff] }
 0x33d   :  { %3849 = vmatpush1.bf16.msra.mxu1 %v5683_v3  ;;  %v5719_v3 = vld [vmem:[#allocation3 + $0x2e8] ss:$16 sps:$4 sm:$0xff]  }
 0x33e   :  { %3850 = vmatprep.subr.bf16.mxu1 %v5684_v63  ;;  %4044 = vmatpush1.bf16.msra.mxu0 %v5685_v5  ;;  %v5721_v5 = vld [vmem:[#allocation3 + $0x988] ss:$16 sps:$4 sm:$0xff]  }
 0x33f   :  { %4045 = vmatprep.subr.bf16.mxu0 %v5686_v33  ;;  %v3394_v33 = vadd.f32 %v6426_v21, %v6475_v8 }
 0x341   :  { %3851 = vmatpush2.bf16.msra.mxu1 %v5687_v14 }
 0x342   :  { %3852 = vmatprep.subr.bf16.mxu1 %v5688_v31  ;;  %4046 = vmatpush1.bf16.msra.mxu0 %v5689_v45  ;;  %v5722_v31 = vld [vmem:[#allocation3 + $0x96c] ss:$16 sps:$4 sm:$0xff]  }
 0x343   :  { %4047 = vmatprep.subr.bf16.mxu0 %v5690_v22 }
 0x345   :  { %3853 = vmatpush2.bf16.msra.mxu1 %v5691_v0  ;;  %v5723_v0 = vld [vmem:[#allocation3 + $0x2c8] ss:$16 sps:$4 sm:$0xff]  }
 0x346   :  { %3854 = vmatprep.subr.bf16.mxu1 %v5692_v46  ;;  %4048 = vmatpush1.bf16.msra.mxu0 %v5693_v17  ;;  %v5724_v17 = vld [vmem:[#allocation3 + $0x2ac] ss:$16 sps:$4 sm:$0xff]  }
 0x347   :  { %4049 = vmatprep.subr.bf16.mxu0 %v5694_v52  ;;  %v6481_v52 = vld [vmem:[#allocation9] ss:$0 sm:$0xff] }
 0x349   :  { %3855 = vmatpush2.bf16.msra.mxu1 %v5695_v50 }
 0x34a   :  { %3856 = vmatprep.subr.bf16.mxu1 %v5696_v2  ;;  %4050 = vmatpush1.bf16.msra.mxu0 %v5697_v25  ;;  %v5726_v2 = vld [vmem:[#allocation3 + $0x94c] ss:$16 sps:$4 sm:$0xff]   ;;  %v5727_v25 = vld [vmem:[#allocation3 + $0x2a8] ss:$16 sps:$4 sm:$0xff]  }
 0x34b   :  { %4051 = vmatprep.subr.bf16.mxu0 %v5698_v6  ;;  %v5728_v6 = vld [vmem:[#allocation3 + $0x28c] ss:$16 sps:$4 sm:$0xff]  }
 0x34d   :  { %3857 = vmatpush2.bf16.msra.mxu1 %v5699_v15  ;;  %v5729_v15 = vld [vmem:[#allocation3 + $0x948] ss:$16 sps:$4 sm:$0xff]  }
 0x34e   :  { %3858 = vmatprep.subr.bf16.mxu1 %v5700_v7  ;;  %4052 = vmatpush1.bf16.msra.mxu0 %v5701_v54  ;;  %v5730_v54 = vld [vmem:[#allocation3 + $0x92c] ss:$16 sps:$4 sm:$0xff]  }
 0x34f   :  { %4053 = vmatprep.subr.bf16.mxu0 %v5702_v12  ;;  %v5731_v12 = vld [vmem:[#allocation3 + $0x288] ss:$16 sps:$4 sm:$0xff]  }
 0x351   :  { %3859 = vmatpush2.bf16.msra.mxu1 %v5703_v27  ;;  %v5732_v27 = vld [vmem:[#allocation3 + $0x26c] ss:$16 sps:$4 sm:$0xff]  }
 0x352   :  { %3860 = vmatprep.subr.bf16.mxu1 %v5704_v47  ;;  %4054 = vmatpush1.bf16.msra.mxu0 %v5705_v62  ;;  %v5733_v47 = vld [vmem:[#allocation3 + $0x928] ss:$16 sps:$4 sm:$0xff]   ;;  %v5734_v62 = vld [vmem:[#allocation3 + $0x90c] ss:$16 sps:$4 sm:$0xff]  }
 0x353   :  { %4055 = vmatprep.subr.bf16.mxu0 %v5706_v28  ;;  %v5735_v28 = vld [vmem:[#allocation3 + $0x268] ss:$16 sps:$4 sm:$0xff]  }
 0x355   :  { %3861 = vmatpush2.bf16.msra.mxu1 %v5707_v30  ;;  %v5736_v30 = vld [vmem:[#allocation3 + $0x24c] ss:$16 sps:$4 sm:$0xff]  }
 0x356   :  { %3862 = vmatprep.subr.bf16.mxu1 %v5708_v61  ;;  %4056 = vmatpush2.bf16.msra.mxu0 %v5709_v19  ;;  %v5737_v61 = vld [vmem:[#allocation3 + $0x908] ss:$16 sps:$4 sm:$0xff]  }
 0x357   :  { %4057 = vmatprep.subr.bf16.mxu0 %v5710_v29  ;;  %v5738_v19 = vld [vmem:[%s6628_s2 + $0x78] sm:$0xff]  }
 0x358   :  { %v5739_v29 = vld [vmem:[#allocation3 + $0x248] ss:$16 sps:$4 sm:$0xff]  }
 0x359   :  { %3863 = vmatpush2.bf16.msra.mxu1 %v5711_v13 }
 0x35a   :  { %3864 = vmatprep.subr.bf16.mxu1 %v5712_v10  ;;  %4058 = vmatpush2.bf16.msra.mxu0 %v5713_v38  ;;  %v5740_v10 = vld [vmem:[#allocation3 + $0x22c] ss:$16 sps:$4 sm:$0xff]  }
 0x35b   :  { %4059 = vmatprep.subr.bf16.mxu0 %v5714_v40  ;;  %v5741_v38 = vld [vmem:[%s6628_s2 + $0x38] sm:$0xff]  }
 0x35d   :  { %3865 = vmatpush2.bf16.msra.mxu1 %v5715_v49  ;;  %v5742_v49 = vld [vmem:[%s6628_s2 + $0x70] sm:$0xff]  }
 0x35e   :  { %3916 = vmatprep.subr.bf16.mxu1 %v5716_v53  ;;  %4060 = vmatpush2.bf16.msra.mxu0 %v5717_v18  ;;  %v5743_v53 = vld [vmem:[#allocation3 + $0x228] ss:$16 sps:$4 sm:$0xff]  }
 0x35f   :  { %4061 = vmatprep.subr.bf16.mxu0 %v5718_v57  ;;  %v5744_v57 = vld [vmem:[#allocation3 + $0x20c] ss:$16 sps:$4 sm:$0xff]  }
 0x360   :  { %3867 = vmatmul.mubr.bf16.vlgmr.msra.gmra.mxu1 %v6473_v44  ;;  %v4721_v11 = vpop.f32.mrf.mxu1 }
 0x361   :  { %3917 = vmatpush1.bf16.msra.mxu1 %v5719_v3  ;;  %3948 = vmatprep.mubr.bf16.mxu1 %v6417_v26  ;;  %v5725_v26 = vld [vmem:[#allocation3 + $0x968] ss:$16 sps:$4 sm:$0xff]  }
 0x362   :  { %v4722_v63 = vpop.f32.mrf.mxu1  ;;  %3918 = vmatprep.subr.bf16.mxu1 %v5720_v20  ;;  %4062 = vmatpush2.bf16.msra.mxu0 %v5721_v5  ;;  %v5748_v20 = vld [vmem:[#allocation3 + $0x3ec] ss:$16 sps:$4 sm:$0xff]  }
 0x363   :  { %v4723_v14 = vadd.f32 %v4722_v63, %v4721_v11  ;;  %4063 = vmatprep.subr.bf16.mxu0 %v5722_v31  ;;  %v5746_v11 = vld [vmem:[%s6628_s2 + $0x68] sm:$0xff]  }
 0x364   :  { %v4724_v45 = vpop.f32.mrf.mxu1  ;;  %v5747_v63 = vld [vmem:[#allocation3 + $0x208] ss:$16 sps:$4 sm:$0xff]   ;;  %v5752_v31 = vld [vmem:[#allocation3 + $0x3cc] ss:$16 sps:$4 sm:$0xff]  }
 0x365   :  { %v3434_v22 = vadd.f32 %v4723_v14, %v3394_v33  ;;  %3919 = vmatpush1.bf16.msra.mxu1 %v5723_v0  ;;  %v5749_v5 = vld [vmem:[%s6628_s2 + $0x28] sm:$0xff]   ;;  %v5750_v33 = vld [vmem:[%s6628_s2 + $0x60] sm:$0xff]  }
 0x366   :  { %v4725_v46 = vpop.f32.mrf.mxu1  ;;  %3920 = vmatprep.subr.bf16.mxu1 %v5724_v17  ;;  %4064 = vmatpush2.bf16.msra.mxu0 %v5725_v26  ;;  %v5751_v14 = vld [vmem:[#allocation3 + $0x3e8] ss:$16 sps:$4 sm:$0xff]   ;;  %v5762_v26 = vld [vmem:[#allocation3 + $0x32c] ss:$16 sps:$4 sm:$0xff]  }
 0x367   :  { %v3439_v50 = vmax.f32 %v3434_v22, 0.0  ;;  %4065 = vmatprep.subr.bf16.mxu0 %v5726_v2  ;;  %v5753_v45 = vld [vmem:[#allocation3 + $0x3c8] ss:$16 sps:$4 sm:$0xff]   ;;  %v5754_v22 = vld [vmem:[#allocation3 + $0x3ac] ss:$16 sps:$4 sm:$0xff]   ;;  %v3666_v2 = vadd.f32 %v6455_v59, %v6200_v37 }
 0x368   :  { %v5755_v0 = vld [vmem:[#allocation3 + $0x3a8] ss:$16 sps:$4 sm:$0xff]   ;;  %v5756_v46 = vld [vmem:[#allocation3 + $0x38c] ss:$16 sps:$4 sm:$0xff]  }
 0x369   :  { %3921 = vmatpush1.bf16.msra.mxu1 %v5727_v25  ;;  %v3446_v21 = vmul.f32 %v6481_v52, %v3439_v50  ;;  %v5757_v17 = vld [vmem:[#allocation3 + $0x388] ss:$16 sps:$4 sm:$0xff]   ;;  %v3664_v50 = vadd.f32 %v6451_v23, %v6197_v35 }
 0x36a   :  { %3922 = vmatprep.subr.bf16.mxu1 %v5728_v6  ;;  %4066 = vmatpush2.bf16.msra.mxu0 %v5729_v15  ;;  %v5768_v15 = vld [vmem:[#allocation3 + $0x6cc] ss:$16 sps:$4 sm:$0xff]   ;;  %v5771_v37 = vld [vmem:[#allocation3 + $0x6a8] ss:$16 sps:$4 sm:$0xff]  }
 0x36b   :  { %v3448_v7 = vsel %vm3447_vm0, %v3446_v21, 0.0  ;;  %4067 = vmatprep.subr.bf16.mxu0 %v5730_v54  ;;  %v5767_v21 = vld [vmem:[#allocation3 + $0x6e8] ss:$16 sps:$4 sm:$0xff]  }
 0x36c   :  { %3449 = vadd.xlane.f32.xlu0 %v3448_v7  ;;  %v5769_v7 = vld [vmem:[#allocation3 + $0x6c8] ss:$16 sps:$4 sm:$0xff]  }
 0x36d   :  { %3923 = vmatpush1.bf16.msra.mxu1 %v5731_v12  ;;  %v5770_v12 = vld [vmem:[#allocation3 + $0x6ac] ss:$16 sps:$4 sm:$0xff]   ;;  %v5773_v59 = vld [vmem:[#allocation3 + $0x688] ss:$16 sps:$4 sm:$0xff]  }
 0x36e   :  { %3924 = vmatprep.subr.bf16.mxu1 %v5732_v27  ;;  %4068 = vmatpush2.bf16.msra.mxu0 %v5733_v47  ;;  %v5774_v27 = vld [vmem:[#allocation3 + $0x66c] ss:$16 sps:$4 sm:$0xff]  }
 0x36f   :  { %4069 = vmatprep.subr.bf16.mxu0 %v5734_v62  ;;  %v5776_v47 = vld [vmem:[#allocation3 + $0x64c] ss:$16 sps:$4 sm:$0xff]   ;;  %v5777_v62 = vld [vmem:[#allocation3 + $0x648] ss:$16 sps:$4 sm:$0xff]  }
 0x371   :  { %3925 = vmatpush1.bf16.msra.mxu1 %v5735_v28 }
 0x372   :  { %3926 = vmatprep.subr.bf16.mxu1 %v5736_v30  ;;  %4070 = vmatpush2.bf16.msra.mxu0 %v5737_v61  ;;  %v5778_v30 = vld [vmem:[#allocation3 + $0x62c] ss:$16 sps:$4 sm:$0xff]  }
 0x373   :  { %4727 = vmatprep.subr.bf16.mxu0 %v5738_v19  ;;  %v5779_v19 = vld [vmem:[#allocation3 + $0x628] ss:$16 sps:$4 sm:$0xff]  }
 0x375   :  { %3927 = vmatpush1.bf16.msra.mxu1 %v5739_v29  ;;  %v6488_v13 = vpop.f32.mrf.mxu0  ;;  %4072 = vmatmul.mubr.bf16.vlgmr.msra.gmra.mxu0 %v6423_v1  ;;  %v5745_v1 = vld [vmem:[%s6628_s2 + $0x30] sm:$0xff]  }
 0x376   :  { %3928 = vmatprep.subr.bf16.mxu1 %v5740_v10  ;;  %4728 = vmatpush3.bf16.msra.mxu0 %v5741_v38  ;;  %v5780_v10 = vld [vmem:[#allocation3 + $0x60c] ss:$16 sps:$4 sm:$0xff]  }
 0x377   :  { %v6494_v40 = vpop.f32.mrf.mxu0  ;;  %4729 = vmatprep.subr.bf16.mxu0 %v5742_v49  ;;  %v5781_v49 = vld [vmem:[#allocation3 + $0x608] ss:$16 sps:$4 sm:$0xff]  }
 0x379   :  { %3929 = vmatpush1.bf16.msra.mxu1 %v5743_v53  ;;  %v3831_v18 = vpop.f32.mrf.mxu0  ;;  %v5782_v53 = vld [vmem:[#allocation3 + $0x7ec] ss:$16 sps:$4 sm:$0xff]  }
 0x37a   :  { %3930 = vmatprep.subr.bf16.mxu1 %v5744_v57  ;;  %4730 = vmatpush3.bf16.msra.mxu0 %v5745_v1  ;;  %v5783_v18 = vld [vmem:[#allocation3 + $0x7e8] ss:$16 sps:$4 sm:$0xff]   ;;  %v5784_v57 = vld [vmem:[#allocation3 + $0x7cc] ss:$16 sps:$4 sm:$0xff]  }
 0x37b   :  { %4731 = vmatprep.subr.bf16.mxu0 %v5746_v11  ;;  %v3832_v3 = vpop.f32.mrf.mxu0  ;;  %v5785_v1 = vld [vmem:[#allocation3 + $0x7c8] ss:$16 sps:$4 sm:$0xff]   ;;  %v5786_v11 = vld [vmem:[#allocation3 + $0x7ac] ss:$16 sps:$4 sm:$0xff]  }
 0x37c   :  { %v5787_v3 = vld [vmem:[#allocation3 + $0x7a8] ss:$16 sps:$4 sm:$0xff]  }
 0x37d   :  { %3931 = vmatpush1.bf16.msra.mxu1 %v5747_v63  ;;  %v5788_v63 = vld [vmem:[#allocation3 + $0x78c] ss:$16 sps:$4 sm:$0xff]  }
 0x37e   :  { %3932 = vmatprep.subr.bf16.mxu1 %v5748_v20  ;;  %4732 = vmatpush3.bf16.msra.mxu0 %v5749_v5  ;;  %v5789_v20 = vld [vmem:[#allocation3 + $0x788] ss:$16 sps:$4 sm:$0xff]   ;;  %v5790_v5 = vld [vmem:[#allocation3 + $0x76c] ss:$16 sps:$4 sm:$0xff]  }
 0x37f   :  { %4733 = vmatprep.subr.bf16.mxu0 %v5750_v33  ;;  %v5791_v33 = vld [vmem:[#allocation3 + $0x768] ss:$16 sps:$4 sm:$0xff]  }
 0x381   :  { %3933 = vmatpush2.bf16.msra.mxu1 %v5751_v14  ;;  %v5792_v14 = vld [vmem:[#allocation3 + $0x74c] ss:$16 sps:$4 sm:$0xff]  }
 0x382   :  { %3934 = vmatprep.subr.bf16.mxu1 %v5752_v31  ;;  %4734 = vmatpush3.bf16.msra.mxu0 %v6261_v39  ;;  %v5758_v39 = vld [vmem:[#allocation3 + $0x36c] ss:$16 sps:$4 sm:$0xff]   ;;  %v5793_v31 = vld [vmem:[#allocation3 + $0x748] ss:$16 sps:$4 sm:$0xff]  }
 0x383   :  { %4735 = vmatprep.subr.bf16.mxu0 %v6269_v41  ;;  %v5759_v41 = vld [vmem:[#allocation3 + $0x368] ss:$16 sps:$4 sm:$0xff]  }
 0x385   :  { %3935 = vmatpush2.bf16.msra.mxu1 %v5753_v45  ;;  %v5794_v45 = vld [vmem:[#allocation3 + $0x72c] ss:$16 sps:$4 sm:$0xff]  }
 0x386   :  { %3936 = vmatprep.subr.bf16.mxu1 %v5754_v22  ;;  %4736 = vmatpush3.bf16.msra.mxu0 %v6278_v43  ;;  %v5760_v43 = vld [vmem:[#allocation3 + $0x34c] ss:$16 sps:$4 sm:$0xff]   ;;  %v5795_v22 = vld [vmem:[#allocation3 + $0x728] ss:$16 sps:$4 sm:$0xff]  }
 0x387   :  { %4737 = vmatprep.subr.bf16.mxu0 %v6287_v48  ;;  %v5761_v48 = vld [vmem:[#allocation3 + $0x348] ss:$16 sps:$4 sm:$0xff]  }
 0x389   :  { %3937 = vmatpush2.bf16.msra.mxu1 %v5755_v0  ;;  %v5796_v0 = vld [vmem:[#allocation3 + $0x70c] ss:$16 sps:$4 sm:$0xff]  }
 0x38a   :  { %3938 = vmatprep.subr.bf16.mxu1 %v5756_v46  ;;  %4738 = vmatpush3.bf16.msra.mxu0 %v6296_v51  ;;  %v5763_v51 = vld [vmem:[#allocation3 + $0x328] ss:$16 sps:$4 sm:$0xff]  }
 0x38b   :  { %4739 = vmatprep.subr.bf16.mxu0 %v6306_v24  ;;  %v5764_v24 = vld [vmem:[#allocation3 + $0x30c] ss:$16 sps:$4 sm:$0xff]   ;;  %v5797_v46 = vld [vmem:[#allocation3 + $0x708] ss:$16 sps:$4 sm:$0xff]  }
 0x38d   :  { %3939 = vmatpush2.bf16.msra.mxu1 %v5757_v17  ;;  %v5798_v17 = vld [vmem:[#allocation3 + $0xaec] ss:$16 sps:$4 sm:$0xff]  }
 0x38e   :  { %3940 = vmatprep.subr.bf16.mxu1 %v5758_v39  ;;  %4740 = vmatpush3.bf16.msra.mxu0 %v6315_v56  ;;  %v5765_v56 = vld [vmem:[#allocation3 + $0x308] ss:$16 sps:$4 sm:$0xff]  }
 0x38f   :  { %4741 = vmatprep.subr.bf16.mxu0 %v6324_v58  ;;  %v5766_v58 = vld [vmem:[#allocation3 + $0x6ec] ss:$16 sps:$4 sm:$0xff]  }
 0x391   :  { %3941 = vmatpush2.bf16.msra.mxu1 %v5759_v41  ;;  %v5799_v41 = vld [vmem:[#allocation3 + $0xae8] ss:$16 sps:$4 sm:$0xff]  }
 0x392   :  { %3942 = vmatprep.subr.bf16.mxu1 %v5760_v43  ;;  %4742 = vmatpush3.bf16.msra.mxu0 %v6333_v60 }
 0x395   :  { %3943 = vmatpush2.bf16.msra.mxu1 %v5761_v48  ;;  %v5800_v48 = vld [vmem:[#allocation3 + $0xacc] ss:$16 sps:$4 sm:$0xff]  }
 0x396   :  { %3944 = vmatprep.subr.bf16.mxu1 %v5762_v26 }
 0x399   :  { %3945 = vmatpush2.bf16.msra.mxu1 %v5763_v51  ;;  %v5801_v51 = vld [vmem:[#allocation3 + $0xac8] ss:$16 sps:$4 sm:$0xff]  }
 0x39a   :  { %3946 = vmatprep.subr.bf16.mxu1 %v5764_v24 }
 0x39d   :  { %3947 = vmatpush2.bf16.msra.mxu1 %v5765_v56  ;;  %v5803_v56 = vld [vmem:[#allocation3 + $0xaa8] ss:$16 sps:$4 sm:$0xff]  }
 0x39e   :  { %3998 = vmatprep.subr.bf16.mxu1 %v5766_v58  ;;  %v5804_v58 = vld [vmem:[#allocation3 + $0xa8c] ss:$16 sps:$4 sm:$0xff]  }
 0x3a0   :  { %v3704_v25 = vpop.f32.mrf.mxu1  ;;  %3949 = vmatmul.mubr.bf16.vlgmr.msra.gmra.mxu1 %v6439_v16  ;;  %v5772_v16 = vld [vmem:[#allocation3 + $0x68c] ss:$16 sps:$4 sm:$0xff]  }
 0x3a1   :  { %v6525_v60 = vadd.f32 %v3704_v25, %v3664_v50  ;;  %3999 = vmatpush1.bf16.msra.mxu1 %v5767_v21  ;;  %4030 = vmatprep.mubr.bf16.mxu1 %v6445_v36  ;;  %v5775_v36 = vld [vmem:[#allocation3 + $0x668] ss:$16 sps:$4 sm:$0xff]   ;;  %v5802_v50 = vld [vmem:[#allocation3 + $0xaac] ss:$16 sps:$4 sm:$0xff]  }
 0x3a2   :  { %v3706_v6 = vpop.f32.mrf.mxu1  ;;  %4000 = vmatprep.subr.bf16.mxu1 %v5768_v15  ;;  %v5807_v25 = vld [vmem:[#allocation3 + $0xa68] ss:$16 sps:$4 sm:$0xff]   ;;  %v6540_v21 = vld [vmem:[#allocation2] ss:$0 sm:$0xff] }
 0x3a3   :  { %v6528_v35 = vadd.f32 %v3706_v6, %v3666_v2  ;;  %v5805_v2 = vld [vmem:[#allocation3 + $0xa88] ss:$16 sps:$4 sm:$0xff]  }
 0x3a4   :  { %v3708_v23 = vpop.f32.mrf.mxu1  ;;  %v5809_v6 = vld [vmem:[#allocation3 + $0xa48] ss:$16 sps:$4 sm:$0xff]  }
 0x3a5   :  { %4001 = vmatpush1.bf16.msra.mxu1 %v5769_v7 }
 0x3a6   :  { %v3709_v54 = vpop.f32.mrf.mxu1  ;;  %4002 = vmatprep.subr.bf16.mxu1 %v5770_v12 }
 0x3a7   :  { %v5810_v54 = vld [vmem:[#allocation3 + $0xa2c] ss:$16 sps:$4 sm:$0xff]  }
 0x3a9   :  { %4003 = vmatpush1.bf16.msra.mxu1 %v5771_v37 }
 0x3aa   :  { %4004 = vmatprep.subr.bf16.mxu1 %v5772_v16  ;;  %v5811_v16 = vld [vmem:[#allocation3 + $0xa28] ss:$16 sps:$4 sm:$0xff]  }
 0x3ad   :  { %4005 = vmatpush1.bf16.msra.mxu1 %v5773_v59 }
 0x3ae   :  { %4006 = vmatprep.subr.bf16.mxu1 %v5774_v27 }
 0x3b1   :  { %4007 = vmatpush1.bf16.msra.mxu1 %v5775_v36  ;;  %v5812_v36 = vld [vmem:[#allocation3 + $0xa0c] ss:$16 sps:$4 sm:$0xff]  }
 0x3b2   :  { %4008 = vmatprep.subr.bf16.mxu1 %v5776_v47 }
 0x3b5   :  { %4009 = vmatpush1.bf16.msra.mxu1 %v5777_v62  ;;  %v6530_v28 = vpop.f32.mrf.mxu0  ;;  %v5813_v62 = vld [vmem:[#allocation3 + $0xa08] ss:$16 sps:$4 sm:$0xff]  }
 0x3b6   :  { %4010 = vmatprep.subr.bf16.mxu1 %v5778_v30  ;;  %v5814_v30 = vld [vmem:[#allocation3 + $0xbec] ss:$16 sps:$4 sm:$0xff]  }
 0x3b7   :  { %v6532_v61 = vpop.f32.mrf.mxu0 }
 0x3b9   :  { %4011 = vmatpush1.bf16.msra.mxu1 %v5779_v19  ;;  %v3913_v29 = vpop.f32.mrf.mxu0  ;;  %v5815_v19 = vld [vmem:[#allocation3 + $0xbe8] ss:$16 sps:$4 sm:$0xff]  }
 0x3ba   :  { %4012 = vmatprep.subr.bf16.mxu1 %v5780_v10  ;;  %v5816_v29 = vld [vmem:[#allocation3 + $0xbcc] ss:$16 sps:$4 sm:$0xff]   ;;  %v5817_v10 = vld [vmem:[#allocation3 + $0xbc8] ss:$16 sps:$4 sm:$0xff]  }
 0x3bb   :  { %v3914_v38 = vpop.f32.mrf.mxu0 }
 0x3bc   :  { %v5818_v38 = vld [vmem:[#allocation3 + $0xbac] ss:$16 sps:$4 sm:$0xff]  }
 0x3bd   :  { %4013 = vmatpush1.bf16.msra.mxu1 %v5781_v49 }
 0x3be   :  { %4014 = vmatprep.subr.bf16.mxu1 %v5782_v53  ;;  %v5819_v53 = vld [vmem:[#allocation3 + $0xba8] ss:$16 sps:$4 sm:$0xff]  }
 0x3c1   :  { %4015 = vmatpush2.bf16.msra.mxu1 %v5783_v18 }
 0x3c2   :  { %4016 = vmatprep.subr.bf16.mxu1 %v5784_v57  ;;  %v5820_v57 = vld [vmem:[#allocation3 + $0xb8c] ss:$16 sps:$4 sm:$0xff]  }
 0x3c5   :  { %4017 = vmatpush2.bf16.msra.mxu1 %v5785_v1  ;;  %v5821_v1 = vld [vmem:[#allocation3 + $0xb88] ss:$16 sps:$4 sm:$0xff]  }
 0x3c6   :  { %4018 = vmatprep.subr.bf16.mxu1 %v5786_v11  ;;  %v5822_v11 = vld [vmem:[#allocation3 + $0xb6c] ss:$16 sps:$4 sm:$0xff]  }
 0x3c9   :  { %4019 = vmatpush2.bf16.msra.mxu1 %v5787_v3  ;;  %v5823_v3 = vld [vmem:[#allocation3 + $0xb68] ss:$16 sps:$4 sm:$0xff]  }
 0x3ca   :  { %4020 = vmatprep.subr.bf16.mxu1 %v5788_v63  ;;  %v5824_v63 = vld [vmem:[#allocation3 + $0xb4c] ss:$16 sps:$4 sm:$0xff]  }
 0x3cd   :  { %4021 = vmatpush2.bf16.msra.mxu1 %v5789_v20  ;;  %v5825_v20 = vld [vmem:[#allocation3 + $0xb48] ss:$16 sps:$4 sm:$0xff]  }
 0x3ce   :  { %4022 = vmatprep.subr.bf16.mxu1 %v5790_v5  ;;  %v5826_v5 = vld [vmem:[#allocation3 + $0xb2c] ss:$16 sps:$4 sm:$0xff]  }
 0x3d1   :  { %4023 = vmatpush2.bf16.msra.mxu1 %v5791_v33 }
 0x3d2   :  { %4024 = vmatprep.subr.bf16.mxu1 %v5792_v14  ;;  %v3746_v14 = vadd.f32 %v6465_v32, %v6525_v60  ;;  %v5830_v32 = vld [vmem:[%s6628_s2 + $0xf8] sm:$0xff]  }
 0x3d5   :  { %4025 = vmatpush2.bf16.msra.mxu1 %v5793_v31  ;;  %v5827_v31 = vld [vmem:[#allocation3 + $0xb28] ss:$16 sps:$4 sm:$0xff]  }
 0x3d6   :  { %4026 = vmatprep.subr.bf16.mxu1 %v5794_v45  ;;  %v5828_v45 = vld [vmem:[#allocation3 + $0xb0c] ss:$16 sps:$4 sm:$0xff]  }
 0x3d9   :  { %4027 = vmatpush2.bf16.msra.mxu1 %v5795_v22 }
 0x3da   :  { %4028 = vmatprep.subr.bf16.mxu1 %v5796_v0  ;;  %v3748_v0 = vadd.f32 %v6468_v42, %v6528_v35 }
 0x3dd   :  { %4029 = vmatpush2.bf16.msra.mxu1 %v5797_v46 }
 0x3de   :  { %4080 = vmatprep.subr.bf16.mxu1 %v5798_v17 }
 0x3e0   :  { %v6534_v39 = vpop.f32.mrf.mxu1  ;;  %4031 = vmatmul.mubr.bf16.vlgmr.msra.gmra.mxu1 %v6459_v34  ;;  %v5806_v34 = vld [vmem:[#allocation3 + $0xa6c] ss:$16 sps:$4 sm:$0xff]  }
 0x3e1   :  { %4081 = vmatpush1.bf16.msra.mxu1 %v5799_v41  ;;  %4112 = vmatprep.mubr.bf16.mxu1 %v6461_v9  ;;  %v5808_v9 = vld [vmem:[#allocation3 + $0xa4c] ss:$16 sps:$4 sm:$0xff]   ;;  %v3787_v46 = vadd.f32 %v6534_v39, %v3746_v14  ;;  %v5829_v41 = vld [vmem:[#allocation3 + $0xb08] ss:$16 sps:$4 sm:$0xff]  }
 0x3e2   :  { %v6538_v43 = vpop.f32.mrf.mxu1  ;;  %4082 = vmatprep.subr.bf16.mxu1 %v5800_v48  ;;  %v5831_v39 = vld [vmem:[%s6628_s2 + $0xb8] sm:$0xff]  }
 0x3e3   :  { %v3789_v17 = vadd.f32 %v6538_v43, %v3748_v0  ;;  %v3828_v60 = vadd.f32 %v6488_v13, %v3787_v46 }
 0x3e4   :  { %v3790_v26 = vpop.f32.mrf.mxu1 }
 0x3e5   :  { %4083 = vmatpush1.bf16.msra.mxu1 %v5801_v51  ;;  %v3830_v42 = vadd.f32 %v6494_v40, %v3789_v17  ;;  %v5832_v26 = vld [vmem:[%s6628_s2 + $0xf0] sm:$0xff]  }
 0x3e6   :  { %v3791_v24 = vpop.f32.mrf.mxu1  ;;  %4084 = vmatprep.subr.bf16.mxu1 %v5802_v50 }
 0x3e9   :  { %4085 = vmatpush1.bf16.msra.mxu1 %v5803_v56  ;;  %v5834_v56 = vld [vmem:[%s6628_s2 + $0xe8] sm:$0xff]  }
 0x3ea   :  { %4086 = vmatprep.subr.bf16.mxu1 %v5804_v58 }
 0x3ed   :  { %4087 = vmatpush1.bf16.msra.mxu1 %v5805_v2 }
 0x3ee   :  { %4088 = vmatprep.subr.bf16.mxu1 %v5806_v34  ;;  %v5835_v34 = vld [vmem:[%s6628_s2 + $0xa8] sm:$0xff]  }
 0x3f1   :  { %4089 = vmatpush1.bf16.msra.mxu1 %v5807_v25  ;;  %v5836_v25 = vld [vmem:[%s6628_s2 + $0xe0] sm:$0xff]  }
 0x3f2   :  { %4090 = vmatprep.subr.bf16.mxu1 %v5808_v9  ;;  %v5837_v9 = vld [vmem:[%s6628_s2 + $0xa0] sm:$0xff]  }
 0x3f5   :  { %4091 = vmatpush1.bf16.msra.mxu1 %v5809_v6  ;;  %v3450_v15 = vpop.xlane.xlu0 %3449  ;;  %v6542_v23 = vpop.f32.mrf.mxu0  ;;  %v5838_v6 = vld [vmem:[%s6628_s2 + $0xd8] sm:$0xff]  }
 0x3f6   :  { %v3457_v7 = vadd.f32 %v6540_v21, %v3450_v15  ;;  %4092 = vmatprep.subr.bf16.mxu1 %v5810_v54  ;;  %v5839_v15 = vld [vmem:[%s6628_s2 + $0x98] sm:$0xff]  }
 0x3f7   :  { %v6545_v12 = vpop.f32.mrf.mxu0 }
 0x3f8   :  { %v3458_v37 = vsub.f32 0.0, %v3457_v7  ;;  %v5840_v7 = vld [vmem:[%s6628_s2 + $0xd0] sm:$0xff]  }
 0x3f9   :  { %4093 = vmatpush1.bf16.msra.mxu1 %v5811_v16  ;;  %v3995_v59 = vpop.f32.mrf.mxu0  ;;  %v5842_v16 = vld [vmem:[%s6628_s2 + $0xc8] sm:$0xff]  }
 0x3fa   :  { %v3459_v27 = vmul.f32 1.442695, %v3458_v37  ;;  %4094 = vmatprep.subr.bf16.mxu1 %v5812_v36  ;;  %v5841_v37 = vld [vmem:[%s6628_s2 + $0x90] sm:$0xff]   ;;  %v5843_v36 = vld [vmem:[%s6628_s2 + $0x88] sm:$0xff]  }
 0x3fb   :  { %v3996_v47 = vpop.f32.mrf.mxu0 }
 0x3fc   :  { %5431 = vpow2.f32 %v3459_v27  ;;  %v5844_v47 = vld [vmem:[%s6628_s2 + $0xc0] sm:$0xff]  }
 0x3fd   :  { %4095 = vmatpush1.bf16.msra.mxu1 %v5813_v62 }
 0x3fe   :  { %4096 = vmatprep.subr.bf16.mxu1 %v5814_v30  ;;  %v5845_v30 = vld [vmem:[%s6628_s2 + $0x80] sm:$0xff]  }
 0x401   :  { %4097 = vmatpush2.bf16.msra.mxu1 %v5815_v19  ;;  %v3910_v19 = vadd.f32 %v6530_v28, %v6340_v4 }
 0x402   :  { %4098 = vmatprep.subr.bf16.mxu1 %v5816_v29  ;;  %v3912_v29 = vadd.f32 %v6532_v61, %v6346_v55 }
 0x405   :  { %4099 = vmatpush2.bf16.msra.mxu1 %v5817_v10 }
 0x406   :  { %4100 = vmatprep.subr.bf16.mxu1 %v5818_v38 }
 0x409   :  { %v5432_v49 = vpop.eup %5431  ;;  %4101 = vmatpush2.bf16.msra.mxu1 %v5819_v53 }
 0x40a   :  { %v3461_v18 = vadd.f32 1.0, %v5432_v49  ;;  %4102 = vmatprep.subr.bf16.mxu1 %v5820_v57 }
 0x40c   :  { %5433 = vrcp.f32 %v3461_v18 }
 0x40d   :  { %4103 = vmatpush2.bf16.msra.mxu1 %v5821_v1 }
 0x40e   :  { %4104 = vmatprep.subr.bf16.mxu1 %v5822_v11 }
 0x411   :  { %4105 = vmatpush2.bf16.msra.mxu1 %v5823_v3 }
 0x412   :  { %4106 = vmatprep.subr.bf16.mxu1 %v5824_v63 }
 0x415   :  { %4107 = vmatpush2.bf16.msra.mxu1 %v5825_v20 }
 0x416   :  { %4108 = vmatprep.subr.bf16.mxu1 %v5826_v5 }
 0x419   :  { %v5434_v33 = vpop.eup %5433  ;;  %4109 = vmatpush2.bf16.msra.mxu1 %v5827_v31 }
 0x41a   :  { %3468 = vrot.lane.b32.xlu1 %v5434_v33, %s6029_s4  ;;  %4110 = vmatprep.subr.bf16.mxu1 %v5828_v45  ;;  %v3464_v22 = vsub.f32 1.0, %v5434_v33 }
 0x41c   :  { %3466 = vst.msk [vmem:[#allocation14] sm:$0xff] %vm3465_vm1, %v3464_v22 }
 0x41d   :  { %4111 = vmatpush2.bf16.msra.mxu1 %v5829_v41 }
 0x41e   :  { %4749 = vmatprep.subr.bf16.mxu1 %v5830_v32 }
 0x420   :  { %v3868_v48 = vpop.f32.mrf.mxu1  ;;  %4113 = vmatmul.mubr.bf16.vlgmr.msra.gmra.mxu1 %v6473_v44  ;;  %v5833_v44 = vld [vmem:[%s6628_s2 + $0xb0] sm:$0xff]  }
 0x421   :  { %v3869_v35 = vadd.f32 %v3868_v48, %v3828_v60  ;;  %4750 = vmatpush3.bf16.msra.mxu1 %v5831_v39 }
 0x422   :  { %v3870_v43 = vpop.f32.mrf.mxu1  ;;  %4751 = vmatprep.subr.bf16.mxu1 %v5832_v26 }
 0x423   :  { %v3871_v51 = vadd.f32 %v3870_v43, %v3830_v42  ;;  %v4121_v24 = vmax.f32 %v3869_v35, 0.0 }
 0x424   :  { %v3872_v13 = vpop.f32.mrf.mxu1 }
 0x425   :  { %v4122_v50 = vmax.f32 %v3871_v51, 0.0  ;;  %4752 = vmatpush3.bf16.msra.mxu1 %v5833_v44  ;;  %v4125_v2 = vpack.c.bf16 %v4121_v24, %v4121_v24 }
 0x426   :  { %v3873_v40 = vpop.f32.mrf.mxu1  ;;  %4753 = vmatprep.subr.bf16.mxu1 %v5834_v56 }
 0x427   :  { %v4126_v58 = vpack.c.bf16 %v4122_v50, %v4122_v50 }
 0x429   :  { %4161 = vmatprep.mubr.bf16.mxu0 %v4126_v58  ;;  %4754 = vmatpush3.bf16.msra.mxu1 %v5835_v34 }
 0x42a   :  { %4162 = vmatmul.mubr.bf16.vlgmr.msra.gmra.mxu0 %v4125_v2  ;;  %4755 = vmatprep.subr.bf16.mxu1 %v5836_v25 }
 0x42d   :  { %4756 = vmatpush3.bf16.msra.mxu1 %v5837_v9 }
 0x42e   :  { %4757 = vmatprep.subr.bf16.mxu1 %v5838_v6 }
 0x431   :  { %4758 = vmatpush3.bf16.msra.mxu1 %v5839_v15 }
 0x432   :  { %4759 = vmatprep.subr.bf16.mxu1 %v5840_v7 }
 0x435   :  { %v4073_v54 = vpop.f32.mrf.mxu0  ;;  %4760 = vmatpush3.bf16.msra.mxu1 %v5841_v37 }
 0x436   :  { %4761 = vmatprep.subr.bf16.mxu1 %v5842_v16 }
 0x437   :  { %v4075_v59 = vpop.f32.mrf.mxu0 }
 0x439   :  { %v4077_v27 = vpop.f32.mrf.mxu0  ;;  %4762 = vmatpush3.bf16.msra.mxu1 %v5843_v36 }
 0x43a   :  { %4763 = vmatprep.subr.bf16.mxu1 %v5844_v47 }
 0x43b   :  { %v4078_v62 = vpop.f32.mrf.mxu0 }
 0x43d   :  { %4764 = vmatpush3.bf16.msra.mxu1 %v5845_v30 }
 0x460   :  { %v3950_v10 = vpop.f32.mrf.mxu1 }
 0x461   :  { %v3951_v38 = vadd.f32 %v3950_v10, %v3910_v19 }
 0x462   :  { %v3952_v49 = vpop.f32.mrf.mxu1 }
 0x463   :  { %v3953_v53 = vadd.f32 %v3952_v49, %v3912_v29  ;;  %v3992_v5 = vadd.f32 %v6542_v23, %v3951_v38 }
 0x464   :  { %v3954_v18 = vpop.f32.mrf.mxu1 }
 0x465   :  { %v3994_v4 = vadd.f32 %v6545_v12, %v3953_v53 }
 0x466   :  { %v3955_v57 = vpop.f32.mrf.mxu1 }
 0x48c   :  { %v3469_v1 = vpop.permute.xlu1 %3468 }
 0x48d   :  { %3472 = vst.msk [vmem:[#allocation14] sm:$0xff] %vm3471_vm2, %v3469_v1 }
 0x4a0   :  { %v4032_v11 = vpop.f32.mrf.mxu1 }
 0x4a1   :  { %v4033_v28 = vadd.f32 %v4032_v11, %v3992_v5 }
 0x4a2   :  { %v4034_v3 = vpop.f32.mrf.mxu1 }
 0x4a3   :  { %v4035_v55 = vadd.f32 %v4034_v3, %v3994_v4  ;;  %v4074_v61 = vadd.f32 %v4073_v54, %v4033_v28 }
 0x4a4   :  { %v4036_v63 = vpop.f32.mrf.mxu1 }
 0x4a5   :  { %v4076_v14 = vadd.f32 %v4075_v59, %v4035_v55 }
 0x4a6   :  { %v4037_v20 = vpop.f32.mrf.mxu1 }
 0x4e0   :  { %v4114_v33 = vpop.f32.mrf.mxu1 }
 0x4e1   :  { %v4115_v31 = vadd.f32 %v4114_v33, %v4074_v61 }
 0x4e2   :  { %v4116_v45 = vpop.f32.mrf.mxu1 }
 0x4e3   :  { %v4117_v22 = vadd.f32 %v4116_v45, %v4076_v14  ;;  %v4123_v0 = vmax.f32 %v4115_v31, 0.0 }
 0x4e4   :  { %v4118_v46 = vpop.f32.mrf.mxu1 }
 0x4e5   :  { %v4124_v17 = vmax.f32 %v4117_v22, 0.0  ;;  %v4127_v60 = vpack.c.bf16 %v4123_v0, %v4123_v0 }
 0x4e6   :  { %v4119_v41 = vpop.f32.mrf.mxu1 }
 0x4e7   :  { %v4128_v32 = vpack.c.bf16 %v4124_v17, %v4124_v17 }
 0x4e9   :  { %4201 = vmatprep.mubr.bf16.mxu1 %v4128_v32 }
 0x4ea   :  { %v4743_v48 = vpop.f32.mrf.mxu0  ;;  %4202 = vmatmul.mubr.bf16.vlgmr.msra.gmra.mxu1 %v4127_v60 }
 0x4ec   :  { %v4744_v23 = vpop.f32.mrf.mxu0 }
 0x4ed   :  { %v4745_v42 = vadd.f32 %v4744_v23, %v4743_v48 }
 0x4ee   :  { %v4746_v12 = vpop.f32.mrf.mxu0 }
 0x4ef   :  { %v4164_v26 = vadd.f32 %v4745_v42, %v6475_v8 }
 0x4f0   :  { %v4747_v35 = vpop.f32.mrf.mxu0 }
 0x5aa   :  { %v4765_v39 = vpop.f32.mrf.mxu1 }
 0x5ac   :  { %v4766_v43 = vpop.f32.mrf.mxu1 }
 0x5ad   :  { %v4767_v51 = vadd.f32 %v4766_v43, %v4765_v39 }
 0x5ae   :  { %v4768_v24 = vpop.f32.mrf.mxu1 }
 0x5af   :  { %v4204_v13 = vadd.f32 %v4767_v51, %v4164_v26 }
 0x5b0   :  { %v4769_v50 = vpop.f32.mrf.mxu1 }
 0x5b1   :  { %v4209_v44 = vmax.f32 %v4204_v13, 0.0 }
 0x5b3   :  { %v4210_v40 = vmul.f32 %v6481_v52, %v4209_v44 }
 0x5b5   :  { %v4211_v56 = vsel %vm3447_vm0, %v4210_v40, 0.0 }
 0x5b6   :  { %4212 = vadd.xlane.f32.xlu0 %v4211_v56 }
 0x63f   :  { %v4213_v58 = vpop.xlane.xlu0 %4212 }
 0x640   :  { %v4214_v2 = vadd.f32 %v6540_v21, %v4213_v58 }
 0x642   :  { %v4215_v34 = vsub.f32 0.0, %v4214_v2 }
 0x644   :  { %v4216_v25 = vmul.f32 1.442695, %v4215_v34 }
 0x646   :  { %5435 = vpow2.f32 %v4216_v25 }
 0x653   :  { %v5436_v9 = vpop.eup %5435 }
 0x654   :  { %v4218_v6 = vadd.f32 1.0, %v5436_v9 }
 0x656   :  { %5437 = vrcp.f32 %v4218_v6 }
 0x663   :  { %v5438_v8 = vpop.eup %5437 }
 0x664   :  { %4224 = vrot.lane.b32.xlu1 %v5438_v8, %s6029_s4  ;;  %v4221_v15 = vsub.f32 1.0, %v5438_v8 }
 0x666   :  { %4222 = vst.msk [vmem:[#allocation15] sm:$0xff] %vm3465_vm1, %v4221_v15 }
 0x6d6   :  { %v4225_v7 = vpop.permute.xlu1 %4224 }
 0x6d7   :  { %4227 = vst.msk [vmem:[#allocation15] sm:$0xff] %vm3471_vm2, %v4225_v7 }
 0x6d8   :  { %4232 = vsyncadd [#allocation5], 96  ;;  %s6030_s2 = smov [#allocation14]  }
 0x6d9   :  { %s4233_s6 = sshll.u32 %s6030_s2, 4  ;;  %s4234_s6 = int_to_ptr.vmem [resolvable:$true] %s4233_s6 }
 0x6da   :  { %s5966_s7 = scalar_lea.vmem %s4234_s6, 32  ;;  %s5970_s22 = scalar_lea.vmem %s4234_s6, 128 }
 0x6db   :  { %p5967_p2 = scmp.ne.s32.totalorder %s4234_s6, %s5966_s7  ;;  %p5971_p3 = scmp.lt.s32.totalorder %s4234_s6, %s4234_s6 }
 0x6dc   :  { %p5972_p4 = scmp.lt.s32.totalorder %s5970_s22, %s5966_s7 }
 0x6de   :  { %p5973_p5 = por %p5972_p4, %p5971_p3 }
 0x6e0   :  { %p5974_p6 = pnand %p5973_p5, %p5967_p2 }
 0x6e2   :  { %5977 = shalt.err (!%p5974_p6)
}
 0x6e3   :  { %s6031_s23 = smov 32   ;;  %s6032_s4 = smov 2  }
 0x6e4   :  { %4239 = dma.vmem_to_hbm [thread:$0]  %s4234_s6, 32, %s6634_s8, [#allocation5], %s6031_s23, %s6031_s23, %s6032_s4  }
 0x6e5   :  { %4244 = vsyncadd [#allocation16], 96  ;;  %s6033_s1 = smov [#allocation15]  }
 0x6e6   :  { %s4245_s26 = sshll.u32 %s6033_s1, 4  ;;  %s4246_s26 = int_to_ptr.vmem [resolvable:$true] %s4245_s26 }
 0x6e7   :  { %s5986_s27 = scalar_lea.vmem %s4246_s26, 32  ;;  %s5990_s28 = scalar_lea.vmem %s4246_s26, 128 }
 0x6e8   :  { %p5987_p7 = scmp.ne.s32.totalorder %s4246_s26, %s5986_s27  ;;  %p5991_p8 = scmp.lt.s32.totalorder %s4246_s26, %s4246_s26 }
 0x6e9   :  { %p5992_p9 = scmp.lt.s32.totalorder %s5990_s28, %s5986_s27 }
 0x6eb   :  { %p5993_p10 = por %p5992_p9, %p5991_p8 }
 0x6ed   :  { %p5994_p11 = pnand %p5993_p10, %p5987_p7 }
 0x6ef   :  { %5997 = shalt.err (!%p5994_p11)
}
 0x6f0   :  { %4251 = dma.vmem_to_hbm [thread:$0]  %s4246_s26, 32, %s6635_s9, [#allocation16], %s6031_s23, %s6031_s23, %s6032_s4  }
 0x6f1   :  { %6014 = dma.done.wait [#allocation5], 128  }
 0x6f2   :  { %6015 = vsyncadd [#allocation5], 4294967168 }
 0x6f3   :  { %6016 = dma.done.wait [#allocation16], 128  }
 0x6f4   :  { %6017 = vsyncadd [#allocation16], 4294967168 }
 0x6f5   :  { %4258 = vsyncpa [#allocation4], 1 }
 0x6f6   :  { %4259 = vsyncpa [#allocation7], 1 }
 0x6f7   :  { %4260 = vsyncpa [#allocation10], 1 }
 0x6f8   :  { %4261 = vsyncpa [#allocation13], 1 }
 0x6f9   :  { %4262 = vsyncpa [#allocation5], 1 }
 0x6fa   :  { %4263 = vsyncpa [#allocation16], 1 }

</bundles_post_ra>
